<compile_context>
chip_gen: v7x
topology: tpu7x:2x2x1
jax: 0.10.0
libtpu: 0.0.40
codegen_flags: <defaults>
</compile_context>

<pallas_src>
import functools

import jax
import jax.numpy as jnp
from jax.experimental import pallas as pl
from jax.experimental.pallas import tpu as pltpu


# ----------------------------- fused Pallas kernel -----------------------------

def _flow_fused_kernel(x_ref, t_ref,
                       w1_ref, b1_ref, w2_ref, b2_ref, w3_ref, b3_ref,
                       o_ref, pad1_ref, padh_ref):
    """concat(x, time) -> conv3x3+ReLU -> conv3x3+ReLU -> conv3x3, one batch elem.

    x_ref   : (1, H, W, C)        bf16 input block
    t_ref   : (1, 1, TD)          f32 fourier time features
    w*_ref  : (3, 3*Cin, Cout)    bf16 K-stacked weights (K index = dx*Cin + ci)
    b*_ref  : (1, Cout)           f32 bias
    o_ref   : (1, H, W, C)        f32 output block
    pad1_ref: (H+2, W_pad, C+TD)  bf16 VMEM scratch (padded layer-1 input)
    padh_ref: (H+2, W_pad, HID)   bf16 VMEM scratch (padded hidden activations)
    """
    _, H, W, C = x_ref.shape
    C_HID = padh_ref.shape[-1]
    TD = t_ref.shape[-1]
    cdt = jnp.bfloat16

    def zero_border(ref):
        """Zero only the padding border (rows 0 / H+1, cols 0 / W+1)."""
        Hp, Wp, cc = ref.shape
        zrow = jnp.zeros((1, Wp, cc), ref.dtype)
        ref[0:1, :, :] = zrow
        ref[Hp - 1:Hp, :, :] = zrow
        zcol = jnp.zeros((Hp, 1, cc), ref.dtype)
        ref[:, 0:1, :] = zcol
        ref[:, W + 1:W + 2, :] = zcol   # cols >= W+2 (alignment pad) are never read

    zero_border(pad1_ref)
    zero_border(padh_ref)

    # ---- layer-1 padded input interior: x channels [0, C), time feats [C, C+TD) ----
    pad1_ref[1:H + 1, 1:W + 1, :C] = x_ref[0]
    t_map = jnp.broadcast_to(t_ref[...].astype(cdt), (H, W, TD))
    pad1_ref[1:H + 1, 1:W + 1, C:] = t_map

    def conv3x3(pad_ref, w_ref, b_ref, cout, relu):
        """3x3 stride-1 conv over a zero-padded VMEM buffer -> (H*W, cout) f32."""
        cin = pad_ref.shape[-1]
        pad = pad_ref[...]                                             # bf16
        # im2col along channels for the 3 column taps: (H+2, W, 3*cin).
        big = jnp.concatenate(
            [pad[:, 0:W, :], pad[:, 1:W + 1, :], pad[:, 2:W + 2, :]], axis=-1)
        acc = jnp.zeros((H * W, cout), jnp.float32)
        for dy in range(3):
            # leading-dim slice (free) + layout-preserving flatten (W % 8 == 0).
            slab = big[dy:dy + H].reshape(H * W, 3 * cin)
            acc += jnp.dot(slab, w_ref[dy], preferred_element_type=jnp.float32)
        acc = acc + b_ref[...]                                         # (1, cout) bcast
        if relu:
            acc = jnp.maximum(acc, 0.0)
        return acc

    # layer 1 (C+TD -> HID) + ReLU; hidden activations never leave VMEM.
    h = conv3x3(pad1_ref, w1_ref, b1_ref, C_HID, relu=True)
    padh_ref[1:H + 1, 1:W + 1, :] = h.reshape(H, W, C_HID).astype(cdt)

    # layer 2 (HID -> HID) + ReLU; reuse the padded scratch (border stays zero).
    h = conv3x3(padh_ref, w2_ref, b2_ref, C_HID, relu=True)
    padh_ref[1:H + 1, 1:W + 1, :] = h.reshape(H, W, C_HID).astype(cdt)

    # layer 3 (HID -> C), no activation.
    y = conv3x3(padh_ref, w3_ref, b3_ref, C, relu=False)
    o_ref[...] = y.reshape(1, H, W, C).astype(o_ref.dtype)


# ----------------------------- Flow module (JAX glue) -----------------------------

def fourier_features(t, dim):
    half_dim = dim // 2
    freq_bands = (2.0 ** jnp.arange(half_dim, dtype=jnp.float32)) * jnp.pi
    args = t.reshape(t.shape[0], 1) * freq_bands[None, :]
    return jnp.concatenate([jnp.sin(args), jnp.cos(args)], axis=-1)   # (B, dim)


def init_flow_params(key, in_channels=64, time_dim=16):
    """Deterministic kaiming-uniform-style init; weights stored HWIO (f32)."""
    def conv_init(k, cin, cout):
        kw, kb = jax.random.split(k)
        bound = 1.0 / jnp.sqrt(cin * 9.0)
        w = jax.random.uniform(kw, (3, 3, cin, cout), jnp.float32, -bound, bound)
        b = jax.random.uniform(kb, (cout,), jnp.float32, -bound, bound)
        return w, b

    k1, k2, k3 = jax.random.split(key, 3)
    w1, b1 = conv_init(k1, in_channels + time_dim, 64)
    w2, b2 = conv_init(k2, 64, 64)
    w3, b3 = conv_init(k3, 64, in_channels)
    return {"w1": w1, "b1": b1, "w2": w2, "b2": b2, "w3": w3, "b3": b3,
            "time_dim": time_dim}


def _kstack_w(w):
    """HWIO (3, 3, Cin, Cout) -> bf16 (3, 3*Cin, Cout); K index = dx*Cin + ci."""
    kh, kw, cin, cout = w.shape
    return w.reshape(kh, kw * cin, cout).astype(jnp.bfloat16)


@functools.partial(jax.jit, static_argnames=("time_dim",))
def _flow_forward_impl(weights, x_nchw, t, *, time_dim):
    B, C, H, W = x_nchw.shape
    C_HID = weights["w2"].shape[-1]
    C0 = C + time_dim
    W_pad = ((W + 2 + 7) // 8) * 8          # 8-sublane-aligned padded width

    t_feats = fourier_features(t, time_dim).reshape(B, 1, time_dim)   # (B, 1, TD)
    x_nhwc = jnp.transpose(x_nchw, (0, 2, 3, 1)).astype(jnp.bfloat16)  # NCHW -> NHWC

    w1s = _kstack_w(weights["w1"])
    w2s = _kstack_w(weights["w2"])
    w3s = _kstack_w(weights["w3"])
    b1 = weights["b1"].reshape(1, -1).astype(jnp.float32)
    b2 = weights["b2"].reshape(1, -1).astype(jnp.float32)
    b3 = weights["b3"].reshape(1, -1).astype(jnp.float32)

    out_nhwc = pl.pallas_call(
        _flow_fused_kernel,
        out_shape=jax.ShapeDtypeStruct((B, H, W, C), jnp.float32),
        grid_spec=pltpu.PrefetchScalarGridSpec(
            num_scalar_prefetch=0,
            grid=(B,),
            in_specs=[
                pl.BlockSpec((1, H, W, C), lambda b: (b, 0, 0, 0)),
                pl.BlockSpec((1, 1, time_dim), lambda b: (b, 0, 0)),
                pl.BlockSpec((3, 3 * C0, C_HID), lambda b: (0, 0, 0)),
                pl.BlockSpec((1, C_HID), lambda b: (0, 0)),
                pl.BlockSpec((3, 3 * C_HID, C_HID), lambda b: (0, 0, 0)),
                pl.BlockSpec((1, C_HID), lambda b: (0, 0)),
                pl.BlockSpec((3, 3 * C_HID, C), lambda b: (0, 0, 0)),
                pl.BlockSpec((1, C), lambda b: (0, 0)),
            ],
            out_specs=pl.BlockSpec((1, H, W, C), lambda b: (b, 0, 0, 0)),
            scratch_shapes=[
                pltpu.VMEM((H + 2, W_pad, C0), jnp.bfloat16),
                pltpu.VMEM((H + 2, W_pad, C_HID), jnp.bfloat16),
            ]),
        compiler_params=pltpu.CompilerParams(
            dimension_semantics=("parallel",)),
    )(x_nhwc, t_feats, w1s, b1, w2s, b2, w3s, b3)

    return jnp.transpose(out_nhwc, (0, 3, 1, 2))                      # NHWC -> NCHW


def flow_forward(params, x_nchw, t):
    """Matches Flow.forward: x (B, C, H, W) NCHW, t (B,) -> (B, C, H, W)."""
    weights = {k: v for k, v in params.items() if k != "time_dim"}
    return _flow_forward_impl(weights, x_nchw, t, time_dim=params["time_dim"])


# ----------------------------- main -----------------------------

if __name__ == "__main__":
    B, C, H, W = 2, 8, 16, 16        # small in_channels for a quick smoke test
    TIME_DIM = 16

    key = jax.random.PRNGKey(0)
    k_params, k_x, k_t = jax.random.split(key, 3)

    params = init_flow_params(k_params, in_channels=C, time_dim=TIME_DIM)
    x = jax.random.normal(k_x, (B, C, H, W), jnp.float32)
    t = jax.random.uniform(k_t, (B,), jnp.float32)

    out = flow_forward(params, x, t)
    out = jax.block_until_ready(out)

    assert out.shape == (B, C, H, W), out.shape
    assert out.dtype == jnp.float32
    assert bool(jnp.all(jnp.isfinite(out)))
    print("KERNEL_OK")
</pallas_src>

<mosaic_0001>
module attributes {stable_mosaic.version = 11 : i64} {
  func.func @_flow_fused_kernel(%arg0: i32, %arg1: memref<1x16x16x8xbf16, #tpu.memory_space<vmem>>, %arg2: memref<1x1x16xf32, #tpu.memory_space<vmem>>, %arg3: memref<3x72x64xbf16, #tpu.memory_space<vmem>>, %arg4: memref<1x64xf32, #tpu.memory_space<vmem>>, %arg5: memref<3x192x64xbf16, #tpu.memory_space<vmem>>, %arg6: memref<1x64xf32, #tpu.memory_space<vmem>>, %arg7: memref<3x192x8xbf16, #tpu.memory_space<vmem>>, %arg8: memref<1x8xf32, #tpu.memory_space<vmem>>, %arg9: memref<1x16x16x8xf32, #tpu.memory_space<vmem>>, %arg10: memref<18x24x24xbf16, #tpu.memory_space<vmem>>, %arg11: memref<18x24x64xbf16, #tpu.memory_space<vmem>>) attributes {dimension_semantics = [#tpu.dimension_semantics<parallel>], iteration_bounds = array<i64: 2>, scalar_prefetch = 0 : i64, scratch_operands = 2 : i64, tpu.core_type = #tpu.core_type<tc>, window_params = [{transform_indices = @transform_0, window_bounds = array<i64: 1, 16, 16, 8>}, {transform_indices = @transform_1, window_bounds = array<i64: 1, 1, 16>}, {pipeline_mode = #tpu.pipeline_mode<synchronous>, transform_indices = @transform_2, window_bounds = array<i64: 3, 72, 64>}, {pipeline_mode = #tpu.pipeline_mode<synchronous>, transform_indices = @transform_3, window_bounds = array<i64: 1, 64>}, {pipeline_mode = #tpu.pipeline_mode<synchronous>, transform_indices = @transform_4, window_bounds = array<i64: 3, 192, 64>}, {pipeline_mode = #tpu.pipeline_mode<synchronous>, transform_indices = @transform_5, window_bounds = array<i64: 1, 64>}, {pipeline_mode = #tpu.pipeline_mode<synchronous>, transform_indices = @transform_6, window_bounds = array<i64: 3, 192, 8>}, {pipeline_mode = #tpu.pipeline_mode<synchronous>, transform_indices = @transform_7, window_bounds = array<i64: 1, 8>}, {transform_indices = @transform_8, window_bounds = array<i64: 1, 16, 16, 8>}]} {
    %cst = arith.constant 0.000000e+00 : bf16
    %0 = vector.broadcast %cst : bf16 to vector<1x24x24xbf16>
    %c0 = arith.constant 0 : index
    %c0_0 = arith.constant 0 : index
    %c0_1 = arith.constant 0 : index
    %1 = vector.load %arg10[%c0, %c0_0, %c0_1] : memref<18x24x24xbf16, #tpu.memory_space<vmem>>, vector<1x24x24xbf16>
    tpu.vector_store %arg10[%c0, %c0_0, %c0_1], %0 {strides = array<i32>} : memref<18x24x24xbf16, #tpu.memory_space<vmem>>, vector<1x24x24xbf16>,
    %c17 = arith.constant 17 : index
    %c0_2 = arith.constant 0 : index
    %c0_3 = arith.constant 0 : index
    %2 = vector.load %arg10[%c17, %c0_2, %c0_3] : memref<18x24x24xbf16, #tpu.memory_space<vmem>>, vector<1x24x24xbf16>
    tpu.vector_store %arg10[%c17, %c0_2, %c0_3], %0 {strides = array<i32>} : memref<18x24x24xbf16, #tpu.memory_space<vmem>>, vector<1x24x24xbf16>,
    %cst_4 = arith.constant 0.000000e+00 : bf16
    %3 = vector.broadcast %cst_4 : bf16 to vector<18x1x24xbf16>
    %c0_5 = arith.constant 0 : index
    %c0_6 = arith.constant 0 : index
    %c0_7 = arith.constant 0 : index
    %4 = vector.load %arg10[%c0_5, %c0_6, %c0_7] : memref<18x24x24xbf16, #tpu.memory_space<vmem>>, vector<18x1x24xbf16>
    tpu.vector_store %arg10[%c0_5, %c0_6, %c0_7], %3 {strides = array<i32>} : memref<18x24x24xbf16, #tpu.memory_space<vmem>>, vector<18x1x24xbf16>,
    %c0_8 = arith.constant 0 : index
    %c17_9 = arith.constant 17 : index
    %c0_10 = arith.constant 0 : index
    %5 = vector.load %arg10[%c0_8, %c17_9, %c0_10] : memref<18x24x24xbf16, #tpu.memory_space<vmem>>, vector<18x1x24xbf16>
    tpu.vector_store %arg10[%c0_8, %c17_9, %c0_10], %3 {strides = array<i32>} : memref<18x24x24xbf16, #tpu.memory_space<vmem>>, vector<18x1x24xbf16>,
    %cst_11 = arith.constant 0.000000e+00 : bf16
    %6 = vector.broadcast %cst_11 : bf16 to vector<1x24x64xbf16>
    %c0_12 = arith.constant 0 : index
    %c0_13 = arith.constant 0 : index
    %c0_14 = arith.constant 0 : index
    %7 = vector.load %arg11[%c0_12, %c0_13, %c0_14] : memref<18x24x64xbf16, #tpu.memory_space<vmem>>, vector<1x24x64xbf16>
    tpu.vector_store %arg11[%c0_12, %c0_13, %c0_14], %6 {strides = array<i32>} : memref<18x24x64xbf16, #tpu.memory_space<vmem>>, vector<1x24x64xbf16>,
    %c17_15 = arith.constant 17 : index
    %c0_16 = arith.constant 0 : index
    %c0_17 = arith.constant 0 : index
    %8 = vector.load %arg11[%c17_15, %c0_16, %c0_17] : memref<18x24x64xbf16, #tpu.memory_space<vmem>>, vector<1x24x64xbf16>
    tpu.vector_store %arg11[%c17_15, %c0_16, %c0_17], %6 {strides = array<i32>} : memref<18x24x64xbf16, #tpu.memory_space<vmem>>, vector<1x24x64xbf16>,
    %cst_18 = arith.constant 0.000000e+00 : bf16
    %9 = vector.broadcast %cst_18 : bf16 to vector<18x1x64xbf16>
    %c0_19 = arith.constant 0 : index
    %c0_20 = arith.constant 0 : index
    %c0_21 = arith.constant 0 : index
    %10 = vector.load %arg11[%c0_19, %c0_20, %c0_21] : memref<18x24x64xbf16, #tpu.memory_space<vmem>>, vector<18x1x64xbf16>
    tpu.vector_store %arg11[%c0_19, %c0_20, %c0_21], %9 {strides = array<i32>} : memref<18x24x64xbf16, #tpu.memory_space<vmem>>, vector<18x1x64xbf16>,
    %c0_22 = arith.constant 0 : index
    %c17_23 = arith.constant 17 : index
    %c0_24 = arith.constant 0 : index
    %11 = vector.load %arg11[%c0_22, %c17_23, %c0_24] : memref<18x24x64xbf16, #tpu.memory_space<vmem>>, vector<18x1x64xbf16>
    tpu.vector_store %arg11[%c0_22, %c17_23, %c0_24], %9 {strides = array<i32>} : memref<18x24x64xbf16, #tpu.memory_space<vmem>>, vector<18x1x64xbf16>,
    %c0_25 = arith.constant 0 : index
    %c0_26 = arith.constant 0 : index
    %c0_27 = arith.constant 0 : index
    %c0_28 = arith.constant 0 : index
    %12 = vector.load %arg1[%c0_25, %c0_26, %c0_27, %c0_28] : memref<1x16x16x8xbf16, #tpu.memory_space<vmem>>, vector<1x16x16x8xbf16>
    %13 = vector.shape_cast %12 : vector<1x16x16x8xbf16> to vector<16x16x8xbf16>
    %c1 = arith.constant 1 : index
    %c1_29 = arith.constant 1 : index
    %c0_30 = arith.constant 0 : index
    %14 = vector.load %arg10[%c1, %c1_29, %c0_30] : memref<18x24x24xbf16, #tpu.memory_space<vmem>>, vector<16x16x8xbf16>
    tpu.vector_store %arg10[%c1, %c1_29, %c0_30], %13 {strides = array<i32>} : memref<18x24x24xbf16, #tpu.memory_space<vmem>>, vector<16x16x8xbf16>,
    %c0_31 = arith.constant 0 : index
    %c0_32 = arith.constant 0 : index
    %c0_33 = arith.constant 0 : index
    %15 = vector.load %arg2[%c0_31, %c0_32, %c0_33] : memref<1x1x16xf32, #tpu.memory_space<vmem>>, vector<1x1x16xf32>
    %16 = arith.truncf %15 : vector<1x1x16xf32> to vector<1x1x16xbf16>
    %17 = vector.shape_cast %16 : vector<1x1x16xbf16> to vector<1x1x16xbf16>
    %18 = vector.broadcast %17 : vector<1x1x16xbf16> to vector<16x16x16xbf16>
    %c1_34 = arith.constant 1 : index
    %c1_35 = arith.constant 1 : index
    %c8 = arith.constant 8 : index
    %19 = vector.load %arg10[%c1_34, %c1_35, %c8] : memref<18x24x24xbf16, #tpu.memory_space<vmem>>, vector<16x16x16xbf16>
    tpu.vector_store %arg10[%c1_34, %c1_35, %c8], %18 {strides = array<i32>} : memref<18x24x24xbf16, #tpu.memory_space<vmem>>, vector<16x16x16xbf16>,
    %c0_36 = arith.constant 0 : index
    %c0_37 = arith.constant 0 : index
    %c0_38 = arith.constant 0 : index
    %20 = vector.load %arg10[%c0_36, %c0_37, %c0_38] : memref<18x24x24xbf16, #tpu.memory_space<vmem>>, vector<18x24x24xbf16>
    %21 = vector.extract_strided_slice %20 {offsets = [0, 0, 0], sizes = [18, 16, 24], strides = [1, 1, 1]} : vector<18x24x24xbf16> to vector<18x16x24xbf16>
    %22 = vector.extract_strided_slice %20 {offsets = [0, 1, 0], sizes = [18, 16, 24], strides = [1, 1, 1]} : vector<18x24x24xbf16> to vector<18x16x24xbf16>
    %23 = vector.extract_strided_slice %20 {offsets = [0, 2, 0], sizes = [18, 16, 24], strides = [1, 1, 1]} : vector<18x24x24xbf16> to vector<18x16x24xbf16>
    %24 = tpu.concatenate %21, %22, %23 in 2 : vector<18x16x24xbf16>, vector<18x16x24xbf16>, vector<18x16x24xbf16> -> vector<18x16x72xbf16>
    %cst_39 = arith.constant 0.000000e+00 : f32
    %25 = vector.broadcast %cst_39 : f32 to vector<256x64xf32>
    %26 = vector.extract_strided_slice %24 {offsets = [0, 0, 0], sizes = [16, 16, 72], strides = [1, 1, 1]} : vector<18x16x72xbf16> to vector<16x16x72xbf16>
    %27 = vector.shape_cast %26 : vector<16x16x72xbf16> to vector<256x72xbf16>
    %c0_40 = arith.constant 0 : index
    %c0_41 = arith.constant 0 : index
    %c0_42 = arith.constant 0 : index
    %28 = vector.load %arg3[%c0_40, %c0_41, %c0_42] : memref<3x72x64xbf16, #tpu.memory_space<vmem>>, vector<1x72x64xbf16>
    %29 = vector.shape_cast %28 : vector<1x72x64xbf16> to vector<72x64xbf16>
    %cst_43 = arith.constant dense<0.000000e+00> : vector<256x64xf32>
    %30 = tpu.matmul %27, %29, %cst_43 {dimension_numbers = #tpu.dot_dimension_numbers<[1], [0], [0], [1], [0, 0, 1, 1], [], []>} : vector<256x72xbf16>, vector<72x64xbf16>, vector<256x64xf32> -> vector<256x64xf32>
    %31 = arith.addf %25, %30 : vector<256x64xf32>
    %32 = vector.extract_strided_slice %24 {offsets = [1, 0, 0], sizes = [16, 16, 72], strides = [1, 1, 1]} : vector<18x16x72xbf16> to vector<16x16x72xbf16>
    %33 = vector.shape_cast %32 : vector<16x16x72xbf16> to vector<256x72xbf16>
    %c1_44 = arith.constant 1 : index
    %c0_45 = arith.constant 0 : index
    %c0_46 = arith.constant 0 : index
    %34 = vector.load %arg3[%c1_44, %c0_45, %c0_46] : memref<3x72x64xbf16, #tpu.memory_space<vmem>>, vector<1x72x64xbf16>
    %35 = vector.shape_cast %34 : vector<1x72x64xbf16> to vector<72x64xbf16>
    %cst_47 = arith.constant dense<0.000000e+00> : vector<256x64xf32>
    %36 = tpu.matmul %33, %35, %cst_47 {dimension_numbers = #tpu.dot_dimension_numbers<[1], [0], [0], [1], [0, 0, 1, 1], [], []>} : vector<256x72xbf16>, vector<72x64xbf16>, vector<256x64xf32> -> vector<256x64xf32>
    %37 = arith.addf %31, %36 : vector<256x64xf32>
    %38 = vector.extract_strided_slice %24 {offsets = [2, 0, 0], sizes = [16, 16, 72], strides = [1, 1, 1]} : vector<18x16x72xbf16> to vector<16x16x72xbf16>
    %39 = vector.shape_cast %38 : vector<16x16x72xbf16> to vector<256x72xbf16>
    %c2 = arith.constant 2 : index
    %c0_48 = arith.constant 0 : index
    %c0_49 = arith.constant 0 : index
    %40 = vector.load %arg3[%c2, %c0_48, %c0_49] : memref<3x72x64xbf16, #tpu.memory_space<vmem>>, vector<1x72x64xbf16>
    %41 = vector.shape_cast %40 : vector<1x72x64xbf16> to vector<72x64xbf16>
    %cst_50 = arith.constant dense<0.000000e+00> : vector<256x64xf32>
    %42 = tpu.matmul %39, %41, %cst_50 {dimension_numbers = #tpu.dot_dimension_numbers<[1], [0], [0], [1], [0, 0, 1, 1], [], []>} : vector<256x72xbf16>, vector<72x64xbf16>, vector<256x64xf32> -> vector<256x64xf32>
    %43 = arith.addf %37, %42 : vector<256x64xf32>
    %c0_51 = arith.constant 0 : index
    %c0_52 = arith.constant 0 : index
    %44 = vector.load %arg4[%c0_51, %c0_52] : memref<1x64xf32, #tpu.memory_space<vmem>>, vector<1x64xf32>
    %45 = vector.broadcast %44 : vector<1x64xf32> to vector<256x64xf32>
    %46 = arith.addf %43, %45 : vector<256x64xf32>
    %cst_53 = arith.constant 0.000000e+00 : f32
    %47 = vector.broadcast %cst_53 : f32 to vector<256x64xf32>
    %48 = arith.maximumf %46, %47 : vector<256x64xf32>
    %49 = vector.shape_cast %48 : vector<256x64xf32> to vector<16x16x64xf32>
    %50 = arith.truncf %49 : vector<16x16x64xf32> to vector<16x16x64xbf16>
    %c1_54 = arith.constant 1 : index
    %c1_55 = arith.constant 1 : index
    %c0_56 = arith.constant 0 : index
    %51 = vector.load %arg11[%c1_54, %c1_55, %c0_56] : memref<18x24x64xbf16, #tpu.memory_space<vmem>>, vector<16x16x64xbf16>
    tpu.vector_store %arg11[%c1_54, %c1_55, %c0_56], %50 {strides = array<i32>} : memref<18x24x64xbf16, #tpu.memory_space<vmem>>, vector<16x16x64xbf16>,
    %c0_57 = arith.constant 0 : index
    %c0_58 = arith.constant 0 : index
    %c0_59 = arith.constant 0 : index
    %52 = vector.load %arg11[%c0_57, %c0_58, %c0_59] : memref<18x24x64xbf16, #tpu.memory_space<vmem>>, vector<18x24x64xbf16>
    %53 = vector.extract_strided_slice %52 {offsets = [0, 0, 0], sizes = [18, 16, 64], strides = [1, 1, 1]} : vector<18x24x64xbf16> to vector<18x16x64xbf16>
    %54 = vector.extract_strided_slice %52 {offsets = [0, 1, 0], sizes = [18, 16, 64], strides = [1, 1, 1]} : vector<18x24x64xbf16> to vector<18x16x64xbf16>
    %55 = vector.extract_strided_slice %52 {offsets = [0, 2, 0], sizes = [18, 16, 64], strides = [1, 1, 1]} : vector<18x24x64xbf16> to vector<18x16x64xbf16>
    %56 = tpu.concatenate %53, %54, %55 in 2 : vector<18x16x64xbf16>, vector<18x16x64xbf16>, vector<18x16x64xbf16> -> vector<18x16x192xbf16>
    %cst_60 = arith.constant 0.000000e+00 : f32
    %57 = vector.broadcast %cst_60 : f32 to vector<256x64xf32>
    %58 = vector.extract_strided_slice %56 {offsets = [0, 0, 0], sizes = [16, 16, 192], strides = [1, 1, 1]} : vector<18x16x192xbf16> to vector<16x16x192xbf16>
    %59 = vector.shape_cast %58 : vector<16x16x192xbf16> to vector<256x192xbf16>
    %c0_61 = arith.constant 0 : index
    %c0_62 = arith.constant 0 : index
    %c0_63 = arith.constant 0 : index
    %60 = vector.load %arg5[%c0_61, %c0_62, %c0_63] : memref<3x192x64xbf16, #tpu.memory_space<vmem>>, vector<1x192x64xbf16>
    %61 = vector.shape_cast %60 : vector<1x192x64xbf16> to vector<192x64xbf16>
    %cst_64 = arith.constant dense<0.000000e+00> : vector<256x64xf32>
    %62 = tpu.matmul %59, %61, %cst_64 {dimension_numbers = #tpu.dot_dimension_numbers<[1], [0], [0], [1], [0, 0, 1, 1], [], []>} : vector<256x192xbf16>, vector<192x64xbf16>, vector<256x64xf32> -> vector<256x64xf32>
    %63 = arith.addf %57, %62 : vector<256x64xf32>
    %64 = vector.extract_strided_slice %56 {offsets = [1, 0, 0], sizes = [16, 16, 192], strides = [1, 1, 1]} : vector<18x16x192xbf16> to vector<16x16x192xbf16>
    %65 = vector.shape_cast %64 : vector<16x16x192xbf16> to vector<256x192xbf16>
    %c1_65 = arith.constant 1 : index
    %c0_66 = arith.constant 0 : index
    %c0_67 = arith.constant 0 : index
    %66 = vector.load %arg5[%c1_65, %c0_66, %c0_67] : memref<3x192x64xbf16, #tpu.memory_space<vmem>>, vector<1x192x64xbf16>
    %67 = vector.shape_cast %66 : vector<1x192x64xbf16> to vector<192x64xbf16>
    %cst_68 = arith.constant dense<0.000000e+00> : vector<256x64xf32>
    %68 = tpu.matmul %65, %67, %cst_68 {dimension_numbers = #tpu.dot_dimension_numbers<[1], [0], [0], [1], [0, 0, 1, 1], [], []>} : vector<256x192xbf16>, vector<192x64xbf16>, vector<256x64xf32> -> vector<256x64xf32>
    %69 = arith.addf %63, %68 : vector<256x64xf32>
    %70 = vector.extract_strided_slice %56 {offsets = [2, 0, 0], sizes = [16, 16, 192], strides = [1, 1, 1]} : vector<18x16x192xbf16> to vector<16x16x192xbf16>
    %71 = vector.shape_cast %70 : vector<16x16x192xbf16> to vector<256x192xbf16>
    %c2_69 = arith.constant 2 : index
    %c0_70 = arith.constant 0 : index
    %c0_71 = arith.constant 0 : index
    %72 = vector.load %arg5[%c2_69, %c0_70, %c0_71] : memref<3x192x64xbf16, #tpu.memory_space<vmem>>, vector<1x192x64xbf16>
    %73 = vector.shape_cast %72 : vector<1x192x64xbf16> to vector<192x64xbf16>
    %cst_72 = arith.constant dense<0.000000e+00> : vector<256x64xf32>
    %74 = tpu.matmul %71, %73, %cst_72 {dimension_numbers = #tpu.dot_dimension_numbers<[1], [0], [0], [1], [0, 0, 1, 1], [], []>} : vector<256x192xbf16>, vector<192x64xbf16>, vector<256x64xf32> -> vector<256x64xf32>
    %75 = arith.addf %69, %74 : vector<256x64xf32>
    %c0_73 = arith.constant 0 : index
    %c0_74 = arith.constant 0 : index
    %76 = vector.load %arg6[%c0_73, %c0_74] : memref<1x64xf32, #tpu.memory_space<vmem>>, vector<1x64xf32>
    %77 = vector.broadcast %76 : vector<1x64xf32> to vector<256x64xf32>
    %78 = arith.addf %75, %77 : vector<256x64xf32>
    %cst_75 = arith.constant 0.000000e+00 : f32
    %79 = vector.broadcast %cst_75 : f32 to vector<256x64xf32>
    %80 = arith.maximumf %78, %79 : vector<256x64xf32>
    %81 = vector.shape_cast %80 : vector<256x64xf32> to vector<16x16x64xf32>
    %82 = arith.truncf %81 : vector<16x16x64xf32> to vector<16x16x64xbf16>
    %c1_76 = arith.constant 1 : index
    %c1_77 = arith.constant 1 : index
    %c0_78 = arith.constant 0 : index
    %83 = vector.load %arg11[%c1_76, %c1_77, %c0_78] : memref<18x24x64xbf16, #tpu.memory_space<vmem>>, vector<16x16x64xbf16>
    tpu.vector_store %arg11[%c1_76, %c1_77, %c0_78], %82 {strides = array<i32>} : memref<18x24x64xbf16, #tpu.memory_space<vmem>>, vector<16x16x64xbf16>,
    %c0_79 = arith.constant 0 : index
    %c0_80 = arith.constant 0 : index
    %c0_81 = arith.constant 0 : index
    %84 = vector.load %arg11[%c0_79, %c0_80, %c0_81] : memref<18x24x64xbf16, #tpu.memory_space<vmem>>, vector<18x24x64xbf16>
    %85 = vector.extract_strided_slice %84 {offsets = [0, 0, 0], sizes = [18, 16, 64], strides = [1, 1, 1]} : vector<18x24x64xbf16> to vector<18x16x64xbf16>
    %86 = vector.extract_strided_slice %84 {offsets = [0, 1, 0], sizes = [18, 16, 64], strides = [1, 1, 1]} : vector<18x24x64xbf16> to vector<18x16x64xbf16>
    %87 = vector.extract_strided_slice %84 {offsets = [0, 2, 0], sizes = [18, 16, 64], strides = [1, 1, 1]} : vector<18x24x64xbf16> to vector<18x16x64xbf16>
    %88 = tpu.concatenate %85, %86, %87 in 2 : vector<18x16x64xbf16>, vector<18x16x64xbf16>, vector<18x16x64xbf16> -> vector<18x16x192xbf16>
    %cst_82 = arith.constant 0.000000e+00 : f32
    %89 = vector.broadcast %cst_82 : f32 to vector<256x8xf32>
    %90 = vector.extract_strided_slice %88 {offsets = [0, 0, 0], sizes = [16, 16, 192], strides = [1, 1, 1]} : vector<18x16x192xbf16> to vector<16x16x192xbf16>
    %91 = vector.shape_cast %90 : vector<16x16x192xbf16> to vector<256x192xbf16>
    %c0_83 = arith.constant 0 : index
    %c0_84 = arith.constant 0 : index
    %c0_85 = arith.constant 0 : index
    %92 = vector.load %arg7[%c0_83, %c0_84, %c0_85] : memref<3x192x8xbf16, #tpu.memory_space<vmem>>, vector<1x192x8xbf16>
    %93 = vector.shape_cast %92 : vector<1x192x8xbf16> to vector<192x8xbf16>
    %cst_86 = arith.constant dense<0.000000e+00> : vector<256x8xf32>
    %94 = tpu.matmul %91, %93, %cst_86 {dimension_numbers = #tpu.dot_dimension_numbers<[1], [0], [0], [1], [0, 0, 1, 1], [], []>} : vector<256x192xbf16>, vector<192x8xbf16>, vector<256x8xf32> -> vector<256x8xf32>
    %95 = arith.addf %89, %94 : vector<256x8xf32>
    %96 = vector.extract_strided_slice %88 {offsets = [1, 0, 0], sizes = [16, 16, 192], strides = [1, 1, 1]} : vector<18x16x192xbf16> to vector<16x16x192xbf16>
    %97 = vector.shape_cast %96 : vector<16x16x192xbf16> to vector<256x192xbf16>
    %c1_87 = arith.constant 1 : index
    %c0_88 = arith.constant 0 : index
    %c0_89 = arith.constant 0 : index
    %98 = vector.load %arg7[%c1_87, %c0_88, %c0_89] : memref<3x192x8xbf16, #tpu.memory_space<vmem>>, vector<1x192x8xbf16>
    %99 = vector.shape_cast %98 : vector<1x192x8xbf16> to vector<192x8xbf16>
    %cst_90 = arith.constant dense<0.000000e+00> : vector<256x8xf32>
    %100 = tpu.matmul %97, %99, %cst_90 {dimension_numbers = #tpu.dot_dimension_numbers<[1], [0], [0], [1], [0, 0, 1, 1], [], []>} : vector<256x192xbf16>, vector<192x8xbf16>, vector<256x8xf32> -> vector<256x8xf32>
    %101 = arith.addf %95, %100 : vector<256x8xf32>
    %102 = vector.extract_strided_slice %88 {offsets = [2, 0, 0], sizes = [16, 16, 192], strides = [1, 1, 1]} : vector<18x16x192xbf16> to vector<16x16x192xbf16>
    %103 = vector.shape_cast %102 : vector<16x16x192xbf16> to vector<256x192xbf16>
    %c2_91 = arith.constant 2 : index
    %c0_92 = arith.constant 0 : index
    %c0_93 = arith.constant 0 : index
    %104 = vector.load %arg7[%c2_91, %c0_92, %c0_93] : memref<3x192x8xbf16, #tpu.memory_space<vmem>>, vector<1x192x8xbf16>
    %105 = vector.shape_cast %104 : vector<1x192x8xbf16> to vector<192x8xbf16>
    %cst_94 = arith.constant dense<0.000000e+00> : vector<256x8xf32>
    %106 = tpu.matmul %103, %105, %cst_94 {dimension_numbers = #tpu.dot_dimension_numbers<[1], [0], [0], [1], [0, 0, 1, 1], [], []>} : vector<256x192xbf16>, vector<192x8xbf16>, vector<256x8xf32> -> vector<256x8xf32>
    %107 = arith.addf %101, %106 : vector<256x8xf32>
    %c0_95 = arith.constant 0 : index
    %c0_96 = arith.constant 0 : index
    %108 = vector.load %arg8[%c0_95, %c0_96] : memref<1x8xf32, #tpu.memory_space<vmem>>, vector<1x8xf32>
    %109 = vector.broadcast %108 : vector<1x8xf32> to vector<256x8xf32>
    %110 = arith.addf %107, %109 : vector<256x8xf32>
    %111 = vector.shape_cast %110 : vector<256x8xf32> to vector<1x16x16x8xf32>
    %c0_97 = arith.constant 0 : index
    %c0_98 = arith.constant 0 : index
    %c0_99 = arith.constant 0 : index
    %c0_100 = arith.constant 0 : index
    %112 = vector.load %arg9[%c0_97, %c0_98, %c0_99, %c0_100] : memref<1x16x16x8xf32, #tpu.memory_space<vmem>>, vector<1x16x16x8xf32>
    tpu.vector_store %arg9[%c0_97, %c0_98, %c0_99, %c0_100], %111 {strides = array<i32>} : memref<1x16x16x8xf32, #tpu.memory_space<vmem>>, vector<1x16x16x8xf32>,
    return
  }
  func.func @transform_0(%arg0: i32) -> (i32, i32, i32, i32) {
    %c0_i32 = arith.constant 0 : i32
    %c0_i32_0 = arith.constant 0 : i32
    %c0_i32_1 = arith.constant 0 : i32
    %c0_i32_2 = arith.constant 0 : i32
    return %arg0, %c0_i32, %c0_i32_0, %c0_i32_1 : i32, i32, i32, i32
  }
  func.func @transform_1(%arg0: i32) -> (i32, i32, i32) {
    %c0_i32 = arith.constant 0 : i32
    %c0_i32_0 = arith.constant 0 : i32
    %c0_i32_1 = arith.constant 0 : i32
    return %arg0, %c0_i32, %c0_i32_0 : i32, i32, i32
  }
  func.func @transform_2(%arg0: i32) -> (i32, i32, i32) {
    %c0_i32 = arith.constant 0 : i32
    %c0_i32_0 = arith.constant 0 : i32
    %c0_i32_1 = arith.constant 0 : i32
    %c0_i32_2 = arith.constant 0 : i32
    return %c0_i32, %c0_i32_0, %c0_i32_1 : i32, i32, i32
  }
  func.func @transform_3(%arg0: i32) -> (i32, i32) {
    %c0_i32 = arith.constant 0 : i32
    %c0_i32_0 = arith.constant 0 : i32
    %c0_i32_1 = arith.constant 0 : i32
    return %c0_i32, %c0_i32_0 : i32, i32
  }
  func.func @transform_4(%arg0: i32) -> (i32, i32, i32) {
    %c0_i32 = arith.constant 0 : i32
    %c0_i32_0 = arith.constant 0 : i32
    %c0_i32_1 = arith.constant 0 : i32
    %c0_i32_2 = arith.constant 0 : i32
    return %c0_i32, %c0_i32_0, %c0_i32_1 : i32, i32, i32
  }
  func.func @transform_5(%arg0: i32) -> (i32, i32) {
    %c0_i32 = arith.constant 0 : i32
    %c0_i32_0 = arith.constant 0 : i32
    %c0_i32_1 = arith.constant 0 : i32
    return %c0_i32, %c0_i32_0 : i32, i32
  }
  func.func @transform_6(%arg0: i32) -> (i32, i32, i32) {
    %c0_i32 = arith.constant 0 : i32
    %c0_i32_0 = arith.constant 0 : i32
    %c0_i32_1 = arith.constant 0 : i32
    %c0_i32_2 = arith.constant 0 : i32
    return %c0_i32, %c0_i32_0, %c0_i32_1 : i32, i32, i32
  }
  func.func @transform_7(%arg0: i32) -> (i32, i32) {
    %c0_i32 = arith.constant 0 : i32
    %c0_i32_0 = arith.constant 0 : i32
    %c0_i32_1 = arith.constant 0 : i32
    return %c0_i32, %c0_i32_0 : i32, i32
  }
  func.func @transform_8(%arg0: i32) -> (i32, i32, i32, i32) {
    %c0_i32 = arith.constant 0 : i32
    %c0_i32_0 = arith.constant 0 : i32
    %c0_i32_1 = arith.constant 0 : i32
    %c0_i32_2 = arith.constant 0 : i32
    return %arg0, %c0_i32, %c0_i32_0, %c0_i32_1 : i32, i32, i32, i32
  }
}

</mosaic_0001>

<bundles_post_ra>
// kernel: _flow_forward_impl.1
= control target key start
LH: loop header
LB: loop body
LE: loop exit
PB: predicated region body
PF: predicated region fallthrough
CT: control target
= control target key end

     0   :  { %s7781_s27 = smov 0   ;;  %s10714_s0 = inlined_call_operand.vmem [shape: bf16[2,16,16,8], index: 0, kind: input, shape index: {}]   ;;  %s10715_s1 = inlined_call_operand.vmem [shape: f32[2,1,16], index: 1, kind: input, shape index: {}]   ;;  %s10716_s2 = inlined_call_operand.vmem [shape: bf16[3,72,64], index: 2, kind: input, shape index: {}]   ;;  %s10717_s3 = inlined_call_operand.vmem [shape: f32[1,64], index: 3, kind: input, shape index: {}]   ;;  %s10718_s4 = inlined_call_operand.vmem [shape: bf16[3,192,64], index: 4, kind: input, shape index: {}]   ;;  %s10719_s5 = inlined_call_operand.vmem [shape: f32[1,64], index: 5, kind: input, shape index: {}]   ;;  %s10720_s6 = inlined_call_operand.vmem [shape: bf16[3,192,8], index: 6, kind: input, shape index: {}]   ;;  %s10721_s7 = inlined_call_operand.vmem [shape: f32[1,8], index: 7, kind: input, shape index: {}]   ;;  %s10722_s8 = inlined_call_operand.vmem [shape: f32[2,16,16,8], index: 8, kind: output, shape index: {}]  }
   0x1 LB: > { %s6625_s28 = sadd.s32 4294967295, %s7729_s27   ;;  %p6629_p0 = scmp.ge.s32.totalorder %s7729_s27, 1  ;;  %s7729_s27 = sphi %s7781_s27, %s18_s27  }
   0x2   : > { %p270_p1 = scmp.lt.s32.totalorder %s7729_s27, 3 }
   0x4   : > { %p271_p2 = pnand %p6629_p0, %p270_p1 }
   0x6   : > { %274 = sbr.rel (%p271_p2) target bundleno = 1721 (0x6b9), region = 52 }
   0xd   : > { %p307_p3 = scmp.lt.s32.totalorder %s6625_s28, 1  ;;  %v1038_v0 = vlaneseq  ;;  %vm329_vm0 = vcmask 188416   ;;  %vm330_vm1 = vsmask.f32 256  ;;  %v335_v2 = vld [vmem:[#allocation2 + $0xc] sm:$0x1] }
   0xe   : > { %vm7790_vm2 = vmand %vm329_vm0, %vm330_vm1  ;;  %vm386_vm3 = vsmask.f32 7938  ;;  %v391_v3 = vld [vmem:[#allocation2 + $0x14] sm:$0x1]  ;;  %v338_v8 = vld [vmem:[#allocation2 + $0x18] sm:$0x1] }
   0xf   : > { %s10785_s28 = smov (!%p307_p3, %s6625_s28), 1  ;;  %v1039_v4 = vshrl.u32 %v1038_v0, 7  ;;  %v336_v5 = vsel %vm7790_vm2, 0, %v335_v2  ;;  %vm7799_vm4 = vmand %vm329_vm0, %vm386_vm3  ;;  %vm593_vm5 = vsmask.f32 4368  ;;  %vm916_vm6 = vcmask 60416  }
  0x10   : > { %337 = vst [vmem:[#allocation2 + $0xc] sm:$0x1] %v336_v5  ;;  %v392_v7 = vsel %vm7799_vm4, 0, %v391_v3  ;;  %s314_s9 = scalar_lea.vmem %s10715_s1, %s10785_s28  ;;  %v339_v9 = vsel %vm7790_vm2, 0, %v338_v8  ;;  %v394_v10 = vld [vmem:[#allocation2 + $0x20] sm:$0x1]  ;;  %vm7831_vm8 = vmor %vm330_vm1, %vm593_vm5 }
  0x11   : > { %393 = vst [vmem:[#allocation2 + $0x14] sm:$0x1] %v392_v7  ;;  %v1033_v11 = vld [vmem:[%s314_s9] sm:$0x1]  ;;  %s7157_s10 = sshll.u32 %s10785_s28, 7  ;;  %v395_v12 = vsel %vm7799_vm4, 0, %v394_v10  ;;  %vm7837_vm9 = vmand %vm916_vm6, %vm386_vm3 }
  0x12   : > { %340 = vst [vmem:[#allocation2 + $0x18] sm:$0x1] %v339_v9  ;;  %v341_v13 = vld [vmem:[#allocation2 + $0x24] sm:$0x1]  ;;  %v1034_v14 = vpack.c.bf16 %v1033_v11, %v1033_v11  ;;  %v1040_v15 = vsub.s32 0, %v1039_v4  ;;  %s7817_s13 = scalar_lea.vmem %s10714_s0, %s7157_s10  ;;  %vm923_vm7 = vcmask 57344  }
  0x13   : > { %396 = vst [vmem:[#allocation2 + $0x20] sm:$0x1] %v395_v12  ;;  %v342_v16 = vsel %vm7790_vm2, 0, %v341_v13  ;;  %v397_v17 = vld [vmem:[#allocation2 + $0x2c] sm:$0x1]  ;;  %vm7843_vm10 = vmand %vm923_vm7, %vm330_vm1  ;;  %s7731_s14 = smov 8  }
  0x14   : > { %v344_v18 = vld [vmem:[#allocation2 + $0x30] sm:$0x1]  ;;  %v561_v19 = vld [vmem:[%s7817_s13] sm:$0xf]  ;;  %v562_v20 = vld [vmem:[%s7817_s13 + $0x4] sm:$0xf]  ;;  %v1036_v23 = vpack.i.b16 %v1034_v14, %v1034_v14 }
  0x15   : > { %343 = vst [vmem:[#allocation2 + $0x24] sm:$0x1] %v342_v16  ;;  %v398_v21 = vsel %vm7799_vm4, 0, %v397_v17  ;;  %v345_v22 = vsel %vm7790_vm2, 0, %v344_v18  ;;  %v596_v24 = vshrl.u32 %v561_v19, 16  ;;  %v599_v25 = vshll.u32 %v561_v19, 16 }
  0x16   : > { %v604_v26 = vshrl.u32 %v562_v20, 16  ;;  %v563_v27 = vld [vmem:[%s7817_s13 + $0x8] sm:$0xf]  ;;  %399 = vst [vmem:[#allocation2 + $0x2c] sm:$0x1] %v398_v21  ;;  %v607_v28 = vshll.u32 %v562_v20, 16  ;;  %v1041_v32 = vrot.slane %v1036_v23, %v1040_v15 }
  0x17   : > { %346 = vst [vmem:[#allocation2 + $0x30] sm:$0x1] %v345_v22  ;;  %v564_v29 = vld [vmem:[%s7817_s13 + $0xc] sm:$0xf]  ;;  %v613_v30 = vshrl.u32 %v563_v27, 16  ;;  %v616_v31 = vshll.u32 %v563_v27, 16 }
  0x18   : > { %v598_v34 = vrot.slane %v596_v24, 7  ;;  %v606_v35 = vrot.slane %v604_v26, 7  ;;  %v918_v36 = vld [vmem:[#allocation2 + $0xc] sm:$0xf]  ;;  %v925_v38 = vld [vmem:[#allocation2 + $0x14] sm:$0x1]  ;;  %v6634_v42 = vcombine.low %v1041_v32, %v1041_v32 }
  0x19   : > { %v615_v39 = vrot.slane %v613_v30, 7  ;;  %v621_v40 = vshrl.u32 %v564_v29, 16  ;;  %v624_v41 = vshll.u32 %v564_v29, 16  ;;  %v928_v47 = vld [vmem:[#allocation2 + $0x18] sm:$0xf]  ;;  %vm442_vm11 = vcmask 519168  }
  0x1a   : > { %v601_v43 = vor.u32 %v599_v25, %v598_v34  ;;  %v602_v44 = vrot.slane %v598_v34, 4  ;;  %v609_v45 = vor.u32 %v607_v28, %v606_v35  ;;  %v565_v48 = vld [vmem:[%s7817_s13 + $0x10] sm:$0xf]  ;;  %v611_v49 = vrot.slane %v606_v35, 4  ;;  %1045 = vrot.lane.b32.xlu0 %v6634_v42, %s7731_s14  ;;  %v932_v55 = vld [vmem:[#allocation2 + $0x20] sm:$0x1] }
  0x1b   : > { %v618_v50 = vor.u32 %v616_v31, %v615_v39  ;;  %v619_v51 = vrot.slane %v615_v39, 4  ;;  %v623_v52 = vrot.slane %v621_v40, 7  ;;  %v566_v56 = vld [vmem:[%s7817_s13 + $0x14] sm:$0xf]  ;;  %v630_v57 = vshrl.u32 %v565_v48, 16  ;;  %s7733_s23 = smov 48  }
  0x1c   : > { %v610_v53 = vsel %vm7831_vm8, %v602_v44, %v609_v45  ;;  %v919_v54 = vsel %vm7837_vm9, %v601_v43, %v918_v36  ;;  %v633_v58 = vshll.u32 %v565_v48, 16  ;;  %v926_v59 = vsel %vm7843_vm10, %v611_v49, %v925_v38  ;;  %v935_v3 = vld [vmem:[#allocation2 + $0x24] sm:$0xf]  ;;  %v400_v7 = vld [vmem:[#allocation2 + $0x38] sm:$0x1]  ;;  %s7734_s24 = smov 24  }
  0x1d   : > { %920 = vst [vmem:[#allocation2 + $0xc] sm:$0xf] %v919_v54  ;;  %922 = vst.msk [vmem:[#allocation2 + $0x10] sm:$0xf] %vm916_vm6, %v610_v53  ;;  %v626_v60 = vor.u32 %v624_v41, %v623_v52  ;;  %v628_v61 = vrot.slane %v623_v52, 4  ;;  %v929_v62 = vsel %vm7837_vm9, %v618_v50, %v928_v47  ;;  %v632_v63 = vrot.slane %v630_v57, 7 }
  0x1e   : > { %927 = vst [vmem:[#allocation2 + $0x14] sm:$0x1] %v926_v59  ;;  %930 = vst [vmem:[#allocation2 + $0x18] sm:$0xf] %v929_v62  ;;  %v638_v0 = vshrl.u32 %v566_v56, 16  ;;  %v641_v2 = vshll.u32 %v566_v56, 16 }
  0x1f   : > { %v627_v4 = vsel %vm7831_vm8, %v619_v51, %v626_v60  ;;  %v933_v5 = vsel %vm7843_vm10, %v628_v61, %v932_v55  ;;  %v567_v8 = vld [vmem:[%s7817_s13 + $0x18] sm:$0xf]  ;;  %v568_v9 = vld [vmem:[%s7817_s13 + $0x1c] sm:$0xf]  ;;  %v635_v10 = vor.u32 %v633_v58, %v632_v63  ;;  %v636_v11 = vrot.slane %v632_v63, 4  ;;  %s7735_s17 = smov 64  }
  0x20   : > { %931 = vst.msk [vmem:[#allocation2 + $0x1c] sm:$0xf] %vm916_vm6, %v627_v4  ;;  %934 = vst [vmem:[#allocation2 + $0x20] sm:$0x1] %v933_v5  ;;  %v640_v12 = vrot.slane %v638_v0, 7  ;;  %v401_v13 = vsel %vm7799_vm4, 0, %v400_v7 }
  0x21   : > { %v939_v14 = vld [vmem:[#allocation2 + $0x2c] sm:$0x1]  ;;  %402 = vst [vmem:[#allocation2 + $0x38] sm:$0x1] %v401_v13  ;;  %v647_v15 = vshrl.u32 %v567_v8, 16  ;;  %v650_v16 = vshll.u32 %v567_v8, 16  ;;  %v936_v21 = vsel %vm7837_vm9, %v635_v10, %v935_v3 }
  0x22   : > { %v655_v17 = vshrl.u32 %v568_v9, 16  ;;  %v658_v18 = vshll.u32 %v568_v9, 16  ;;  %v643_v19 = vor.u32 %v641_v2, %v640_v12  ;;  %v645_v20 = vrot.slane %v640_v12, 4  ;;  %v347_v22 = vld [vmem:[#allocation2 + $0x3c] sm:$0x1]  ;;  %v7552_v37 = vld [vmem:[%s10716_s2 + $0x34] sm:$0xff]  }
  0x23   : > { %v403_v23 = vld [vmem:[#allocation2 + $0x44] sm:$0x1]  ;;  %937 = vst [vmem:[#allocation2 + $0x24] sm:$0xf] %v936_v21  ;;  %v649_v24 = vrot.slane %v647_v15, 7  ;;  %v348_v26 = vsel %vm7790_vm2, 0, %v347_v22 }
  0x24   : > { %v657_v25 = vrot.slane %v655_v17, 7  ;;  %v404_v27 = vsel %vm7799_vm4, 0, %v403_v23  ;;  %v569_v28 = vld [vmem:[%s7817_s13 + $0x20] sm:$0xf]  ;;  %v644_v29 = vsel %vm7831_vm8, %v636_v11, %v643_v19  ;;  %v940_v30 = vsel %vm7843_vm10, %v645_v20, %v939_v14  ;;  %v942_v31 = vld [vmem:[#allocation2 + $0x30] sm:$0xf] }
  0x25   : > { %349 = vst [vmem:[#allocation2 + $0x3c] sm:$0x1] %v348_v26  ;;  %405 = vst [vmem:[#allocation2 + $0x44] sm:$0x1] %v404_v27  ;;  %v570_v32 = vld [vmem:[%s7817_s13 + $0x24] sm:$0xf]  ;;  %v652_v36 = vor.u32 %v650_v16, %v649_v24 }
  0x26   : > { %v664_v34 = vshrl.u32 %v569_v28, 16  ;;  %v667_v35 = vshll.u32 %v569_v28, 16  ;;  %938 = vst.msk [vmem:[#allocation2 + $0x28] sm:$0xf] %vm916_vm6, %v644_v29  ;;  %941 = vst [vmem:[#allocation2 + $0x2c] sm:$0x1] %v940_v30  ;;  %v660_v39 = vor.u32 %v658_v18, %v657_v25 }
  0x27   : > { %v653_v38 = vrot.slane %v649_v24, 4  ;;  %v662_v40 = vrot.slane %v657_v25, 4  ;;  %v672_v42 = vshrl.u32 %v570_v32, 16  ;;  %v675_v43 = vshll.u32 %v570_v32, 16  ;;  %v350_v44 = vld [vmem:[#allocation2 + $0x48] sm:$0x1] }
  0x28   : > { %v666_v41 = vrot.slane %v664_v34, 7  ;;  %v943_v47 = vsel %vm7837_vm9, %v652_v36, %v942_v31  ;;  %v351_v48 = vsel %vm7790_vm2, 0, %v350_v44  ;;  %v406_v49 = vld [vmem:[#allocation2 + $0x50] sm:$0x1]  ;;  %v946_v50 = vld [vmem:[#allocation2 + $0x38] sm:$0x1] }
  0x29   : > { %v661_v45 = vsel %vm7831_vm8, %v653_v38, %v660_v39  ;;  %944 = vst [vmem:[#allocation2 + $0x30] sm:$0xf] %v943_v47  ;;  %v674_v53 = vrot.slane %v672_v42, 7  ;;  %352 = vst [vmem:[#allocation2 + $0x48] sm:$0x1] %v351_v48  ;;  %v407_v54 = vsel %vm7799_vm4, 0, %v406_v49  ;;  %v947_v55 = vsel %vm7843_vm10, %v662_v40, %v946_v50 }
  0x2a   : > { %945 = vst.msk [vmem:[#allocation2 + $0x34] sm:$0xf] %vm916_vm6, %v661_v45  ;;  %v669_v51 = vor.u32 %v667_v35, %v666_v41  ;;  %v670_v52 = vrot.slane %v666_v41, 4  ;;  %408 = vst [vmem:[#allocation2 + $0x50] sm:$0x1] %v407_v54  ;;  %vm321_vm12 = vcmask 191488  }
  0x2b   : > { %v571_v56 = vld [vmem:[%s7817_s13 + $0x28] sm:$0xf]  ;;  %v572_v57 = vld [vmem:[%s7817_s13 + $0x2c] sm:$0xf]  ;;  %948 = vst [vmem:[#allocation2 + $0x38] sm:$0x1] %v947_v55  ;;  %v677_v58 = vor.u32 %v675_v43, %v674_v53 }
  0x2c   : > { %v679_v59 = vrot.slane %v674_v53, 4  ;;  %v681_v60 = vshrl.u32 %v571_v56, 16  ;;  %v684_v61 = vshll.u32 %v571_v56, 16  ;;  %v353_v62 = vld [vmem:[#allocation2 + $0x54] sm:$0x1]  ;;  %v689_v2 = vshrl.u32 %v572_v57, 16 }
  0x2d   : > { %v949_v63 = vld [vmem:[#allocation2 + $0x3c] sm:$0xf]  ;;  %v953_v0 = vld [vmem:[#allocation2 + $0x44] sm:$0x1]  ;;  %v692_v3 = vshll.u32 %v572_v57, 16  ;;  %v678_v4 = vsel %vm7831_vm8, %v670_v52, %v677_v58  ;;  %v354_v11 = vsel %vm7790_vm2, 0, %v353_v62 }
  0x2e   : > { %v950_v5 = vsel %vm7837_vm9, %v669_v51, %v949_v63  ;;  %v954_v7 = vsel %vm7843_vm10, %v679_v59, %v953_v0  ;;  %v683_v8 = vrot.slane %v681_v60, 7  ;;  %v409_v9 = vld [vmem:[#allocation2 + $0x5c] sm:$0x1]  ;;  %952 = vst.msk [vmem:[#allocation2 + $0x40] sm:$0xf] %vm916_vm6, %v678_v4  ;;  %v691_v10 = vrot.slane %v689_v2, 7 }
  0x2f   : > { %951 = vst [vmem:[#allocation2 + $0x3c] sm:$0xf] %v950_v5  ;;  %955 = vst [vmem:[#allocation2 + $0x44] sm:$0x1] %v954_v7  ;;  %v410_v12 = vsel %vm7799_vm4, 0, %v409_v9  ;;  %vm1048_vm13 = vcmask 191552  }
  0x30   : > { %v573_v13 = vld [vmem:[%s7817_s13 + $0x30] sm:$0xf]  ;;  %v686_v14 = vor.u32 %v684_v61, %v683_v8  ;;  %v687_v15 = vrot.slane %v683_v8, 4  ;;  %355 = vst [vmem:[#allocation2 + $0x54] sm:$0x1] %v354_v11  ;;  %v694_v19 = vor.u32 %v692_v3, %v691_v10  ;;  %v696_v20 = vrot.slane %v691_v10, 4  ;;  %vm8071_vm15 = vmand %vm1048_vm13, %vm386_vm3 }
  0x31   : > { %411 = vst [vmem:[#allocation2 + $0x5c] sm:$0x1] %v410_v12  ;;  %v574_v16 = vld [vmem:[%s7817_s13 + $0x34] sm:$0xf]  ;;  %v698_v17 = vshrl.u32 %v573_v13, 16  ;;  %v701_v18 = vshll.u32 %v573_v13, 16 }
  0x32   : > { %v956_v21 = vld [vmem:[#allocation2 + $0x48] sm:$0xf]  ;;  %v706_v22 = vshrl.u32 %v574_v16, 16  ;;  %v960_v24 = vld [vmem:[#allocation2 + $0x50] sm:$0x1]  ;;  %v709_v26 = vshll.u32 %v574_v16, 16  ;;  %v695_v28 = vsel %vm7831_vm8, %v687_v15, %v694_v19 }
  0x33   : > { %v957_v23 = vsel %vm7837_vm9, %v686_v14, %v956_v21  ;;  %v700_v25 = vrot.slane %v698_v17, 7  ;;  %v356_v27 = vld [vmem:[#allocation2 + $0x60] sm:$0x1]  ;;  %v961_v29 = vsel %vm7843_vm10, %v696_v20, %v960_v24  ;;  %v412_v32 = vld [vmem:[#allocation2 + $0x68] sm:$0x1]  ;;  %vm1055_vm14 = vcmask 188480  }
  0x34   : > { %958 = vst [vmem:[#allocation2 + $0x48] sm:$0xf] %v957_v23  ;;  %v708_v30 = vrot.slane %v706_v22, 7  ;;  %v357_v31 = vsel %vm7790_vm2, 0, %v356_v27  ;;  %959 = vst.msk [vmem:[#allocation2 + $0x4c] sm:$0xf] %vm916_vm6, %v695_v28 }
  0x35   : > { %962 = vst [vmem:[#allocation2 + $0x50] sm:$0x1] %v961_v29  ;;  %v703_v34 = vor.u32 %v701_v18, %v700_v25  ;;  %v704_v35 = vrot.slane %v700_v25, 4  ;;  %358 = vst [vmem:[#allocation2 + $0x60] sm:$0x1] %v357_v31  ;;  %v413_v36 = vsel %vm7799_vm4, 0, %v412_v32 }
  0x36   : > { %v575_v38 = vld [vmem:[%s7817_s13 + $0x38] sm:$0xf]  ;;  %v576_v39 = vld [vmem:[%s7817_s13 + $0x3c] sm:$0xf]  ;;  %v711_v40 = vor.u32 %v709_v26, %v708_v30  ;;  %v713_v41 = vrot.slane %v708_v30, 4  ;;  %vm8076_vm0 = vmand %vm1055_vm14, %vm330_vm1  ;;  %vm1616_vm5 = vcmask 1046528  }
  0x37   : > { %414 = vst [vmem:[#allocation2 + $0x68] sm:$0x1] %v413_v36  ;;  %v715_v42 = vshrl.u32 %v575_v38, 16  ;;  %v718_v43 = vshll.u32 %v575_v38, 16  ;;  %v359_v44 = vld [vmem:[#allocation2 + $0x6c] sm:$0x1] }
  0x38   : > { %v723_v45 = vshrl.u32 %v576_v39, 16  ;;  %v726_v47 = vshll.u32 %v576_v39, 16  ;;  %v712_v48 = vsel %vm7831_vm8, %v704_v35, %v711_v40  ;;  %v963_v49 = vld [vmem:[#allocation2 + $0x54] sm:$0xf]  ;;  %v967_v50 = vld [vmem:[#allocation2 + $0x5c] sm:$0x1] }
  0x39   : > { %v717_v51 = vrot.slane %v715_v42, 7  ;;  %v360_v52 = vsel %vm7790_vm2, 0, %v359_v44  ;;  %v964_v53 = vsel %vm7837_vm9, %v703_v34, %v963_v49  ;;  %966 = vst.msk [vmem:[#allocation2 + $0x58] sm:$0xf] %vm916_vm6, %v712_v48  ;;  %v968_v54 = vsel %vm7843_vm10, %v713_v41, %v967_v50  ;;  %v415_v56 = vld [vmem:[#allocation2 + $0x74] sm:$0x1] }
  0x3a   : > { %v725_v55 = vrot.slane %v723_v45, 7  ;;  %361 = vst [vmem:[#allocation2 + $0x6c] sm:$0x1] %v360_v52  ;;  %v577_v57 = vld [vmem:[%s7817_s13 + $0x40] sm:$0xf]  ;;  %v416_v60 = vsel %vm7799_vm4, 0, %v415_v56 }
  0x3b   : > { %965 = vst [vmem:[#allocation2 + $0x54] sm:$0xf] %v964_v53  ;;  %969 = vst [vmem:[#allocation2 + $0x5c] sm:$0x1] %v968_v54  ;;  %v720_v58 = vor.u32 %v718_v43, %v717_v51  ;;  %v721_v59 = vrot.slane %v717_v51, 4  ;;  %v732_v62 = vshrl.u32 %v577_v57, 16 }
  0x3c   : > { %v578_v61 = vld [vmem:[%s7817_s13 + $0x44] sm:$0xf]  ;;  %v728_v63 = vor.u32 %v726_v47, %v725_v55  ;;  %v730_v0 = vrot.slane %v725_v55, 4  ;;  %417 = vst [vmem:[#allocation2 + $0x74] sm:$0x1] %v416_v60  ;;  %v735_v2 = vshll.u32 %v577_v57, 16 }
  0x3d   : > { %v740_v3 = vshrl.u32 %v578_v61, 16  ;;  %v970_v4 = vld [vmem:[#allocation2 + $0x60] sm:$0xf]  ;;  %v734_v5 = vrot.slane %v732_v62, 7  ;;  %v743_v7 = vshll.u32 %v578_v61, 16  ;;  %vm1860_vm7 = vcmask 1043456  }
  0x3e   : > { %v729_v8 = vsel %vm7831_vm8, %v721_v59, %v728_v63  ;;  %v971_v9 = vsel %vm7837_vm9, %v720_v58, %v970_v4  ;;  %v974_v10 = vld [vmem:[#allocation2 + $0x68] sm:$0x1]  ;;  %v362_v12 = vld [vmem:[#allocation2 + $0x78] sm:$0x1]  ;;  %v418_v17 = vld [vmem:[#allocation2 + $0x80] sm:$0x1] }
  0x3f   : > { %v742_v11 = vrot.slane %v740_v3, 7  ;;  %972 = vst [vmem:[#allocation2 + $0x60] sm:$0xf] %v971_v9  ;;  %973 = vst.msk [vmem:[#allocation2 + $0x64] sm:$0xf] %vm916_vm6, %v729_v8  ;;  %v975_v13 = vsel %vm7843_vm10, %v730_v0, %v974_v10  ;;  %v737_v14 = vor.u32 %v735_v2, %v734_v5  ;;  %v738_v15 = vrot.slane %v734_v5, 4 }
  0x40   : > { %v363_v16 = vsel %vm7790_vm2, 0, %v362_v12  ;;  %v579_v18 = vld [vmem:[%s7817_s13 + $0x48] sm:$0xf]  ;;  %976 = vst [vmem:[#allocation2 + $0x68] sm:$0x1] %v975_v13  ;;  %v419_v21 = vsel %vm7799_vm4, 0, %v418_v17 }
  0x41   : > { %v745_v19 = vor.u32 %v743_v7, %v742_v11  ;;  %v747_v20 = vrot.slane %v742_v11, 4  ;;  %364 = vst [vmem:[#allocation2 + $0x78] sm:$0x1] %v363_v16  ;;  %v580_v22 = vld [vmem:[%s7817_s13 + $0x4c] sm:$0xf]  ;;  %v749_v23 = vshrl.u32 %v579_v18, 16 }
  0x42   : > { %v977_v24 = vld [vmem:[#allocation2 + $0x6c] sm:$0xf]  ;;  %420 = vst [vmem:[#allocation2 + $0x80] sm:$0x1] %v419_v21  ;;  %v752_v25 = vshll.u32 %v579_v18, 16  ;;  %v757_v26 = vshrl.u32 %v580_v22, 16 }
  0x43   : > { %v760_v27 = vshll.u32 %v580_v22, 16  ;;  %v746_v28 = vsel %vm7831_vm8, %v738_v15, %v745_v19  ;;  %v978_v29 = vsel %vm7837_vm9, %v737_v14, %v977_v24  ;;  %v751_v30 = vrot.slane %v749_v23, 7  ;;  %v981_v31 = vld [vmem:[#allocation2 + $0x74] sm:$0x1]  ;;  %v365_v34 = vld [vmem:[#allocation2 + $0x84] sm:$0x1] }
  0x44   : > { %979 = vst [vmem:[#allocation2 + $0x6c] sm:$0xf] %v978_v29  ;;  %980 = vst.msk [vmem:[#allocation2 + $0x70] sm:$0xf] %vm916_vm6, %v746_v28  ;;  %v759_v32 = vrot.slane %v757_v26, 7  ;;  %v982_v35 = vsel %vm7843_vm10, %v747_v20, %v981_v31  ;;  %v366_v39 = vsel %vm7790_vm2, 0, %v365_v34 }
  0x45   : > { %v754_v36 = vor.u32 %v752_v25, %v751_v30  ;;  %v755_v38 = vrot.slane %v751_v30, 4  ;;  %v421_v40 = vld [vmem:[#allocation2 + $0x8c] sm:$0x1]  ;;  %v581_v41 = vld [vmem:[%s7817_s13 + $0x50] sm:$0xf] }
  0x46   : > { %983 = vst [vmem:[#allocation2 + $0x74] sm:$0x1] %v982_v35  ;;  %v762_v42 = vor.u32 %v760_v27, %v759_v32  ;;  %v764_v43 = vrot.slane %v759_v32, 4  ;;  %367 = vst [vmem:[#allocation2 + $0x84] sm:$0x1] %v366_v39  ;;  %v422_v44 = vsel %vm7799_vm4, 0, %v421_v40 }
  0x47   : > { %v582_v45 = vld [vmem:[%s7817_s13 + $0x54] sm:$0xf]  ;;  %v766_v47 = vshrl.u32 %v581_v41, 16  ;;  %423 = vst [vmem:[#allocation2 + $0x8c] sm:$0x1] %v422_v44  ;;  %v769_v48 = vshll.u32 %v581_v41, 16 }
  0x48   : > { %v774_v49 = vshrl.u32 %v582_v45, 16  ;;  %v777_v50 = vshll.u32 %v582_v45, 16  ;;  %v763_v51 = vsel %vm7831_vm8, %v755_v38, %v762_v42  ;;  %v984_v52 = vld [vmem:[#allocation2 + $0x78] sm:$0xf]  ;;  %v368_v57 = vld [vmem:[#allocation2 + $0x90] sm:$0x1] }
  0x49   : > { %v768_v53 = vrot.slane %v766_v47, 7  ;;  %v985_v54 = vsel %vm7837_vm9, %v754_v36, %v984_v52  ;;  %987 = vst.msk [vmem:[#allocation2 + $0x7c] sm:$0xf] %vm916_vm6, %v763_v51  ;;  %v988_v55 = vld [vmem:[#allocation2 + $0x80] sm:$0x1]  ;;  %v369_v61 = vsel %vm7790_vm2, 0, %v368_v57 }
  0x4a   : > { %v776_v56 = vrot.slane %v774_v49, 7  ;;  %986 = vst [vmem:[#allocation2 + $0x78] sm:$0xf] %v985_v54  ;;  %v989_v58 = vsel %vm7843_vm10, %v764_v43, %v988_v55  ;;  %v424_v62 = vld [vmem:[#allocation2 + $0x98] sm:$0x1] }
  0x4b   : > { %v771_v59 = vor.u32 %v769_v48, %v768_v53  ;;  %v772_v60 = vrot.slane %v768_v53, 4  ;;  %v583_v63 = vld [vmem:[%s7817_s13 + $0x58] sm:$0xf]  ;;  %990 = vst [vmem:[#allocation2 + $0x80] sm:$0x1] %v989_v58  ;;  %v425_v3 = vsel %vm7799_vm4, 0, %v424_v62 }
  0x4c   : > { %v779_v0 = vor.u32 %v777_v50, %v776_v56  ;;  %v781_v2 = vrot.slane %v776_v56, 4  ;;  %370 = vst [vmem:[#allocation2 + $0x90] sm:$0x1] %v369_v61  ;;  %v584_v4 = vld [vmem:[%s7817_s13 + $0x5c] sm:$0xf]  ;;  %v783_v5 = vshrl.u32 %v583_v63, 16 }
  0x4d   : > { %426 = vst [vmem:[#allocation2 + $0x98] sm:$0x1] %v425_v3  ;;  %v786_v7 = vshll.u32 %v583_v63, 16  ;;  %v791_v8 = vshrl.u32 %v584_v4, 16  ;;  %v794_v9 = vshll.u32 %v584_v4, 16 }
  0x4e   : > { %v371_v10 = vld [vmem:[#allocation2 + $0x9c] sm:$0x1]  ;;  %v780_v11 = vsel %vm7831_vm8, %v772_v60, %v779_v0  ;;  %v991_v12 = vld [vmem:[#allocation2 + $0x84] sm:$0xf]  ;;  %v995_v15 = vld [vmem:[#allocation2 + $0x8c] sm:$0x1] }
  0x4f   : > { %v372_v13 = vsel %vm7790_vm2, 0, %v371_v10  ;;  %v992_v14 = vsel %vm7837_vm9, %v771_v59, %v991_v12  ;;  %994 = vst.msk [vmem:[#allocation2 + $0x88] sm:$0xf] %vm916_vm6, %v780_v11  ;;  %v785_v16 = vrot.slane %v783_v5, 7  ;;  %v793_v17 = vrot.slane %v791_v8, 7 }
  0x50   : > { %373 = vst [vmem:[#allocation2 + $0x9c] sm:$0x1] %v372_v13  ;;  %v427_v18 = vld [vmem:[#allocation2 + $0xa4] sm:$0x1]  ;;  %993 = vst [vmem:[#allocation2 + $0x84] sm:$0xf] %v992_v14  ;;  %v996_v19 = vsel %vm7843_vm10, %v781_v2, %v995_v15 }
  0x51   : > { %v428_v20 = vsel %vm7799_vm4, 0, %v427_v18  ;;  %v585_v21 = vld [vmem:[%s7817_s13 + $0x60] sm:$0xf]  ;;  %v586_v22 = vld [vmem:[%s7817_s13 + $0x64] sm:$0xf]  ;;  %v788_v23 = vor.u32 %v786_v7, %v785_v16  ;;  %v789_v24 = vrot.slane %v785_v16, 4  ;;  %v796_v25 = vor.u32 %v794_v9, %v793_v17 }
  0x52   : > { %997 = vst [vmem:[#allocation2 + $0x8c] sm:$0x1] %v996_v19  ;;  %v798_v26 = vrot.slane %v793_v17, 4  ;;  %429 = vst [vmem:[#allocation2 + $0xa4] sm:$0x1] %v428_v20  ;;  %v800_v29 = vshrl.u32 %v585_v21, 16 }
  0x53   : > { %v374_v27 = vld [vmem:[#allocation2 + $0xa8] sm:$0x1]  ;;  %v430_v28 = vld [vmem:[#allocation2 + $0xb0] sm:$0x1]  ;;  %v803_v30 = vshll.u32 %v585_v21, 16  ;;  %v808_v31 = vshrl.u32 %v586_v22, 16  ;;  %v797_v34 = vsel %vm7831_vm8, %v789_v24, %v796_v25 }
  0x54   : > { %v811_v32 = vshll.u32 %v586_v22, 16  ;;  %v998_v35 = vld [vmem:[#allocation2 + $0x90] sm:$0xf]  ;;  %v375_v36 = vsel %vm7790_vm2, 0, %v374_v27  ;;  %v431_v38 = vsel %vm7799_vm4, 0, %v430_v28  ;;  %v802_v41 = vrot.slane %v800_v29, 7 }
  0x55   : > { %v999_v39 = vsel %vm7837_vm9, %v788_v23, %v998_v35  ;;  %1001 = vst.msk [vmem:[#allocation2 + $0x94] sm:$0xf] %vm916_vm6, %v797_v34  ;;  %v1002_v40 = vld [vmem:[#allocation2 + $0x98] sm:$0x1]  ;;  %v810_v42 = vrot.slane %v808_v31, 7 }
  0x56   : > { %376 = vst [vmem:[#allocation2 + $0xa8] sm:$0x1] %v375_v36  ;;  %432 = vst [vmem:[#allocation2 + $0xb0] sm:$0x1] %v431_v38  ;;  %v587_v43 = vld [vmem:[%s7817_s13 + $0x68] sm:$0xf]  ;;  %v1003_v44 = vsel %vm7843_vm10, %v798_v26, %v1002_v40  ;;  %v805_v50 = vor.u32 %v803_v30, %v802_v41 }
  0x57   : > { %1000 = vst [vmem:[#allocation2 + $0x90] sm:$0xf] %v999_v39  ;;  %v588_v45 = vld [vmem:[%s7817_s13 + $0x6c] sm:$0xf]  ;;  %v817_v47 = vshrl.u32 %v587_v43, 16  ;;  %v820_v48 = vshll.u32 %v587_v43, 16  ;;  %v813_v52 = vor.u32 %v811_v32, %v810_v42 }
  0x58   : > { %v377_v49 = vld [vmem:[#allocation2 + $0xb4] sm:$0x1]  ;;  %1004 = vst [vmem:[#allocation2 + $0x98] sm:$0x1] %v1003_v44  ;;  %v806_v51 = vrot.slane %v802_v41, 4  ;;  %v815_v53 = vrot.slane %v810_v42, 4 }
  0x59   : > { %v1005_v54 = vld [vmem:[#allocation2 + $0x9c] sm:$0xf]  ;;  %v819_v56 = vrot.slane %v817_v47, 7  ;;  %v825_v57 = vshrl.u32 %v588_v45, 16  ;;  %v828_v58 = vshll.u32 %v588_v45, 16  ;;  %v378_v59 = vsel %vm7790_vm2, 0, %v377_v49 }
  0x5a   : > { %v433_v55 = vld [vmem:[#allocation2 + $0xbc] sm:$0x1]  ;;  %v814_v60 = vsel %vm7831_vm8, %v806_v51, %v813_v52  ;;  %v1006_v61 = vsel %vm7837_vm9, %v805_v50, %v1005_v54  ;;  %v1009_v62 = vld [vmem:[#allocation2 + $0xa4] sm:$0x1]  ;;  %379 = vst [vmem:[#allocation2 + $0xb4] sm:$0x1] %v378_v59 }
  0x5b   : > { %v434_v63 = vsel %vm7799_vm4, 0, %v433_v55  ;;  %1007 = vst [vmem:[#allocation2 + $0x9c] sm:$0xf] %v1006_v61  ;;  %1008 = vst.msk [vmem:[#allocation2 + $0xa0] sm:$0xf] %vm916_vm6, %v814_v60  ;;  %v1010_v0 = vsel %vm7843_vm10, %v815_v53, %v1009_v62  ;;  %v822_v2 = vor.u32 %v820_v48, %v819_v56  ;;  %v823_v3 = vrot.slane %v819_v56, 4 }
  0x5c   : > { %v827_v4 = vrot.slane %v825_v57, 7  ;;  %435 = vst [vmem:[#allocation2 + $0xbc] sm:$0x1] %v434_v63  ;;  %v589_v5 = vld [vmem:[%s7817_s13 + $0x70] sm:$0xf]  ;;  %v10723_v50 = vmov 0  }
  0x5d   : > { %v590_v7 = vld [vmem:[%s7817_s13 + $0x74] sm:$0xf]  ;;  %1011 = vst [vmem:[#allocation2 + $0xa4] sm:$0x1] %v1010_v0  ;;  %v834_v8 = vshrl.u32 %v589_v5, 16  ;;  %v837_v9 = vshll.u32 %v589_v5, 16  ;;  %3783 = vmatprep.subr.bf16.mxu1 %v10723_v50 }
  0x5e   : > { %v842_v10 = vshrl.u32 %v590_v7, 16  ;;  %v845_v11 = vshll.u32 %v590_v7, 16  ;;  %v380_v12 = vld [vmem:[#allocation2 + $0xc0] sm:$0x1]  ;;  %v830_v13 = vor.u32 %v828_v58, %v827_v4  ;;  %v832_v14 = vrot.slane %v827_v4, 4  ;;  %v7550_v55 = vld [vmem:[%s10716_s2 + $0x24] sm:$0xff]  }
  0x5f   : > { %v1012_v15 = vld [vmem:[#allocation2 + $0xa8] sm:$0xf]  ;;  %v1016_v16 = vld [vmem:[#allocation2 + $0xb0] sm:$0x1]  ;;  %v381_v17 = vsel %vm7790_vm2, 0, %v380_v12  ;;  %v836_v19 = vrot.slane %v834_v8, 7  ;;  %7286 = vmatprep.subr.bf16.mxu0 %v7550_v55 }
  0x60   : > { %v1013_v18 = vsel %vm7837_vm9, %v822_v2, %v1012_v15  ;;  %v844_v20 = vrot.slane %v842_v10, 7  ;;  %382 = vst [vmem:[#allocation2 + $0xc0] sm:$0x1] %v381_v17  ;;  %v436_v21 = vld [vmem:[#allocation2 + $0xc8] sm:$0x1]  ;;  %v831_v22 = vsel %vm7831_vm8, %v823_v3, %v830_v13  ;;  %v1017_v23 = vsel %vm7843_vm10, %v832_v14, %v1016_v16  ;;  %v7551_v56 = vld [vmem:[%s10716_s2 + $0x2c] sm:$0xff]   ;;  %7287 = vmatpush3.bf16.msra.mxu0 %v7550_v55 }
  0x61   : > { %1014 = vst [vmem:[#allocation2 + $0xa8] sm:$0xf] %v1013_v18  ;;  %v437_v24 = vsel %vm7799_vm4, 0, %v436_v21  ;;  %v591_v25 = vld [vmem:[%s7817_s13 + $0x78] sm:$0xf]  ;;  %v839_v26 = vor.u32 %v837_v9, %v836_v19  ;;  %v840_v27 = vrot.slane %v836_v19, 4  ;;  %7288 = vmatprep.subr.bf16.mxu0 %v7551_v56 }
  0x62   : > { %1015 = vst.msk [vmem:[#allocation2 + $0xac] sm:$0xf] %vm916_vm6, %v831_v22  ;;  %1018 = vst [vmem:[#allocation2 + $0xb0] sm:$0x1] %v1017_v23  ;;  %v847_v28 = vor.u32 %v845_v11, %v844_v20  ;;  %v849_v29 = vrot.slane %v844_v20, 4  ;;  %v851_v32 = vshrl.u32 %v591_v25, 16 }
  0x63   : > { %438 = vst [vmem:[#allocation2 + $0xc8] sm:$0x1] %v437_v24  ;;  %v592_v30 = vld [vmem:[%s7817_s13 + $0x7c] sm:$0xf]  ;;  %v1019_v31 = vld [vmem:[#allocation2 + $0xb4] sm:$0xf] }
  0x64   : > { %v854_v34 = vshll.u32 %v591_v25, 16  ;;  %v859_v35 = vshrl.u32 %v592_v30, 16  ;;  %v862_v36 = vshll.u32 %v592_v30, 16  ;;  %v848_v38 = vsel %vm7831_vm8, %v840_v27, %v847_v28  ;;  %v1023_v40 = vld [vmem:[#allocation2 + $0xbc] sm:$0x1]  ;;  %7289 = vmatpush3.bf16.msra.mxu0 %v7551_v56 }
  0x65   : > { %v1020_v39 = vsel %vm7837_vm9, %v839_v26, %v1019_v31  ;;  %1022 = vst.msk [vmem:[#allocation2 + $0xb8] sm:$0xf] %vm916_vm6, %v848_v38  ;;  %v1024_v41 = vsel %vm7843_vm10, %v849_v29, %v1023_v40  ;;  %v853_v42 = vrot.slane %v851_v32, 7  ;;  %7290 = vmatprep.subr.bf16.mxu0 %v7552_v37  ;;  %v1050_v62 = vld [vmem:[#allocation2 + $0xc] sm:$0xf]  ;;  %v7553_v29 = vld [vmem:[%s10716_s2 + $0x3c] sm:$0xff]  }
  0x66   : > { %1021 = vst [vmem:[#allocation2 + $0xb4] sm:$0xf] %v1020_v39  ;;  %v861_v43 = vrot.slane %v859_v35, 7  ;;  %1025 = vst [vmem:[#allocation2 + $0xbc] sm:$0x1] %v1024_v41 }
  0x67   : > { %v856_v44 = vor.u32 %v854_v34, %v853_v42  ;;  %v857_v45 = vrot.slane %v853_v42, 4  ;;  %v1026_v49 = vld [vmem:[#allocation2 + $0xc0] sm:$0xf]  ;;  %322 = vst.msk [vmem:[#allocation2] sm:$0xf] %vm321_vm12, %v10723_v50 }
  0x68   : > { %v864_v47 = vor.u32 %v862_v36, %v861_v43  ;;  %v866_v48 = vrot.slane %v861_v43, 4  ;;  %323 = vst.msk [vmem:[#allocation2 + $0x4] sm:$0xf] %vm321_vm12, %v10723_v50  ;;  %324 = vst.msk [vmem:[#allocation2 + $0x8] sm:$0xf] %vm321_vm12, %v10723_v50  ;;  %7291 = vmatpush3.bf16.msra.mxu0 %v7552_v37 }
  0x69   : > { %326 = vst.msk [vmem:[#allocation2 + $0xcc] sm:$0xf] %vm321_vm12, %v10723_v50  ;;  %327 = vst.msk [vmem:[#allocation2 + $0xd0] sm:$0xf] %vm321_vm12, %v10723_v50  ;;  %v1027_v52 = vsel %vm7837_vm9, %v856_v44, %v1026_v49  ;;  %v1057_v63 = vld [vmem:[#allocation2 + $0x14] sm:$0x1]  ;;  %7292 = vmatprep.subr.bf16.mxu0 %v7553_v29 }
  0x6a   : > { %328 = vst.msk [vmem:[#allocation2 + $0xd4] sm:$0xf] %vm321_vm12, %v10723_v50  ;;  %v865_v51 = vsel %vm7831_vm8, %v857_v45, %v864_v47  ;;  %v1030_v53 = vld [vmem:[#allocation2 + $0xc8] sm:$0x1]  ;;  %1028 = vst [vmem:[#allocation2 + $0xc0] sm:$0xf] %v1027_v52 }
  0x6b   : > { %443 = vst.msk [vmem:[#allocation3] sm:$0xf] %vm442_vm11, %v10723_v50  ;;  %444 = vst.msk [vmem:[#allocation3 + $0x4] sm:$0xf] %vm442_vm11, %v10723_v50  ;;  %v1031_v54 = vsel %vm7843_vm10, %v866_v48, %v1030_v53  ;;  %v1060_v0 = vld [vmem:[#allocation2 + $0x18] sm:$0xf] }
  0x6c   : > { %445 = vst.msk [vmem:[#allocation3 + $0x8] sm:$0xf] %vm442_vm11, %v10723_v50  ;;  %447 = vst.msk [vmem:[#allocation3 + $0xcc] sm:$0xf] %vm442_vm11, %v10723_v50  ;;  %v1064_v2 = vld [vmem:[#allocation2 + $0x20] sm:$0x1]  ;;  %7293 = vmatpush3.bf16.msra.mxu0 %v7553_v29 }
  0x6d   : > { %448 = vst.msk [vmem:[#allocation3 + $0xd0] sm:$0xf] %vm442_vm11, %v10723_v50  ;;  %449 = vst.msk [vmem:[#allocation3 + $0xd4] sm:$0xf] %vm442_vm11, %v10723_v50  ;;  %v1067_v3 = vld [vmem:[#allocation2 + $0x24] sm:$0xf] }
  0x6e   : > { %1029 = vst.msk [vmem:[#allocation2 + $0xc4] sm:$0xf] %vm916_vm6, %v865_v51  ;;  %1032 = vst [vmem:[#allocation2 + $0xc8] sm:$0x1] %v1031_v54  ;;  %v332_v57 = vld [vmem:[#allocation2] sm:$0x1] }
  0x6f   : > { %v388_v58 = vld [vmem:[#allocation2 + $0x8] sm:$0x1]  ;;  %v333_v46 = vsel %vm7790_vm2, 0, %v332_v57  ;;  %v1071_v4 = vld [vmem:[#allocation2 + $0x2c] sm:$0x1]  ;;  %vm1827_vm9 = vcmask 588800  }
  0x70   : > { %v389_v59 = vsel %vm7799_vm4, 0, %v388_v58  ;;  %334 = vst [vmem:[#allocation2] sm:$0x1] %v333_v46  ;;  %v1074_v5 = vld [vmem:[#allocation2 + $0x30] sm:$0xf]  ;;  %vm450_vm10 = vcmask 516096  }
  0x71   : > { %390 = vst [vmem:[#allocation2 + $0x8] sm:$0x1] %v389_v59  ;;  %v1078_v7 = vld [vmem:[#allocation2 + $0x38] sm:$0x1]  ;;  %v8080_v8 = vld [vmem:[#allocation2 + $0x3c] sm:$0xf]  ;;  %vm8566_vm12 = vmand %vm450_vm10, %vm330_vm1 }
  0x72   : > { %v8082_v9 = vld [vmem:[#allocation2 + $0x44] sm:$0x1]  ;;  %v8084_v10 = vld [vmem:[#allocation2 + $0x48] sm:$0xf]  ;;  %v8086_v11 = vld [vmem:[#allocation2 + $0x50] sm:$0x1] }
  0x73   : > { %v8088_v12 = vld [vmem:[#allocation2 + $0x54] sm:$0xf]  ;;  %v8090_v13 = vld [vmem:[#allocation2 + $0x5c] sm:$0x1]  ;;  %v8092_v14 = vld [vmem:[#allocation2 + $0x60] sm:$0xf] }
  0x74   : > { %v8094_v15 = vld [vmem:[#allocation2 + $0x68] sm:$0x1]  ;;  %v8098_v17 = vld [vmem:[#allocation2 + $0x6c] sm:$0xf]  ;;  %v8100_v18 = vld [vmem:[#allocation2 + $0x74] sm:$0x1] }
  0x75   : > { %v8102_v19 = vld [vmem:[#allocation2 + $0x78] sm:$0xf]  ;;  %v8104_v20 = vld [vmem:[#allocation2 + $0x80] sm:$0x1]  ;;  %v1123_v25 = vld [vmem:[#allocation2 + $0x84] sm:$0xf] }
  0x76   : > { %v1127_v26 = vld [vmem:[#allocation2 + $0x8c] sm:$0x1]  ;;  %v1130_v27 = vld [vmem:[#allocation2 + $0x90] sm:$0xf]  ;;  %v1134_v28 = vld [vmem:[#allocation2 + $0x98] sm:$0x1] }
  0x77   : > { %v1137_v35 = vld [vmem:[#allocation2 + $0x9c] sm:$0xf]  ;;  %v1141_v36 = vld [vmem:[#allocation2 + $0xa4] sm:$0x1]  ;;  %v1144_v38 = vld [vmem:[#allocation2 + $0xa8] sm:$0xf] }
  0x78   : > { %v1148_v39 = vld [vmem:[#allocation2 + $0xb0] sm:$0x1]  ;;  %v1151_v44 = vld [vmem:[#allocation2 + $0xb4] sm:$0xf]  ;;  %v1155_v45 = vld [vmem:[#allocation2 + $0xbc] sm:$0x1] }
  0x79   : > { %v1158_v47 = vld [vmem:[#allocation2 + $0xc0] sm:$0xf]  ;;  %v1162_v48 = vld [vmem:[#allocation2 + $0xc8] sm:$0x1]  ;;  %vm1363_vm6 = vsmask.f32 7424  ;;  %vm8662_vm1 = vmand %vm450_vm10, %vm386_vm3 }
  0x8c   : > { %v8096_v16 = vpop.permute.xlu0 %1045 }
  0x8d   : > { %v1051_v21 = vsel %vm8071_vm15, %v8096_v16, %v1050_v62  ;;  %1054 = vst.msk [vmem:[#allocation2 + $0x10] sm:$0xf] %vm1048_vm13, %v8096_v16  ;;  %v1058_v22 = vsel %vm8076_vm0, %v8096_v16, %v1057_v63  ;;  %v1061_v23 = vsel %vm8071_vm15, %v8096_v16, %v1060_v0  ;;  %1063 = vst.msk [vmem:[#allocation2 + $0x1c] sm:$0xf] %vm1048_vm13, %v8096_v16 }
  0x8e   : > { %v1065_v24 = vsel %vm8076_vm0, %v8096_v16, %v1064_v2  ;;  %1070 = vst.msk [vmem:[#allocation2 + $0x28] sm:$0xf] %vm1048_vm13, %v8096_v16  ;;  %1077 = vst.msk [vmem:[#allocation2 + $0x34] sm:$0xf] %vm1048_vm13, %v8096_v16  ;;  %v1068_v30 = vsel %vm8071_vm15, %v8096_v16, %v1067_v3  ;;  %v1072_v31 = vsel %vm8076_vm0, %v8096_v16, %v1071_v4 }
  0x8f   : > { %1084 = vst.msk [vmem:[#allocation2 + $0x40] sm:$0xf] %vm1048_vm13, %v8096_v16  ;;  %1091 = vst.msk [vmem:[#allocation2 + $0x4c] sm:$0xf] %vm1048_vm13, %v8096_v16  ;;  %v1075_v32 = vsel %vm8071_vm15, %v8096_v16, %v1074_v5  ;;  %v1079_v34 = vsel %vm8076_vm0, %v8096_v16, %v1078_v7  ;;  %v1082_v40 = vsel %vm8071_vm15, %v8096_v16, %v8080_v8 }
  0x90   : > { %1098 = vst.msk [vmem:[#allocation2 + $0x58] sm:$0xf] %vm1048_vm13, %v8096_v16  ;;  %1105 = vst.msk [vmem:[#allocation2 + $0x64] sm:$0xf] %vm1048_vm13, %v8096_v16  ;;  %v1086_v41 = vsel %vm8076_vm0, %v8096_v16, %v8082_v9  ;;  %v1089_v42 = vsel %vm8071_vm15, %v8096_v16, %v8084_v10  ;;  %v1093_v43 = vsel %vm8076_vm0, %v8096_v16, %v8086_v11 }
  0x91   : > { %1112 = vst.msk [vmem:[#allocation2 + $0x70] sm:$0xf] %vm1048_vm13, %v8096_v16  ;;  %1119 = vst.msk [vmem:[#allocation2 + $0x7c] sm:$0xf] %vm1048_vm13, %v8096_v16  ;;  %v1096_v49 = vsel %vm8071_vm15, %v8096_v16, %v8088_v12  ;;  %v1100_v51 = vsel %vm8076_vm0, %v8096_v16, %v8090_v13  ;;  %v1103_v52 = vsel %vm8071_vm15, %v8096_v16, %v8092_v14 }
  0x92   : > { %1126 = vst.msk [vmem:[#allocation2 + $0x88] sm:$0xf] %vm1048_vm13, %v8096_v16  ;;  %1133 = vst.msk [vmem:[#allocation2 + $0x94] sm:$0xf] %vm1048_vm13, %v8096_v16  ;;  %v1107_v53 = vsel %vm8076_vm0, %v8096_v16, %v8094_v15  ;;  %v1110_v54 = vsel %vm8071_vm15, %v8096_v16, %v8098_v17  ;;  %v1114_v55 = vsel %vm8076_vm0, %v8096_v16, %v8100_v18 }
  0x93   : > { %1140 = vst.msk [vmem:[#allocation2 + $0xa0] sm:$0xf] %vm1048_vm13, %v8096_v16  ;;  %1147 = vst.msk [vmem:[#allocation2 + $0xac] sm:$0xf] %vm1048_vm13, %v8096_v16  ;;  %v1117_v56 = vsel %vm8071_vm15, %v8096_v16, %v8102_v19  ;;  %v1121_v37 = vsel %vm8076_vm0, %v8096_v16, %v8104_v20  ;;  %v1124_v57 = vsel %vm8071_vm15, %v8096_v16, %v1123_v25 }
  0x94   : > { %1154 = vst.msk [vmem:[#allocation2 + $0xb8] sm:$0xf] %vm1048_vm13, %v8096_v16  ;;  %1161 = vst.msk [vmem:[#allocation2 + $0xc4] sm:$0xf] %vm1048_vm13, %v8096_v16  ;;  %v1128_v58 = vsel %vm8076_vm0, %v8096_v16, %v1127_v26  ;;  %v1131_v46 = vsel %vm8071_vm15, %v8096_v16, %v1130_v27  ;;  %v1135_v59 = vsel %vm8076_vm0, %v8096_v16, %v1134_v28 }
  0x95   : > { %1052 = vst [vmem:[#allocation2 + $0xc] sm:$0xf] %v1051_v21  ;;  %1059 = vst [vmem:[#allocation2 + $0x14] sm:$0x1] %v1058_v22  ;;  %v1138_v62 = vsel %vm8071_vm15, %v8096_v16, %v1137_v35  ;;  %v1142_v63 = vsel %vm8076_vm0, %v8096_v16, %v1141_v36  ;;  %v1145_v0 = vsel %vm8071_vm15, %v8096_v16, %v1144_v38 }
  0x96   : > { %1062 = vst [vmem:[#allocation2 + $0x18] sm:$0xf] %v1061_v23  ;;  %1066 = vst [vmem:[#allocation2 + $0x20] sm:$0x1] %v1065_v24  ;;  %v1149_v2 = vsel %vm8076_vm0, %v8096_v16, %v1148_v39  ;;  %v1152_v3 = vsel %vm8071_vm15, %v8096_v16, %v1151_v44  ;;  %v1156_v4 = vsel %vm8076_vm0, %v8096_v16, %v1155_v45 }
  0x97   : > { %1069 = vst [vmem:[#allocation2 + $0x24] sm:$0xf] %v1068_v30  ;;  %1073 = vst [vmem:[#allocation2 + $0x2c] sm:$0x1] %v1072_v31  ;;  %v1159_v5 = vsel %vm8071_vm15, %v8096_v16, %v1158_v47  ;;  %v1163_v7 = vsel %vm8076_vm0, %v8096_v16, %v1162_v48 }
  0x98   : > { %1076 = vst [vmem:[#allocation2 + $0x30] sm:$0xf] %v1075_v32  ;;  %1080 = vst [vmem:[#allocation2 + $0x38] sm:$0x1] %v1079_v34 }
  0x99   : > { %1083 = vst [vmem:[#allocation2 + $0x3c] sm:$0xf] %v1082_v40  ;;  %1087 = vst [vmem:[#allocation2 + $0x44] sm:$0x1] %v1086_v41 }
  0x9a   : > { %1090 = vst [vmem:[#allocation2 + $0x48] sm:$0xf] %v1089_v42  ;;  %1094 = vst [vmem:[#allocation2 + $0x50] sm:$0x1] %v1093_v43 }
  0x9b   : > { %1097 = vst [vmem:[#allocation2 + $0x54] sm:$0xf] %v1096_v49  ;;  %1101 = vst [vmem:[#allocation2 + $0x5c] sm:$0x1] %v1100_v51 }
  0x9c   : > { %1104 = vst [vmem:[#allocation2 + $0x60] sm:$0xf] %v1103_v52  ;;  %1108 = vst [vmem:[#allocation2 + $0x68] sm:$0x1] %v1107_v53  ;;  %v8249_v8 = vld [vmem:[#allocation2 + $0xc] sm:$0xff]  }
  0x9d   : > { %1111 = vst [vmem:[#allocation2 + $0x6c] sm:$0xf] %v1110_v54  ;;  %1115 = vst [vmem:[#allocation2 + $0x74] sm:$0x1] %v1114_v55  ;;  %v7517_v9 = vld [vmem:[#allocation2 + $0x14] ss:$0 sps:$4 sm:$0xff]  }
  0x9e   : > { %1118 = vst [vmem:[#allocation2 + $0x78] sm:$0xf] %v1117_v56  ;;  %1122 = vst [vmem:[#allocation2 + $0x80] sm:$0x1] %v1121_v37  ;;  %v1620_v10 = vrot.slane %v8249_v8, 1  ;;  %v8252_v11 = vld [vmem:[#allocation2 + $0x18] sm:$0xff]  }
  0x9f   : > { %1125 = vst [vmem:[#allocation2 + $0x84] sm:$0xf] %v1124_v57  ;;  %1129 = vst [vmem:[#allocation2 + $0x8c] sm:$0x1] %v1128_v58  ;;  %v7519_v12 = vld [vmem:[#allocation2 + $0x20] ss:$0 sps:$4 sm:$0xff]  }
  0xa0   : > { %1132 = vst [vmem:[#allocation2 + $0x90] sm:$0xf] %v1131_v46  ;;  %1136 = vst [vmem:[#allocation2 + $0x98] sm:$0x1] %v1135_v59  ;;  %v1379_v60 = vshll.u32 %v8249_v8, 16  ;;  %v1621_v13 = vrot.slane %v7517_v9, 1 }
  0xa1   : > { %1139 = vst [vmem:[#allocation2 + $0x9c] sm:$0xf] %v1138_v62  ;;  %1143 = vst [vmem:[#allocation2 + $0xa4] sm:$0x1] %v1142_v63  ;;  %v1384_v14 = vshll.u32 %v7517_v9, 16  ;;  %v1391_v61 = vshll.u32 %v8252_v11, 16 }
  0xa2   : > { %1146 = vst [vmem:[#allocation2 + $0xa8] sm:$0xf] %v1145_v0  ;;  %1150 = vst [vmem:[#allocation2 + $0xb0] sm:$0x1] %v1149_v2  ;;  %v1396_v15 = vshll.u32 %v7519_v12, 16  ;;  %v1377_v16 = vshrl.u32 %v8249_v8, 16  ;;  %v1622_v19 = vsel %vm1616_vm5, %v1620_v10, %v1621_v13 }
  0xa3   : > { %1153 = vst [vmem:[#allocation2 + $0xb4] sm:$0xf] %v1152_v3  ;;  %1157 = vst [vmem:[#allocation2 + $0xbc] sm:$0x1] %v1156_v4  ;;  %v1381_v17 = vrot.slane %v1379_v60, 1  ;;  %v8257_v18 = vld [vmem:[#allocation2 + $0x24] sm:$0xff]   ;;  %1673 = vrot.lane.b32.xlu1 %v1622_v19, %s7733_s23 }
  0xa4   : > { %1160 = vst [vmem:[#allocation2 + $0xc0] sm:$0xf] %v1159_v5  ;;  %1164 = vst [vmem:[#allocation2 + $0xc8] sm:$0x1] %v1163_v7  ;;  %v7521_v20 = vld [vmem:[#allocation2 + $0x2c] ss:$0 sps:$4 sm:$0xff]  }
  0xa5   : > { %v8260_v21 = vld [vmem:[#allocation2 + $0x30] sm:$0xff]   ;;  %v1389_v22 = vshrl.u32 %v8252_v11, 16  ;;  %v1393_v23 = vrot.slane %v1391_v61, 1  ;;  %v1382_v24 = vor.u32 %v1381_v17, %v1377_v16  ;;  %v1386_v25 = vrot.slane %v1384_v14, 1  ;;  %v8264_v26 = vld [vmem:[#allocation2 + $0x3c] sm:$0xff]   ;;  %v8272_v40 = vld [vmem:[#allocation2 + $0x48] sm:$0xff]  }
  0xa6   : > { %v1403_v27 = vshll.u32 %v8257_v18, 16  ;;  %v1623_v28 = vrot.slane %v8252_v11, 1  ;;  %v1624_v29 = vrot.slane %v7519_v12, 1  ;;  %v1398_v31 = vrot.slane %v1396_v15, 1  ;;  %v7523_v35 = vld [vmem:[#allocation2 + $0x38] ss:$0 sps:$4 sm:$0xff]   ;;  %vm8776_vm13 = vmand %vm442_vm11, %vm386_vm3 }
  0xa7   : > { %v1394_v30 = vor.u32 %v1393_v23, %v1389_v22  ;;  %v1387_v32 = vsel %vm1363_vm6, %v1382_v24, %v1386_v25  ;;  %v1408_v34 = vshll.u32 %v7521_v20, 16  ;;  %v1401_v36 = vshrl.u32 %v8257_v18, 16  ;;  %v7525_v52 = vld [vmem:[#allocation2 + $0x44] ss:$0 sps:$4 sm:$0xff]   ;;  %v8280_v53 = vld [vmem:[#allocation2 + $0x54] sm:$0xff]   ;;  %v8300_v19 = vld [vmem:[#allocation2 + $0x6c] sm:$0xff]  }
  0xa8   : > { %1582 = vrot.lane.b32.xlu0 %v1387_v32, %s7734_s24  ;;  %v1405_v38 = vrot.slane %v1403_v27, 1  ;;  %v1415_v39 = vshll.u32 %v8260_v21, 16  ;;  %v1420_v42 = vshll.u32 %v7523_v35, 16  ;;  %v1427_v43 = vshll.u32 %v8264_v26, 16  ;;  %v7527_v58 = vld [vmem:[#allocation2 + $0x50] ss:$0 sps:$4 sm:$0xff]  }
  0xa9   : > { %v1399_v41 = vsel %vm1363_vm6, %v1394_v30, %v1398_v31  ;;  %v1626_v45 = vrot.slane %v8257_v18, 1  ;;  %v1413_v47 = vshrl.u32 %v8260_v21, 16  ;;  %v1410_v49 = vrot.slane %v1408_v34, 1  ;;  %v8289_v4 = vld [vmem:[#allocation2 + $0x60] sm:$0xff]   ;;  %v7529_v60 = vld [vmem:[#allocation2 + $0x5c] ss:$0 sps:$4 sm:$0xff]  }
  0xaa   : > { %1584 = vrot.lane.b32.xlu1 %v1399_v41, %s7734_s24  ;;  %v1406_v44 = vor.u32 %v1405_v38, %v1401_v36  ;;  %v1417_v48 = vrot.slane %v1415_v39, 1  ;;  %v1625_v51 = vsel %vm1616_vm5, %v1623_v28, %v1624_v29  ;;  %v1627_v54 = vrot.slane %v7521_v20, 1  ;;  %v7531_v24 = vld [vmem:[#allocation2 + $0x68] ss:$0 sps:$4 sm:$0xff]   ;;  %v8307_v32 = vld [vmem:[#allocation2 + $0x78] sm:$0xff]  }
  0xab   : > { %v1422_v56 = vrot.slane %v1420_v42, 1  ;;  %v1429_v57 = vrot.slane %v1427_v43, 1  ;;  %v1439_v46 = vshll.u32 %v8272_v40, 16  ;;  %v1425_v59 = vshrl.u32 %v8264_v26, 16  ;;  %v7533_v41 = vld [vmem:[#allocation2 + $0x74] ss:$0 sps:$4 sm:$0xff]  }
  0xac   : > { %1675 = vrot.lane.b32.xlu0 %v1625_v51, %s7733_s23  ;;  %v1418_v55 = vor.u32 %v1417_v48, %v1413_v47  ;;  %v1411_v37 = vsel %vm1363_vm6, %v1406_v44, %v1410_v49  ;;  %v1629_v62 = vrot.slane %v8260_v21, 1  ;;  %v1432_v0 = vshll.u32 %v7525_v52, 16  ;;  %v8318_v49 = vld [vmem:[#allocation2 + $0x84] sm:$0xff]   ;;  %v8320_v51 = vld [vmem:[#allocation2 + $0x90] sm:$0xff]  }
  0xad   : > { %v1630_v2 = vrot.slane %v7523_v35, 1  ;;  %v1441_v3 = vrot.slane %v1439_v46, 1  ;;  %v1628_v5 = vsel %vm1616_vm5, %v1626_v45, %v1627_v54  ;;  %v1430_v7 = vor.u32 %v1429_v57, %v1425_v59 }
  0xae   : > { %1586 = vrot.lane.b32.xlu1 %v1411_v37, %s7734_s24  ;;  %v1423_v63 = vsel %vm1363_vm6, %v1418_v55, %v1422_v56  ;;  %v1437_v9 = vshrl.u32 %v8272_v40, 16  ;;  %v1444_v10 = vshll.u32 %v7527_v58, 16  ;;  %v1451_v12 = vshll.u32 %v8280_v53, 16  ;;  %v7535_v56 = vld [vmem:[#allocation2 + $0x80] ss:$0 sps:$4 sm:$0xff]  }
  0xaf   : > { %v1434_v13 = vrot.slane %v1432_v0, 1  ;;  %v1631_v14 = vsel %vm1616_vm5, %v1629_v62, %v1630_v2  ;;  %v1463_v15 = vshll.u32 %v8289_v4, 16  ;;  %v1632_v16 = vrot.slane %v8264_v26, 1  ;;  %v8329_v0 = vld [vmem:[#allocation2 + $0x8c] ss:$0 sps:$4 sm:$0xff]  }
  0xb0   : > { %1588 = vrot.lane.b32.xlu0 %v1423_v63, %s7734_s24  ;;  %v1442_v61 = vor.u32 %v1441_v3, %v1437_v9  ;;  %v1633_v17 = vrot.slane %v7525_v52, 1  ;;  %v1446_v22 = vrot.slane %v1444_v10, 1  ;;  %v1453_v23 = vrot.slane %v1451_v12, 1  ;;  %v8332_v3 = vld [vmem:[#allocation2 + $0x9c] sm:$0xff]   ;;  %v8335_v10 = vld [vmem:[#allocation2 + $0x98] ss:$0 sps:$4 sm:$0xff]  }
  0xb1   : > { %v1435_v20 = vsel %vm1363_vm6, %v1430_v7, %v1434_v13  ;;  %v1449_v25 = vshrl.u32 %v8280_v53, 16  ;;  %v1635_v27 = vrot.slane %v8272_v40, 1  ;;  %v1456_v29 = vshll.u32 %v7529_v60, 16 }
  0xb2   : > { %1677 = vrot.lane.b32.xlu1 %v1628_v5, %s7733_s23  ;;  %v1447_v28 = vsel %vm1363_vm6, %v1442_v61, %v1446_v22  ;;  %v1636_v30 = vrot.slane %v7527_v58, 1  ;;  %v1465_v31 = vrot.slane %v1463_v15, 1  ;;  %v1461_v34 = vshrl.u32 %v8289_v4, 16  ;;  %v8340_v61 = vld [vmem:[#allocation2 + $0xa8] sm:$0xff]   ;;  %v8344_v22 = vld [vmem:[#allocation2 + $0xa4] ss:$0 sps:$4 sm:$0xff]  }
  0xb3   : > { %v1634_v35 = vsel %vm1616_vm5, %v1632_v16, %v1633_v17  ;;  %v1454_v36 = vor.u32 %v1453_v23, %v1449_v25  ;;  %v1468_v38 = vshll.u32 %v7531_v24, 16  ;;  %v1475_v39 = vshll.u32 %v8300_v19, 16 }
  0xb4   : > { %1679 = vrot.lane.b32.xlu0 %v1631_v14, %s7733_s23  ;;  %v1458_v42 = vrot.slane %v1456_v29, 1  ;;  %v1637_v43 = vsel %vm1616_vm5, %v1635_v27, %v1636_v30  ;;  %v1466_v44 = vor.u32 %v1465_v31, %v1461_v34  ;;  %v1487_v45 = vshll.u32 %v8307_v32, 16  ;;  %v7554_v30 = vld [vmem:[%s10716_s2 + $0x44] ss:$0 sps:$4 sm:$0xff]  }
  0xb5   : > { %v1638_v47 = vrot.slane %v8280_v53, 1  ;;  %v1639_v48 = vrot.slane %v7529_v60, 1  ;;  %v1470_v54 = vrot.slane %v1468_v38, 1  ;;  %v1477_v55 = vrot.slane %v1475_v39, 1  ;;  %7500 = vmatprep.subr.msk.bf16.mxu0 %vm1860_vm7, %v7554_v30 }
  0xb6   : > { %1590 = vrot.lane.b32.xlu1 %v1435_v20, %s7734_s24  ;;  %v1459_v52 = vsel %vm1363_vm6, %v1454_v36, %v1458_v42  ;;  %v1473_v37 = vshrl.u32 %v8300_v19, 16  ;;  %v1480_v57 = vshll.u32 %v7533_v41, 16  ;;  %v1641_v46 = vrot.slane %v8289_v4, 1  ;;  %v8361_v42 = vld [vmem:[#allocation2 + $0xb0] ss:$0 sps:$4 sm:$0xff]  }
  0xb7   : > { %v1471_v58 = vsel %vm1363_vm6, %v1466_v44, %v1470_v54  ;;  %v1642_v59 = vrot.slane %v7531_v24, 1  ;;  %v1489_v62 = vrot.slane %v1487_v45, 1  ;;  %v1485_v63 = vshrl.u32 %v8307_v32, 16  ;;  %v8369_v54 = vld [vmem:[#allocation2 + $0xc0] sm:$0xff]  }
  0xb8   : > { %1592 = vrot.lane.b32.xlu0 %v1447_v28, %s7734_s24  ;;  %v1499_v2 = vshll.u32 %v8318_v49, 16  ;;  %v1640_v5 = vsel %vm1616_vm5, %v1638_v47, %v1639_v48  ;;  %v1478_v7 = vor.u32 %v1477_v55, %v1473_v37  ;;  %v1492_v9 = vshll.u32 %v7535_v56, 16 }
  0xb9   : > { %v1511_v12 = vshll.u32 %v8320_v51, 16  ;;  %v1482_v60 = vrot.slane %v1480_v57, 1  ;;  %v1644_v13 = vrot.slane %v8300_v19, 1  ;;  %v1645_v14 = vrot.slane %v7533_v41, 1 }
  0xba   : > { %1681 = vrot.lane.b32.xlu1 %v1634_v35, %s7733_s23  ;;  %v1643_v15 = vsel %vm1616_vm5, %v1641_v46, %v1642_v59  ;;  %v1490_v16 = vor.u32 %v1489_v62, %v1485_v63  ;;  %v1647_v17 = vrot.slane %v8307_v32, 1  ;;  %v1648_v20 = vrot.slane %v7535_v56, 1 }
  0xbb   : > { %v1501_v23 = vrot.slane %v1499_v2, 1  ;;  %v1504_v24 = vshll.u32 %v8329_v0, 16  ;;  %v1483_v25 = vsel %vm1363_vm6, %v1478_v7, %v1482_v60  ;;  %v1494_v27 = vrot.slane %v1492_v9, 1  ;;  %v7545_v60 = vld [vmem:[#allocation2 + $0xbc] ss:$0 sps:$4 sm:$0xff]  }
  0xbc   : > { %1683 = vrot.lane.b32.xlu0 %v1637_v43, %s7733_s23  ;;  %v1513_v28 = vrot.slane %v1511_v12, 1  ;;  %v1516_v29 = vshll.u32 %v8335_v10, 16  ;;  %v1497_v31 = vshrl.u32 %v8318_v49, 16  ;;  %v1650_v34 = vrot.slane %v8318_v49, 1 }
  0xbd   : > { %v1509_v35 = vshrl.u32 %v8320_v51, 16  ;;  %v1523_v36 = vshll.u32 %v8332_v3, 16  ;;  %v1646_v38 = vsel %vm1616_vm5, %v1644_v13, %v1645_v14  ;;  %v1495_v39 = vsel %vm1363_vm6, %v1490_v16, %v1494_v27  ;;  %v8392_v13 = vld [vmem:[#allocation2] sm:$0xff]  }
  0xbe   : > { %1594 = vrot.lane.b32.xlu1 %v1459_v52, %s7734_s24  ;;  %v1528_v41 = vshll.u32 %v8344_v22, 16  ;;  %v1535_v43 = vshll.u32 %v8340_v61, 16  ;;  %v1502_v44 = vor.u32 %v1501_v23, %v1497_v31  ;;  %v1506_v45 = vrot.slane %v1504_v24, 1  ;;  %v8367_v52 = vld [vmem:[#allocation2 + $0xb4] sm:$0xff]   ;;  %v7549_v31 = vld [vmem:[#allocation2 + $0x8] ss:$0 sps:$4 sm:$0xff]  }
  0xbf   : > { %v1649_v47 = vsel %vm1616_vm5, %v1647_v17, %v1648_v20  ;;  %v1651_v48 = vrot.slane %v8329_v0, 1  ;;  %v1514_v55 = vor.u32 %v1513_v28, %v1509_v35  ;;  %v1518_v56 = vrot.slane %v1516_v29, 1  ;;  %v7547_v28 = vld [vmem:[#allocation2 + $0xc8] ss:$0 sps:$4 sm:$0xff]  }
  0xc0   : > { %1596 = vrot.lane.b32.xlu0 %v1471_v58, %s7734_s24  ;;  %v1521_v37 = vshrl.u32 %v8332_v3, 16  ;;  %v1653_v57 = vrot.slane %v8320_v51, 1  ;;  %v8376_v58 = vld [vmem:[%s10716_s2] sm:$0xff]   ;;  %v1525_v46 = vrot.slane %v1523_v36, 1  ;;  %v1654_v59 = vrot.slane %v8335_v10, 1 }
  0xc1   : > { %v1533_v62 = vshrl.u32 %v8340_v61, 16  ;;  %v1530_v63 = vrot.slane %v1528_v41, 1  ;;  %v1537_v0 = vrot.slane %v1535_v43, 1  ;;  %v1540_v2 = vshll.u32 %v8361_v42, 16 }
  0xc2   : > { %1685 = vrot.lane.b32.xlu1 %v1640_v5, %s7733_s23  ;;  %v1862_v5 = vsel %vm1860_vm7, %v7554_v30, 0  ;;  %v1547_v7 = vshll.u32 %v8367_v52, 16  ;;  %v1559_v9 = vshll.u32 %v8369_v54, 16  ;;  %v1507_v10 = vsel %vm1363_vm6, %v1502_v44, %v1506_v45 }
  0xc3   : > { %7295 = vmatpush3.bf16.msra.mxu0 %v1862_v5  ;;  %v1519_v12 = vsel %vm1363_vm6, %v1514_v55, %v1518_v56  ;;  %v1652_v14 = vsel %vm1616_vm5, %v1650_v34, %v1651_v48  ;;  %v1655_v16 = vsel %vm1616_vm5, %v1653_v57, %v1654_v59  ;;  %v1538_v17 = vor.u32 %v1537_v0, %v1533_v62 }
  0xc4   : > { %1687 = vrot.lane.b32.xlu0 %v1643_v15, %s7733_s23  ;;  %7328 = vmatprep.subr.bf16.mxu0 %v8376_v58  ;;  %v1526_v15 = vor.u32 %v1525_v46, %v1521_v37  ;;  %v1656_v20 = vrot.slane %v8332_v3, 1  ;;  %v1657_v24 = vrot.slane %v8344_v22, 1  ;;  %v1549_v27 = vrot.slane %v1547_v7, 1 }
  0xc5   : > { %v1545_v29 = vshrl.u32 %v8367_v52, 16  ;;  %v1552_v30 = vshll.u32 %v7545_v60, 16  ;;  %v1367_v34 = vshll.u32 %v8392_v13, 16  ;;  %v1659_v36 = vrot.slane %v8340_v61, 1 }
  0xc6   : > { %1598 = vrot.lane.b32.xlu1 %v1483_v25, %s7734_s24  ;;  %v1531_v23 = vsel %vm1363_vm6, %v1526_v15, %v1530_v63  ;;  %v1542_v25 = vrot.slane %v1540_v2, 1  ;;  %v1658_v22 = vsel %vm1616_vm5, %v1656_v20, %v1657_v24  ;;  %v1557_v43 = vshrl.u32 %v8369_v54, 16 }
  0xc7   : > { %v1550_v41 = vor.u32 %v1549_v27, %v1545_v29  ;;  %v1564_v44 = vshll.u32 %v7547_v28, 16  ;;  %v1365_v45 = vshrl.u32 %v8392_v13, 16  ;;  %v1554_v48 = vrot.slane %v1552_v30, 1 }
  0xc8   : > { %1600 = vrot.lane.b32.xlu0 %v1495_v39, %s7734_s24  ;;  %v1543_v35 = vsel %vm1363_vm6, %v1538_v17, %v1542_v25  ;;  %v1561_v39 = vrot.slane %v1559_v9, 1  ;;  %v1369_v37 = vrot.slane %v1367_v34, 1  ;;  %v1662_v57 = vrot.slane %v8367_v52, 1 }
  0xc9   : > { %v1663_v46 = vrot.slane %v7545_v60, 1  ;;  %v1566_v59 = vrot.slane %v1564_v44, 1  ;;  %v1665_v0 = vrot.slane %v8369_v54, 1  ;;  %v1666_v2 = vrot.slane %v7547_v28, 1 }
  0xca   : > { %1689 = vrot.lane.b32.xlu1 %v1646_v38, %s7733_s23  ;;  %v1660_v38 = vrot.slane %v8361_v42, 1  ;;  %v1562_v56 = vor.u32 %v1561_v39, %v1557_v43  ;;  %v1555_v42 = vsel %vm1363_vm6, %v1550_v41, %v1554_v48  ;;  %v1370_v5 = vor.u32 %v1369_v37, %v1365_v45  ;;  %v7556_v45 = vld [vmem:[%s10716_s2 + $0x8] sm:$0xff]  }
  0xcb   : > { %v1664_v7 = vsel %vm1616_vm5, %v1662_v57, %v1663_v46  ;;  %v1617_v9 = vrot.slane %v8392_v13, 1  ;;  %v7558_v57 = vld [vmem:[%s10716_s2 + $0x18] sm:$0xff]   ;;  %vm3559_vm3 = vcmask 523264  }
  0xcc   : > { %1691 = vrot.lane.b32.xlu0 %v1649_v47, %s7733_s23  ;;  %v1372_v47 = vshll.u32 %v7549_v31, 16  ;;  %v1661_v55 = vsel %vm1616_vm5, %v1659_v36, %v1660_v38  ;;  %v1567_v63 = vsel %vm1363_vm6, %v1562_v56, %v1566_v59 }
  0xce   : > { %1602 = vrot.lane.b32.xlu1 %v1507_v10, %s7734_s24  ;;  %v1374_v62 = vrot.slane %v1372_v47, 1  ;;  %v1618_v10 = vrot.slane %v7549_v31, 1 }
  0xd0   : > { %1604 = vrot.lane.b32.xlu0 %v1519_v12, %s7734_s24  ;;  %v383_v12 = vld [vmem:[#allocation2 + $0xcc] sm:$0x1]  ;;  %v1375_v17 = vsel %vm1363_vm6, %v1370_v5, %v1374_v62  ;;  %v1619_v20 = vsel %vm1616_vm5, %v1617_v9, %v1618_v10 }
  0xd1   : > { %v384_v60 = vsel %vm7790_vm2, 0, %v383_v12  ;;  %vm1707_vm2 = vcmask 195584  }
  0xd2   : > { %1693 = vrot.lane.b32.xlu1 %v1652_v14, %s7733_s23  ;;  %v439_v14 = vld [vmem:[#allocation2 + $0xd4] sm:$0x1]  ;;  %385 = vst [vmem:[#allocation2 + $0xcc] sm:$0x1] %v384_v60 }
  0xd3   : > { %v440_v15 = vsel %vm7799_vm4, 0, %v439_v14  ;;  %vm1744_vm4 = vcmask 392192  }
  0xd4   : > { %1695 = vrot.lane.b32.xlu0 %v1655_v16, %s7733_s23  ;;  %v1667_v16 = vsel %vm1616_vm5, %v1665_v0, %v1666_v2  ;;  %441 = vst [vmem:[#allocation2 + $0xd4] sm:$0x1] %v440_v15 }
  0xd6   : > { %1606 = vrot.lane.b32.xlu1 %v1531_v23, %s7734_s24 }
  0xd8   : > { %1608 = vrot.lane.b32.xlu0 %v1543_v35, %s7734_s24 }
  0xd9   : > { %v8433_v23 = vld [vmem:[#allocation2 + $0xcc] sm:$0xff]  }
  0xda   : > { %1697 = vrot.lane.b32.xlu1 %v1658_v22, %s7733_s23  ;;  %v1569_v6 = vshrl.u32 %v8433_v23, 16  ;;  %v1571_v24 = vshll.u32 %v8433_v23, 16  ;;  %v1668_v25 = vrot.slane %v8433_v23, 1 }
  0xdb   : > { %v7562_v1 = vld [vmem:[#allocation2 + $0xd4] ss:$0 sps:$4 sm:$0xff]  }
  0xdc   : > { %1699 = vrot.lane.b32.xlu0 %v1661_v55, %s7733_s23  ;;  %v1576_v27 = vshll.u32 %v7562_v1, 16  ;;  %v1669_v28 = vrot.slane %v7562_v1, 1  ;;  %v1573_v29 = vrot.slane %v1571_v24, 1 }
  0xde   : > { %1610 = vrot.lane.b32.xlu1 %v1555_v42, %s7734_s24  ;;  %v1578_v30 = vrot.slane %v1576_v27, 1  ;;  %v1670_v31 = vsel %vm1616_vm5, %v1668_v25, %v1669_v28  ;;  %v1574_v34 = vor.u32 %v1573_v29, %v1569_v6 }
  0xe0   : > { %1612 = vrot.lane.b32.xlu0 %v1567_v63, %s7734_s24  ;;  %v1579_v35 = vsel %vm1363_vm6, %v1574_v34, %v1578_v30 }
  0xe2   : > { %1701 = vrot.lane.b32.xlu1 %v1664_v7, %s7733_s23 }
  0xe4   : > { %1703 = vrot.lane.b32.xlu0 %v1667_v16, %s7733_s23 }
  0xe6   : > { %1580 = vrot.lane.b32.xlu1 %v1375_v17, %s7734_s24 }
  0xe8   : > { %1671 = vrot.lane.b32.xlu0 %v1619_v20, %s7733_s23 }
  0xea   : > { %1614 = vrot.lane.b32.xlu1 %v1579_v35, %s7734_s24  ;;  %s7158_s24 = sshll.u32 %s10785_s28, 8 }
  0xeb   : > { %s10562_s30 = scalar_lea.vmem %s10722_s8, %s7158_s24 }
  0xec   : > { %1705 = vrot.lane.b32.xlu0 %v1670_v31, %s7733_s23 }
 0x115   : > { %v1674_v36 = vpop.permute.xlu1 %1673 }
 0x11a   : > { %v1583_v38 = vpop.permute.xlu0 %1582 }
 0x11b   : > { %v1711_v39 = vsel %vm1707_vm2, %v8249_v8, %v1583_v38 }
 0x11c   : > { %v1585_v22 = vpop.permute.xlu1 %1584  ;;  %v8445_v41 = vsel %vm1744_vm4, %v1711_v39, %v1674_v36 }
 0x11d   : > { %7296 = vmatprep.mubr.msk.bf16.mxu0 %vm1827_vm9, %v8445_v41  ;;  %v1713_v43 = vsel %vm1707_vm2, %v8252_v11, %v1585_v22  ;;  %v7557_v11 = vld [vmem:[%s10716_s2 + $0x10] sm:$0xff]  }
 0x11e   : > { %v1676_v44 = vpop.permute.xlu0 %1675 }
 0x11f   : > { %v8455_v47 = vsel %vm1744_vm4, %v1713_v43, %v1676_v44 }
 0x120   : > { %v1587_v48 = vpop.permute.xlu1 %1586  ;;  %7297 = vmatmul.mubr.msk.bf16.vlgmr.msra.gmra.mrb[0].mxu0 %vm1827_vm9, %v8455_v47 }
 0x121   : > { %7329 = vmatpush3.bf16.msra.mxu0 %v8376_v58  ;;  %v1715_v55 = vsel %vm1707_vm2, %v8257_v18, %v1587_v48 }
 0x122   : > { %v1589_v8 = vpop.permute.xlu0 %1588  ;;  %7330 = vmatprep.subr.bf16.mxu0 %v7556_v45 }
 0x123   : > { %v1717_v42 = vsel %vm1707_vm2, %v8260_v21, %v1589_v8  ;;  %v7559_v21 = vld [vmem:[%s10716_s2 + $0x20] ss:$0 sps:$4 sm:$0xff]  }
 0x124   : > { %v1678_v56 = vpop.permute.xlu1 %1677  ;;  %v2055_v7 = vsel %vm1860_vm7, %v7559_v21, 0 }
 0x125   : > { %v8466_v37 = vsel %vm1744_vm4, %v1715_v55, %v1678_v56  ;;  %7331 = vmatpush3.bf16.msra.mxu0 %v7556_v45 }
 0x126   : > { %7300 = vmatprep.mubr.msk.bf16.mxu0 %vm1827_vm9, %v8466_v37  ;;  %v1680_v58 = vpop.permute.xlu0 %1679  ;;  %7332 = vmatprep.subr.bf16.mxu0 %v7557_v11 }
 0x127   : > { %v8476_v46 = vsel %vm1744_vm4, %v1717_v42, %v1680_v58  ;;  %v458_v58 = vld [vmem:[#allocation3 + $0x18] sm:$0x1] }
 0x128   : > { %v1591_v18 = vpop.permute.xlu1 %1590  ;;  %7301 = vmatmul.mubr.msk.bf16.gmra.mrb[4].mxu0 %vm1827_vm9, %v8476_v46 }
 0x129   : > { %7333 = vmatpush3.bf16.msra.mxu0 %v7557_v11  ;;  %v1719_v62 = vsel %vm1707_vm2, %v8264_v26, %v1591_v18  ;;  %v8497_v26 = vld [vmem:[%s10716_s2 + $0x48] sm:$0xff]   ;;  %v459_v18 = vsel %vm8566_vm12, 0, %v458_v58 }
 0x12a   : > { %v1593_v59 = vpop.permute.xlu0 %1592  ;;  %7334 = vmatprep.subr.bf16.mxu0 %v7558_v57  ;;  %460 = vst [vmem:[#allocation3 + $0x18] sm:$0x1] %v459_v18  ;;  %v491_v18 = vld [vmem:[#allocation3 + $0x9c] sm:$0x1] }
 0x12b   : > { %v1721_v2 = vsel %vm1707_vm2, %v8272_v40, %v1593_v59 }
 0x12c   : > { %v1682_v63 = vpop.permute.xlu1 %1681 }
 0x12d   : > { %v8486_v0 = vsel %vm1744_vm4, %v1719_v62, %v1682_v63  ;;  %7335 = vmatpush3.bf16.msra.mxu0 %v7558_v57  ;;  %v7565_v62 = vld [vmem:[%s10716_s2 + $0x60] sm:$0xff]  }
 0x12e   : > { %7304 = vmatprep.mubr.msk.bf16.mxu0 %vm1827_vm9, %v8486_v0  ;;  %v1684_v5 = vpop.permute.xlu0 %1683  ;;  %7501 = vmatprep.subr.msk.bf16.mxu0 %vm1860_vm7, %v7559_v21 }
 0x12f   : > { %v8500_v9 = vsel %vm1744_vm4, %v1721_v2, %v1684_v5  ;;  %v455_v2 = vld [vmem:[#allocation3 + $0xc] sm:$0x1] }
 0x130   : > { %v1595_v10 = vpop.permute.xlu1 %1594  ;;  %7305 = vmatmul.mubr.msk.bf16.gmra.mrb[8].mxu0 %vm1827_vm9, %v8500_v9  ;;  %v456_v5 = vsel %vm8566_vm12, 0, %v455_v2  ;;  %v552_v2 = vld [vmem:[#allocation3 + $0xbc] sm:$0x1] }
 0x131   : > { %7337 = vmatpush3.bf16.msra.mxu0 %v2055_v7  ;;  %v1723_v12 = vsel %vm1707_vm2, %v8280_v53, %v1595_v10  ;;  %457 = vst [vmem:[#allocation3 + $0xc] sm:$0x1] %v456_v5  ;;  %v553_v5 = vsel %vm8662_vm1, 0, %v552_v2  ;;  %v7628_v7 = vld [vmem:[%s10718_s4 + $0x18] sm:$0xff]  }
 0x132   : > { %v1597_v40 = vpop.permute.xlu0 %1596  ;;  %7370 = vmatprep.subr.bf16.mxu0 %v8497_v26  ;;  %554 = vst [vmem:[#allocation3 + $0xbc] sm:$0x1] %v553_v5 }
 0x133   : > { %v1725_v15 = vsel %vm1707_vm2, %v8289_v4, %v1597_v40  ;;  %v464_v40 = vld [vmem:[#allocation3 + $0x30] sm:$0x1] }
 0x134   : > { %v1686_v14 = vpop.permute.xlu1 %1685 }
 0x135   : > { %v8508_v60 = vsel %vm1744_vm4, %v1723_v12, %v1686_v14  ;;  %v465_v12 = vsel %vm8566_vm12, 0, %v464_v40  ;;  %v461_v14 = vld [vmem:[#allocation3 + $0x24] sm:$0x1]  ;;  %v8743_v40 = vld [vmem:[%s10717_s3] ss:$0 sm:$0xff] }
 0x136   : > { %7308 = vmatprep.mubr.msk.bf16.mxu0 %vm1827_vm9, %v8508_v60  ;;  %v1688_v16 = vpop.permute.xlu0 %1687  ;;  %466 = vst [vmem:[#allocation3 + $0x30] sm:$0x1] %v465_v12  ;;  %v7603_v12 = vld [vmem:[%s10718_s4 + $0x70] sm:$0xff]  }
 0x137   : > { %v8515_v17 = vsel %vm1744_vm4, %v1725_v15, %v1688_v16  ;;  %v519_v15 = vld [vmem:[#allocation3 + $0x38] sm:$0x1] }
 0x138   : > { %v1599_v20 = vpop.permute.xlu1 %1598  ;;  %7309 = vmatmul.mubr.msk.bf16.gmra.mrb[12].mxu0 %vm1827_vm9, %v8515_v17  ;;  %v520_v16 = vsel %vm8662_vm1, 0, %v519_v15 }
 0x139   : > { %v1727_v53 = vsel %vm1707_vm2, %v8300_v19, %v1599_v20  ;;  %521 = vst [vmem:[#allocation3 + $0x38] sm:$0x1] %v520_v16  ;;  %v470_v20 = vld [vmem:[#allocation3 + $0x48] sm:$0x1] }
 0x13a   : > { %v1601_v1 = vpop.permute.xlu0 %1600 }
 0x13b   : > { %v1729_v4 = vsel %vm1707_vm2, %v8307_v32, %v1601_v1 }
 0x13c   : > { %v1690_v6 = vpop.permute.xlu1 %1689 }
 0x13d   : > { %v8522_v24 = vsel %vm1744_vm4, %v1727_v53, %v1690_v6  ;;  %v471_v53 = vsel %vm8566_vm12, 0, %v470_v20  ;;  %v467_v6 = vld [vmem:[#allocation3 + $0x3c] sm:$0x1] }
 0x13e   : > { %7312 = vmatprep.mubr.msk.bf16.mxu0 %vm1827_vm9, %v8522_v24  ;;  %v1692_v25 = vpop.permute.xlu0 %1691  ;;  %472 = vst [vmem:[#allocation3 + $0x48] sm:$0x1] %v471_v53 }
 0x13f   : > { %v8529_v27 = vsel %vm1744_vm4, %v1729_v4, %v1692_v25  ;;  %v525_v4 = vld [vmem:[#allocation3 + $0x50] sm:$0x1] }
 0x140   : > { %v1603_v28 = vpop.permute.xlu1 %1602  ;;  %7313 = vmatmul.mubr.msk.bf16.gmra.mrb[16].mxu0 %vm1827_vm9, %v8529_v27  ;;  %v526_v25 = vsel %vm8662_vm1, 0, %v525_v4  ;;  %v7606_v4 = vld [vmem:[%s10718_s4 + $0xd8] sm:$0xff]  }
 0x141   : > { %v1731_v19 = vsel %vm1707_vm2, %v8318_v49, %v1603_v28  ;;  %527 = vst [vmem:[#allocation3 + $0x50] sm:$0x1] %v526_v25 }
 0x142   : > { %v1605_v29 = vpop.permute.xlu0 %1604 }
 0x143   : > { %v1733_v32 = vsel %vm1707_vm2, %v8320_v51, %v1605_v29  ;;  %v476_v29 = vld [vmem:[#allocation3 + $0x60] sm:$0x1] }
 0x144   : > { %v1694_v30 = vpop.permute.xlu1 %1693 }
 0x145   : > { %v8536_v31 = vsel %vm1744_vm4, %v1731_v19, %v1694_v30  ;;  %v477_v19 = vsel %vm8566_vm12, 0, %v476_v29  ;;  %v473_v30 = vld [vmem:[#allocation3 + $0x54] sm:$0x1] }
 0x146   : > { %7316 = vmatprep.mubr.msk.bf16.mxu0 %vm1827_vm9, %v8536_v31  ;;  %v1696_v34 = vpop.permute.xlu0 %1695  ;;  %478 = vst [vmem:[#allocation3 + $0x60] sm:$0x1] %v477_v19 }
 0x147   : > { %v8543_v35 = vsel %vm1744_vm4, %v1733_v32, %v1696_v34  ;;  %v474_v32 = vsel %vm8566_vm12, 0, %v473_v30 }
 0x148   : > { %v1607_v36 = vpop.permute.xlu1 %1606  ;;  %7317 = vmatmul.mubr.msk.bf16.gmra.mrb[20].mxu0 %vm1827_vm9, %v8543_v35  ;;  %475 = vst [vmem:[#allocation3 + $0x54] sm:$0x1] %v474_v32 }
 0x149   : > { %v1735_v49 = vsel %vm1707_vm2, %v8332_v3, %v1607_v36  ;;  %v482_v36 = vld [vmem:[#allocation3 + $0x78] sm:$0x1] }
 0x14a   : > { %v1609_v38 = vpop.permute.xlu0 %1608 }
 0x14b   : > { %v1737_v51 = vsel %vm1707_vm2, %v8340_v61, %v1609_v38 }
 0x14c   : > { %v1698_v39 = vpop.permute.xlu1 %1697 }
 0x14d   : > { %v8550_v22 = vsel %vm1744_vm4, %v1735_v49, %v1698_v39  ;;  %v483_v49 = vsel %vm8566_vm12, 0, %v482_v36  ;;  %v479_v39 = vld [vmem:[#allocation3 + $0x6c] sm:$0x1] }
 0x14e   : > { %7320 = vmatprep.mubr.msk.bf16.mxu0 %vm1827_vm9, %v8550_v22  ;;  %v1700_v43 = vpop.permute.xlu0 %1699  ;;  %484 = vst [vmem:[#allocation3 + $0x78] sm:$0x1] %v483_v49 }
 0x14f   : > { %v8557_v44 = vsel %vm1744_vm4, %v1737_v51, %v1700_v43  ;;  %v537_v51 = vld [vmem:[#allocation3 + $0x80] sm:$0x1] }
 0x150   : > { %v1611_v45 = vpop.permute.xlu1 %1610  ;;  %7321 = vmatmul.mubr.msk.bf16.gmra.mrb[24].mxu0 %vm1827_vm9, %v8557_v44  ;;  %v538_v43 = vsel %vm8662_vm1, 0, %v537_v51 }
 0x151   : > { %v1739_v3 = vsel %vm1707_vm2, %v8367_v52, %v1611_v45  ;;  %539 = vst [vmem:[#allocation3 + $0x80] sm:$0x1] %v538_v43  ;;  %v488_v45 = vld [vmem:[#allocation3 + $0x90] sm:$0x1]  ;;  %v2950_v43 = vld [vmem:[#allocation3 + $0x18] sm:$0xf] }
 0x152   : > { %v1613_v48 = vpop.permute.xlu0 %1612 }
 0x153   : > { %v1741_v55 = vsel %vm1707_vm2, %v8369_v54, %v1613_v48  ;;  %v7563_v54 = vld [vmem:[%s10716_s2 + $0x50] sm:$0xff]  }
 0x154   : > { %v1702_v8 = vpop.permute.xlu1 %1701 }
 0x155   : > { %v1776_v11 = vsel %vm1744_vm4, %v1739_v3, %v1702_v8  ;;  %v489_v3 = vsel %vm8566_vm12, 0, %v488_v45  ;;  %v485_v8 = vld [vmem:[#allocation3 + $0x84] sm:$0x1] }
 0x156   : > { %7324 = vmatprep.mubr.msk.bf16.mxu0 %vm1827_vm9, %v1776_v11  ;;  %v1704_v56 = vpop.permute.xlu0 %1703  ;;  %490 = vst [vmem:[#allocation3 + $0x90] sm:$0x1] %v489_v3 }
 0x157   : > { %v1778_v42 = vsel %vm1744_vm4, %v1741_v55, %v1704_v56  ;;  %v543_v55 = vld [vmem:[#allocation3 + $0x98] sm:$0x1] }
 0x158   : > { %7325 = vmatmul.mubr.msk.bf16.gmra.mrb[28].mxu0 %vm1827_vm9, %v1778_v42  ;;  %v1581_v52 = vpop.permute.xlu1 %1580  ;;  %v544_v56 = vsel %vm8662_vm1, 0, %v543_v55  ;;  %v2943_v55 = vld [vmem:[#allocation3 + $0xc] sm:$0xf] }
 0x159   : > { %v1709_v57 = vsel %vm1707_vm2, %v8392_v13, %v1581_v52  ;;  %v7564_v13 = vld [vmem:[%s10716_s2 + $0x58] sm:$0xff]   ;;  %545 = vst [vmem:[#allocation3 + $0x98] sm:$0x1] %v544_v56  ;;  %v494_v52 = vld [vmem:[#allocation3 + $0xa8] sm:$0x1] }
 0x15a   : > { %v1672_v59 = vpop.permute.xlu0 %1671 }
 0x15b   : > { %v1746_v21 = vsel %vm1744_vm4, %v1709_v57, %v1672_v59  ;;  %v495_v57 = vsel %vm8566_vm12, 0, %v494_v52  ;;  %v492_v59 = vsel %vm8566_vm12, 0, %v491_v18 }
 0x15c   : > { %7338 = vmatprep.mubr.msk.bf16.mxu0 %vm1827_vm9, %v1746_v21  ;;  %496 = vst [vmem:[#allocation3 + $0xa8] sm:$0x1] %v495_v57  ;;  %493 = vst [vmem:[#allocation3 + $0x9c] sm:$0x1] %v492_v59  ;;  %v549_v21 = vld [vmem:[#allocation3 + $0xb0] sm:$0x1] }
 0x160   : > { %7339 = vmatmul.mubr.msk.bf16.vlgmr.msra.gmra.mrb[0].mxu0 %vm1827_vm9, %v8445_v41  ;;  %v7566_v41 = vld [vmem:[%s10716_s2 + $0x68] ss:$0 sps:$4 sm:$0xff]  }
 0x161   : > { %7371 = vmatpush3.bf16.msra.mxu0 %v8497_v26  ;;  %7342 = vmatprep.mubr.msk.bf16.mxu0 %vm1827_vm9, %v8455_v47  ;;  %v2258_v63 = vsel %vm1860_vm7, %v7566_v41, 0  ;;  %v513_v26 = vld [vmem:[#allocation3 + $0x20] sm:$0x1] }
 0x162   : > { %7372 = vmatprep.subr.bf16.mxu0 %v7563_v54 }
 0x165   : > { %7373 = vmatpush3.bf16.msra.mxu0 %v7563_v54  ;;  %v550_v54 = vsel %vm8662_vm1, 0, %v549_v21 }
 0x166   : > { %7374 = vmatprep.subr.bf16.mxu0 %v7564_v13  ;;  %551 = vst [vmem:[#allocation3 + $0xb0] sm:$0x1] %v550_v54 }
 0x168   : > { %7343 = vmatmul.mubr.msk.bf16.gmra.mrb[4].mxu0 %vm1827_vm9, %v8466_v37 }
 0x169   : > { %7346 = vmatprep.mubr.msk.bf16.mxu0 %vm1827_vm9, %v8476_v46  ;;  %7375 = vmatpush3.bf16.msra.mxu0 %v7564_v13  ;;  %v546_v13 = vld [vmem:[#allocation3 + $0xa4] sm:$0x1] }
 0x16a   : > { %7376 = vmatprep.subr.bf16.mxu0 %v7565_v62 }
 0x16d   : > { %7377 = vmatpush3.bf16.msra.mxu0 %v7565_v62  ;;  %v500_v62 = vld [vmem:[#allocation3 + $0xc0] sm:$0x1] }
 0x16e   : > { %7502 = vmatprep.subr.msk.bf16.mxu0 %vm1860_vm7, %v7566_v41  ;;  %v547_v41 = vsel %vm8662_vm1, 0, %v546_v13  ;;  %v7609_v13 = vld [vmem:[%s10718_s4 + $0x88] sm:$0xff]  }
 0x16f   : > { %548 = vst [vmem:[#allocation3 + $0xa4] sm:$0x1] %v547_v41 }
 0x170   : > { %7347 = vmatmul.mubr.msk.bf16.gmra.mrb[8].mxu0 %vm1827_vm9, %v8486_v0 }
 0x171   : > { %7350 = vmatprep.mubr.msk.bf16.mxu0 %vm1827_vm9, %v8500_v9  ;;  %7379 = vmatpush3.bf16.msra.mxu0 %v2258_v63  ;;  %v501_v63 = vsel %vm8566_vm12, 0, %v500_v62  ;;  %v7610_v62 = vld [vmem:[%s10718_s4 + $0xe8] sm:$0xff]  }
 0x172   : > { %4280 = vmatprep.subr.bf16.mxu0 %v10723_v50  ;;  %502 = vst [vmem:[#allocation3 + $0xc0] sm:$0x1] %v501_v63 }
 0x178   : > { %7351 = vmatmul.mubr.msk.bf16.gmra.mrb[12].mxu0 %vm1827_vm9, %v8508_v60 }
 0x179   : > { %7354 = vmatprep.mubr.msk.bf16.mxu0 %vm1827_vm9, %v8515_v17 }
 0x180   : > { %7355 = vmatmul.mubr.msk.bf16.gmra.mrb[16].mxu0 %vm1827_vm9, %v8522_v24 }
 0x181   : > { %7358 = vmatprep.mubr.msk.bf16.mxu0 %vm1827_vm9, %v8529_v27 }
 0x188   : > { %7359 = vmatmul.mubr.msk.bf16.gmra.mrb[20].mxu0 %vm1827_vm9, %v8536_v31 }
 0x189   : > { %7362 = vmatprep.mubr.msk.bf16.mxu0 %vm1827_vm9, %v8543_v35 }
 0x190   : > { %7363 = vmatmul.mubr.msk.bf16.gmra.mrb[24].mxu0 %vm1827_vm9, %v8550_v22 }
 0x191   : > { %7366 = vmatprep.mubr.msk.bf16.mxu0 %vm1827_vm9, %v8557_v44 }
 0x198   : > { %7367 = vmatmul.mubr.msk.bf16.gmra.mrb[28].mxu0 %vm1827_vm9, %v1776_v11 }
 0x199   : > { %7380 = vmatprep.mubr.msk.bf16.mxu0 %vm1827_vm9, %v8455_v47  ;;  %v1615_v47 = vpop.permute.xlu1 %1614 }
 0x1a0   : > { %7381 = vmatmul.mubr.msk.bf16.vlgmr.msra.gmra.mrb[0].mxu0 %vm1827_vm9, %v8466_v37  ;;  %v1743_v37 = vsel %vm1707_vm2, %v8433_v23, %v1615_v47  ;;  %v514_v23 = vsel %vm8662_vm1, 0, %v513_v26  ;;  %v497_v47 = vld [vmem:[#allocation3 + $0xb4] sm:$0x1]  ;;  %v7599_v26 = vld [vmem:[%s10718_s4 + $0x60] sm:$0xff]  }
 0x1a1   : > { %7384 = vmatprep.mubr.msk.bf16.mxu0 %vm1827_vm9, %v8476_v46  ;;  %v1706_v46 = vpop.permute.xlu0 %1705  ;;  %515 = vst [vmem:[#allocation3 + $0x20] sm:$0x1] %v514_v23  ;;  %v7600_v23 = vld [vmem:[%s10718_s4 + $0xc0] sm:$0xff]   ;;  %3784 = vmatpush1.bf16.msra.mxu1 %v7599_v26 }
 0x1a2   : > { %4281 = vmatpush1.bf16.msra.mxu0 %v7600_v23  ;;  %3785 = vmatprep.subr.bf16.mxu1 %v10723_v50 }
 0x1a3   : > { %4282 = vmatprep.subr.bf16.mxu0 %v10723_v50 }
 0x1a8   : > { %7385 = vmatmul.mubr.msk.bf16.gmra.mrb[4].mxu0 %vm1827_vm9, %v8486_v0  ;;  %v1780_v0 = vsel %vm1744_vm4, %v1743_v37, %v1706_v46  ;;  %v498_v37 = vsel %vm8566_vm12, 0, %v497_v47  ;;  %v555_v46 = vld [vmem:[#allocation3 + $0xc8] sm:$0x1]  ;;  %v2954_v47 = vld [vmem:[#allocation3 + $0x20] sm:$0x1] }
 0x1a9   : > { %7388 = vmatprep.mubr.msk.bf16.mxu0 %vm1827_vm9, %v8500_v9  ;;  %v510_v9 = vld [vmem:[#allocation3 + $0x14] sm:$0x1]  ;;  %499 = vst [vmem:[#allocation3 + $0xb4] sm:$0x1] %v498_v37 }
 0x1aa   : > { %v511_v10 = vsel %vm8662_vm1, 0, %v510_v9  ;;  %v7601_v9 = vld [vmem:[%s10718_s4 + $0x68] sm:$0xff]  }
 0x1ab   : > { %512 = vst [vmem:[#allocation3 + $0x14] sm:$0x1] %v511_v10  ;;  %v7602_v10 = vld [vmem:[%s10718_s4 + $0xc8] sm:$0xff]   ;;  %3786 = vmatpush1.bf16.msra.mxu1 %v7601_v9 }
 0x1ac   : > { %4283 = vmatpush1.bf16.msra.mxu0 %v7602_v10  ;;  %3787 = vmatprep.subr.bf16.mxu1 %v10723_v50 }
 0x1ad   : > { %4284 = vmatprep.subr.bf16.mxu0 %v10723_v50 }
 0x1af   : > { %3788 = vmatpush1.bf16.msra.mxu1 %v7603_v12 }
 0x1b0   : > { %7389 = vmatmul.mubr.msk.bf16.gmra.mrb[8].mxu0 %vm1827_vm9, %v8508_v60  ;;  %v462_v60 = vsel %vm8566_vm12, 0, %v461_v14  ;;  %v7604_v14 = vld [vmem:[%s10718_s4 + $0xd0] sm:$0xff]   ;;  %3789 = vmatprep.subr.bf16.mxu1 %v10723_v50 }
 0x1b1   : > { %7392 = vmatprep.mubr.msk.bf16.mxu0 %vm1827_vm9, %v8515_v17  ;;  %463 = vst [vmem:[#allocation3 + $0x24] sm:$0x1] %v462_v60  ;;  %v516_v17 = vld [vmem:[#allocation3 + $0x2c] sm:$0x1]  ;;  %4285 = vmatpush1.bf16.msra.mxu0 %v7604_v14 }
 0x1b2   : > { %v517_v1 = vsel %vm8662_vm1, 0, %v516_v17  ;;  %4286 = vmatprep.subr.bf16.mxu0 %v10723_v50  ;;  %v2947_v26 = vld [vmem:[#allocation3 + $0x14] sm:$0x1] }
 0x1b3   : > { %518 = vst [vmem:[#allocation3 + $0x2c] sm:$0x1] %v517_v1 }
 0x1b5   : > { %4287 = vmatpush1.bf16.msra.mxu0 %v7606_v4 }
 0x1b6   : > { %4288 = vmatprep.subr.bf16.mxu0 %v10723_v50 }
 0x1b8   : > { %7393 = vmatmul.mubr.msk.bf16.gmra.mrb[12].mxu0 %vm1827_vm9, %v8522_v24  ;;  %v468_v24 = vsel %vm8566_vm12, 0, %v467_v6 }
 0x1b9   : > { %7396 = vmatprep.mubr.msk.bf16.mxu0 %vm1827_vm9, %v8529_v27  ;;  %469 = vst [vmem:[#allocation3 + $0x3c] sm:$0x1] %v468_v24  ;;  %v522_v27 = vld [vmem:[#allocation3 + $0x44] sm:$0x1] }
 0x1ba   : > { %v523_v28 = vsel %vm8662_vm1, 0, %v522_v27  ;;  %v7605_v24 = vld [vmem:[%s10718_s4 + $0x78] sm:$0xff]  }
 0x1bb   : > { %524 = vst [vmem:[#allocation3 + $0x44] sm:$0x1] %v523_v28  ;;  %3790 = vmatpush1.bf16.msra.mxu1 %v7605_v24 }
 0x1bc   : > { %3791 = vmatprep.subr.bf16.mxu1 %v10723_v50 }
 0x1c0   : > { %7397 = vmatmul.mubr.msk.bf16.gmra.mrb[16].mxu0 %vm1827_vm9, %v8536_v31  ;;  %v531_v31 = vld [vmem:[#allocation3 + $0x68] sm:$0x1] }
 0x1c1   : > { %7400 = vmatprep.mubr.msk.bf16.mxu0 %vm1827_vm9, %v8543_v35  ;;  %v532_v34 = vsel %vm8662_vm1, 0, %v531_v31  ;;  %v528_v35 = vld [vmem:[#allocation3 + $0x5c] sm:$0x1] }
 0x1c2   : > { %533 = vst [vmem:[#allocation3 + $0x68] sm:$0x1] %v532_v34  ;;  %v529_v38 = vsel %vm8662_vm1, 0, %v528_v35  ;;  %v7607_v34 = vld [vmem:[%s10718_s4 + $0x80] sm:$0xff]  }
 0x1c3   : > { %530 = vst [vmem:[#allocation3 + $0x5c] sm:$0x1] %v529_v38  ;;  %v7608_v35 = vld [vmem:[%s10718_s4 + $0xe0] sm:$0xff]   ;;  %3792 = vmatpush1.bf16.msra.mxu1 %v7607_v34  ;;  %v2957_v34 = vld [vmem:[#allocation3 + $0x24] sm:$0xf] }
 0x1c4   : > { %4289 = vmatpush1.bf16.msra.mxu0 %v7608_v35  ;;  %3793 = vmatprep.subr.bf16.mxu1 %v10723_v50 }
 0x1c5   : > { %4290 = vmatprep.subr.bf16.mxu0 %v10723_v50 }
 0x1c7   : > { %3794 = vmatpush1.bf16.msra.mxu1 %v7609_v13 }
 0x1c8   : > { %7401 = vmatmul.mubr.msk.bf16.gmra.mrb[20].mxu0 %vm1827_vm9, %v8550_v22  ;;  %v480_v22 = vsel %vm8566_vm12, 0, %v479_v39  ;;  %3795 = vmatprep.subr.bf16.mxu1 %v10723_v50 }
 0x1c9   : > { %7404 = vmatprep.mubr.msk.bf16.mxu0 %vm1827_vm9, %v8557_v44  ;;  %481 = vst [vmem:[#allocation3 + $0x6c] sm:$0x1] %v480_v22  ;;  %v534_v44 = vld [vmem:[#allocation3 + $0x74] sm:$0x1]  ;;  %4291 = vmatpush1.bf16.msra.mxu0 %v7610_v62 }
 0x1ca   : > { %v535_v48 = vsel %vm8662_vm1, 0, %v534_v44  ;;  %4292 = vmatprep.subr.bf16.mxu0 %v10723_v50 }
 0x1cb   : > { %536 = vst [vmem:[#allocation3 + $0x74] sm:$0x1] %v535_v48 }
 0x1d0   : > { %7405 = vmatmul.mubr.msk.bf16.gmra.mrb[24].mxu0 %vm1827_vm9, %v1776_v11  ;;  %v486_v11 = vsel %vm8566_vm12, 0, %v485_v8 }
 0x1d1   : > { %7408 = vmatprep.mubr.msk.bf16.mxu0 %vm1827_vm9, %v1778_v42  ;;  %487 = vst [vmem:[#allocation3 + $0x84] sm:$0x1] %v486_v11  ;;  %v540_v42 = vld [vmem:[#allocation3 + $0x8c] sm:$0x1] }
 0x1d2   : > { %v541_v58 = vsel %vm8662_vm1, 0, %v540_v42 }
 0x1d3   : > { %542 = vst [vmem:[#allocation3 + $0x8c] sm:$0x1] %v541_v58 }
 0x1d8   : > { %7409 = vmatmul.mubr.msk.bf16.gmra.mrb[28].mxu0 %vm1827_vm9, %v1780_v0  ;;  %v556_v0 = vsel %vm8662_vm1, 0, %v555_v46 }
 0x1d9   : > { %557 = vst [vmem:[#allocation3 + $0xc8] sm:$0x1] %v556_v0 }
 0x273   : > { %v7382_v60 = vpop.f32.mrb[0].mxu0 }
 0x274   : > { %v2462_v15 = vadd.f32 %v7382_v60, %v8743_v40  ;;  %v2294_v16 = vpop.f32.mrb[1].mxu0 }
 0x275   : > { %v2460_v17 = vadd.f32 %v8743_v40, %v2294_v16  ;;  %v7383_v20 = vpop.f32.mrb[2].mxu0 }
 0x276   : > { %v2494_v1 = vmax.f32 %v2462_v15, 0.0  ;;  %v2463_v53 = vadd.f32 %v7383_v20, %v8743_v40  ;;  %v2297_v6 = vpop.f32.mrb[3].mxu0  ;;  %v7612_v20 = vld [vmem:[%s10718_s4 + $0xf0] sm:$0xff]  }
 0x277   : > { %v2492_v25 = vmax.f32 %v2460_v17, 0.0  ;;  %v2461_v27 = vadd.f32 %v8743_v40, %v2297_v6  ;;  %v7611_v17 = vld [vmem:[%s10718_s4 + $0x90] sm:$0xff]   ;;  %4293 = vmatpush1.bf16.msra.mxu0 %v7612_v20 }
 0x278   : > { %v7161_v28 = vpack.c.bf16 %v2494_v1, %v2494_v1  ;;  %v2495_v29 = vmax.f32 %v2463_v53, 0.0  ;;  %3796 = vmatpush1.bf16.msra.mxu1 %v7611_v17  ;;  %4294 = vmatprep.subr.bf16.mxu0 %v10723_v50 }
 0x279   : > { %v7159_v19 = vpack.c.bf16 %v2492_v25, %v2492_v25  ;;  %v2493_v30 = vmax.f32 %v2461_v27, 0.0  ;;  %v2964_v27 = vld [vmem:[#allocation3 + $0x30] sm:$0xf]  ;;  %3797 = vmatprep.subr.bf16.mxu1 %v10723_v50 }
 0x27a   : > { %v2638_v31 = vshrl.u32 %v7161_v28, 16  ;;  %v7162_v32 = vpack.c.bf16 %v2495_v29, %v2495_v29  ;;  %v2641_v36 = vshll.u32 %v7161_v28, 16 }
 0x27b   : > { %v2621_v38 = vshrl.u32 %v7159_v19, 16  ;;  %v2624_v49 = vshll.u32 %v7159_v19, 16  ;;  %v7160_v39 = vpack.c.bf16 %v2493_v30, %v2493_v30  ;;  %v7386_v22 = vpop.f32.mrb[4].mxu0 }
 0x27c   : > { %v2640_v51 = vrot.slane %v2638_v31, 7  ;;  %v2646_v44 = vshrl.u32 %v7162_v32, 16  ;;  %v2649_v45 = vshll.u32 %v7162_v32, 16  ;;  %v2466_v48 = vadd.f32 %v7386_v22, %v8743_v40  ;;  %v2310_v3 = vpop.f32.mrb[5].mxu0 }
 0x27d   : > { %v2623_v11 = vrot.slane %v2621_v38, 7  ;;  %v2629_v56 = vshrl.u32 %v7160_v39, 16  ;;  %v2632_v42 = vshll.u32 %v7160_v39, 16  ;;  %v2464_v52 = vadd.f32 %v8743_v40, %v2310_v3  ;;  %v7387_v58 = vpop.f32.mrb[6].mxu0 }
 0x27e   : > { %v2643_v57 = vor.u32 %v2641_v36, %v2640_v51  ;;  %v2644_v18 = vrot.slane %v2640_v51, 4  ;;  %v2648_v59 = vrot.slane %v2646_v44, 7  ;;  %v2498_v21 = vmax.f32 %v2466_v48, 0.0  ;;  %v2313_v54 = vpop.f32.mrb[7].mxu0  ;;  %v7614_v44 = vld [vmem:[%s10718_s4 + $0xf8] sm:$0xff]  }
 0x27f   : > { %v2626_v41 = vor.u32 %v2624_v49, %v2623_v11  ;;  %v2627_v63 = vrot.slane %v2623_v11, 4  ;;  %v2631_v37 = vrot.slane %v2629_v56, 7  ;;  %v2496_v46 = vmax.f32 %v2464_v52, 0.0  ;;  %4295 = vmatpush1.bf16.msra.mxu0 %v7614_v44 }
 0x280   : > { %v2951_v0 = vsel %vm8776_vm13, %v2643_v57, %v2950_v43  ;;  %v2651_v2 = vor.u32 %v2649_v45, %v2648_v59  ;;  %v2653_v5 = vrot.slane %v2648_v59, 4  ;;  %v7165_v23 = vpack.c.bf16 %v2498_v21, %v2498_v21  ;;  %v7613_v43 = vld [vmem:[%s10718_s4 + $0x98] sm:$0xff]   ;;  %v7615_v21 = vld [vmem:[%s10718_s4 + $0xa0] sm:$0xff]   ;;  %4296 = vmatprep.subr.bf16.mxu0 %v10723_v50 }
 0x281   : > { %2952 = vst [vmem:[#allocation3 + $0x18] sm:$0xf] %v2951_v0  ;;  %v2944_v9 = vsel %vm8776_vm13, %v2626_v41, %v2943_v55  ;;  %v2634_v10 = vor.u32 %v2632_v42, %v2631_v37  ;;  %v2636_v12 = vrot.slane %v2631_v37, 4  ;;  %v7163_v14 = vpack.c.bf16 %v2496_v46, %v2496_v46  ;;  %3798 = vmatpush1.bf16.msra.mxu1 %v7613_v43  ;;  %v2961_v37 = vld [vmem:[#allocation3 + $0x2c] sm:$0x1] }
 0x282   : > { %2945 = vst [vmem:[#allocation3 + $0xc] sm:$0xf] %v2944_v9  ;;  %v2652_v60 = vsel %vm7831_vm8, %v2644_v18, %v2651_v2  ;;  %v2955_v15 = vsel %vm8566_vm12, %v2653_v5, %v2954_v47  ;;  %v2672_v16 = vshrl.u32 %v7165_v23, 16  ;;  %v2675_v6 = vshll.u32 %v7165_v23, 16  ;;  %v2968_v47 = vld [vmem:[#allocation3 + $0x38] sm:$0x1]  ;;  %3799 = vmatprep.subr.bf16.mxu1 %v10723_v50 }
 0x283   : > { %2953 = vst.msk [vmem:[#allocation3 + $0x1c] sm:$0xf] %vm442_vm11, %v2652_v60  ;;  %2956 = vst [vmem:[#allocation3 + $0x20] sm:$0x1] %v2955_v15  ;;  %v2635_v1 = vsel %vm7831_vm8, %v2627_v63, %v2634_v10  ;;  %v2948_v53 = vsel %vm8566_vm12, %v2636_v12, %v2947_v26  ;;  %v2655_v24 = vshrl.u32 %v7163_v14, 16  ;;  %v7390_v4 = vpop.f32.mrb[8].mxu0  ;;  %v2467_v28 = vadd.f32 %v7387_v58, %v8743_v40 }
 0x284   : > { %2946 = vst.msk [vmem:[#allocation3 + $0x10] sm:$0xf] %vm442_vm11, %v2635_v1  ;;  %2949 = vst [vmem:[#allocation3 + $0x14] sm:$0x1] %v2948_v53  ;;  %v8811_v25 = vrot.slane %v2672_v16, 7  ;;  %v2465_v29 = vadd.f32 %v8743_v40, %v2313_v54  ;;  %v2470_v19 = vadd.f32 %v7390_v4, %v8743_v40  ;;  %v2326_v30 = vpop.f32.mrb[9].mxu0 }
 0x285   : > { %v8816_v31 = vrot.slane %v2655_v24, 7  ;;  %v2658_v32 = vshll.u32 %v7163_v14, 16  ;;  %v2468_v35 = vadd.f32 %v8743_v40, %v2326_v30  ;;  %v7391_v36 = vpop.f32.mrb[10].mxu0  ;;  %v2499_v39 = vmax.f32 %v2467_v28, 0.0  ;;  %v7616_v54 = vld [vmem:[%s10718_s4 + $0x100] sm:$0xff]   ;;  %3800 = vmatpush1.bf16.msra.mxu1 %v7615_v21 }
 0x286   : > { %v2677_v38 = vor.u32 %v2675_v6, %v8811_v25  ;;  %v2678_v49 = vrot.slane %v8811_v25, 4  ;;  %v2497_v22 = vmax.f32 %v2465_v29, 0.0  ;;  %v2329_v51 = vpop.f32.mrb[11].mxu0  ;;  %v2502_v3 = vmax.f32 %v2470_v19, 0.0  ;;  %v2978_v10 = vld [vmem:[#allocation3 + $0x48] sm:$0xf]  ;;  %4297 = vmatpush1.bf16.msra.mxu0 %v7616_v54  ;;  %3801 = vmatprep.subr.bf16.mxu1 %v10723_v50 }
 0x287   : > { %v2660_v45 = vor.u32 %v2658_v32, %v8816_v31  ;;  %v2661_v48 = vrot.slane %v8816_v31, 4  ;;  %v2500_v11 = vmax.f32 %v2468_v35, 0.0  ;;  %v7166_v56 = vpack.c.bf16 %v2499_v39, %v2499_v39  ;;  %v2971_v12 = vld [vmem:[#allocation3 + $0x3c] sm:$0xf]  ;;  %v7617_v29 = vld [vmem:[%s10718_s4 + $0xa8] sm:$0xff]   ;;  %4298 = vmatprep.subr.bf16.mxu0 %v10723_v50 }
 0x288   : > { %v2965_v55 = vsel %vm8776_vm13, %v2677_v38, %v2964_v27  ;;  %v7164_v42 = vpack.c.bf16 %v2497_v22, %v2497_v22  ;;  %v2471_v52 = vadd.f32 %v7391_v36, %v8743_v40  ;;  %v7169_v57 = vpack.c.bf16 %v2502_v3, %v2502_v3  ;;  %v7618_v19 = vld [vmem:[%s10718_s4 + $0x108] sm:$0xff]   ;;  %v2975_v21 = vld [vmem:[#allocation3 + $0x44] sm:$0x1] }
 0x289   : > { %2966 = vst [vmem:[#allocation3 + $0x30] sm:$0xf] %v2965_v55  ;;  %v2958_v58 = vsel %vm8776_vm13, %v2660_v45, %v2957_v34  ;;  %v7167_v18 = vpack.c.bf16 %v2500_v11, %v2500_v11  ;;  %v2469_v59 = vadd.f32 %v8743_v40, %v2329_v51  ;;  %v2680_v13 = vshrl.u32 %v7166_v56, 16  ;;  %3802 = vmatpush1.bf16.msra.mxu1 %v7617_v29  ;;  %v7619_v55 = vld [vmem:[%s10718_s4 + $0xb0] sm:$0xff]  }
 0x28a   : > { %2959 = vst [vmem:[#allocation3 + $0x24] sm:$0xf] %v2958_v58  ;;  %v2683_v62 = vshll.u32 %v7166_v56, 16  ;;  %v2663_v41 = vshrl.u32 %v7164_v42, 16  ;;  %v2666_v63 = vshll.u32 %v7164_v42, 16  ;;  %v2706_v46 = vshrl.u32 %v7169_v57, 16  ;;  %4299 = vmatpush1.bf16.msra.mxu0 %v7618_v19  ;;  %3803 = vmatprep.subr.bf16.mxu1 %v10723_v50 }
 0x28b   : > { %v2709_v0 = vshll.u32 %v7169_v57, 16  ;;  %v2689_v2 = vshrl.u32 %v7167_v18, 16  ;;  %v2692_v5 = vshll.u32 %v7167_v18, 16  ;;  %v7394_v26 = vpop.f32.mrb[12].mxu0  ;;  %v2682_v23 = vrot.slane %v2680_v13, 7  ;;  %v8879_v43 = vld [vmem:[#allocation3 + $0x18] sm:$0xff]   ;;  %4300 = vmatprep.subr.bf16.mxu0 %v10723_v50 }
 0x28c   : > { %v2665_v9 = vrot.slane %v2663_v41, 7  ;;  %v2503_v14 = vmax.f32 %v2471_v52, 0.0  ;;  %v2501_v60 = vmax.f32 %v2469_v59, 0.0  ;;  %v2342_v15 = vpop.f32.mrb[13].mxu0  ;;  %v8845_v16 = vrot.slane %v2706_v46, 7  ;;  %v7620_v56 = vld [vmem:[%s10718_s4 + $0x110] sm:$0xff]  }
 0x28d   : > { %v8847_v17 = vrot.slane %v2689_v2, 7  ;;  %v2474_v20 = vadd.f32 %v7394_v26, %v8743_v40  ;;  %v2472_v1 = vadd.f32 %v8743_v40, %v2342_v15  ;;  %v7395_v53 = vpop.f32.mrb[14].mxu0  ;;  %v2685_v6 = vor.u32 %v2683_v62, %v2682_v23  ;;  %v8881_v44 = vld [vmem:[#allocation3 + $0x20] ss:$0 sps:$4 sm:$0xff]   ;;  %v2982_v59 = vld [vmem:[#allocation3 + $0x50] sm:$0x1]  ;;  %3804 = vmatpush1.bf16.msra.mxu1 %v7619_v55 }
 0x28e   : > { %v2687_v24 = vrot.slane %v2682_v23, 4  ;;  %v2668_v4 = vor.u32 %v2666_v63, %v2665_v9  ;;  %v2670_v27 = vrot.slane %v2665_v9, 4  ;;  %v2345_v28 = vpop.f32.mrb[15].mxu0  ;;  %v2711_v30 = vor.u32 %v2709_v0, %v8845_v16  ;;  %4301 = vmatpush1.bf16.msra.mxu0 %v7620_v56  ;;  %3805 = vmatprep.subr.bf16.mxu1 %v10723_v50 }
 0x28f   : > { %v2712_v31 = vrot.slane %v8845_v16, 4  ;;  %v2694_v32 = vor.u32 %v2692_v5, %v8847_v17  ;;  %v2695_v34 = vrot.slane %v8847_v17, 4  ;;  %v2686_v35 = vsel %vm7831_vm8, %v2678_v49, %v2685_v6  ;;  %v7621_v5 = vld [vmem:[%s10718_s4 + $0xb8] sm:$0xff]   ;;  %v8909_v6 = vld [vmem:[#allocation3 + $0xc] sm:$0xff]   ;;  %4302 = vmatprep.subr.bf16.mxu0 %v10723_v50 }
 0x290   : > { %v2969_v36 = vsel %vm8566_vm12, %v2687_v24, %v2968_v47  ;;  %v2669_v38 = vsel %vm7831_vm8, %v2661_v48, %v2668_v4  ;;  %v2962_v39 = vsel %vm8566_vm12, %v2670_v27, %v2961_v37  ;;  %2967 = vst.msk [vmem:[#allocation3 + $0x34] sm:$0xf] %vm442_vm11, %v2686_v35  ;;  %v2979_v25 = vsel %vm8776_vm13, %v2711_v30, %v2978_v10  ;;  %v2985_v35 = vld [vmem:[#allocation3 + $0x54] sm:$0xf] }
 0x291   : > { %2970 = vst [vmem:[#allocation3 + $0x38] sm:$0x1] %v2969_v36  ;;  %2960 = vst.msk [vmem:[#allocation3 + $0x28] sm:$0xf] %vm442_vm11, %v2669_v38  ;;  %v2972_v49 = vsel %vm8776_vm13, %v2694_v32, %v2971_v12  ;;  %v7170_v22 = vpack.c.bf16 %v2503_v14, %v2503_v14  ;;  %v7168_v51 = vpack.c.bf16 %v2501_v60, %v2501_v60  ;;  %v2506_v45 = vmax.f32 %v2474_v20, 0.0  ;;  %v7622_v14 = vld [vmem:[%s10718_s4 + $0x118] sm:$0xff]  }
 0x292   : > { %2963 = vst [vmem:[#allocation3 + $0x2c] sm:$0x1] %v2962_v39  ;;  %2980 = vst [vmem:[#allocation3 + $0x48] sm:$0xf] %v2979_v25  ;;  %v2504_v48 = vmax.f32 %v2472_v1, 0.0  ;;  %v2475_v3 = vadd.f32 %v7395_v53, %v8743_v40  ;;  %v2473_v11 = vadd.f32 %v8743_v40, %v2345_v28  ;;  %v3511_v46 = vrot.slane %v8879_v43, 1  ;;  %3806 = vmatpush1.bf16.msra.mxu1 %v7621_v5 }
 0x293   : > { %2973 = vst [vmem:[#allocation3 + $0x3c] sm:$0xf] %v2972_v49  ;;  %v2714_v42 = vshrl.u32 %v7170_v22, 16  ;;  %v2717_v52 = vshll.u32 %v7170_v22, 16  ;;  %v2697_v58 = vshrl.u32 %v7168_v51, 16  ;;  %v2700_v57 = vshll.u32 %v7168_v51, 16  ;;  %4303 = vmatpush1.bf16.msra.mxu0 %v7622_v14  ;;  %4019 = vmatprep.subr.bf16.mxu1 %v10723_v50 }
 0x294   : > { %v8891_v18 = vpop.f32.mrb[16].mxu0  ;;  %v7173_v54 = vpack.c.bf16 %v2506_v45, %v2506_v45  ;;  %v7171_v13 = vpack.c.bf16 %v2504_v48, %v2504_v48  ;;  %v2507_v62 = vmax.f32 %v2475_v3, 0.0  ;;  %v2505_v41 = vmax.f32 %v2473_v11, 0.0  ;;  %v2992_v53 = vld [vmem:[#allocation3 + $0x60] sm:$0xf]  ;;  %6035 = vmatprep.subr.bf16.mxu0 %v10723_v50 }
 0x295   : > { %v8895_v63 = vpop.f32.mrb[17].mxu0  ;;  %v2716_v47 = vrot.slane %v2714_v42, 7  ;;  %v2699_v37 = vrot.slane %v2697_v58, 7  ;;  %v3512_v0 = vrot.slane %v8881_v44, 1  ;;  %v8925_v36 = vld [vmem:[#allocation3 + $0x14] ss:$0 sps:$4 sm:$0xff]   ;;  %v2478_v58 = vadd.f32 %v8891_v18, %v8743_v40 }
 0x296   : > { %v8899_v2 = vpop.f32.mrb[18].mxu0  ;;  %v2740_v26 = vshrl.u32 %v7173_v54, 16  ;;  %v2743_v23 = vshll.u32 %v7173_v54, 16  ;;  %v2723_v9 = vshrl.u32 %v7171_v13, 16  ;;  %v2726_v10 = vshll.u32 %v7171_v13, 16 }
 0x297   : > { %v8904_v12 = vpop.f32.mrb[19].mxu0  ;;  %v2719_v60 = vor.u32 %v2717_v52, %v2716_v47  ;;  %v2721_v15 = vrot.slane %v2716_v47, 4  ;;  %v2702_v20 = vor.u32 %v2700_v57, %v2699_v37  ;;  %v2704_v1 = vrot.slane %v2699_v37, 4  ;;  %v2996_v48 = vld [vmem:[#allocation3 + $0x68] sm:$0x1] }
 0x298   : > { %v2742_v24 = vrot.slane %v2740_v26, 7  ;;  %v2725_v4 = vrot.slane %v2723_v9, 7  ;;  %v7174_v27 = vpack.c.bf16 %v2507_v62, %v2507_v62  ;;  %v7172_v28 = vpack.c.bf16 %v2505_v41, %v2505_v41 }
 0x299   : > { %v2720_v29 = vsel %vm7831_vm8, %v2712_v31, %v2719_v60  ;;  %v2983_v19 = vsel %vm8566_vm12, %v2721_v15, %v2982_v59  ;;  %v2703_v30 = vsel %vm7831_vm8, %v2695_v34, %v2702_v20  ;;  %v2976_v32 = vsel %vm8566_vm12, %v2704_v1, %v2975_v21  ;;  %v2989_v59 = vld [vmem:[#allocation3 + $0x5c] sm:$0x1] }
 0x29a   : > { %2981 = vst.msk [vmem:[#allocation3 + $0x4c] sm:$0xf] %vm442_vm11, %v2720_v29  ;;  %2984 = vst [vmem:[#allocation3 + $0x50] sm:$0x1] %v2983_v19  ;;  %v2745_v16 = vor.u32 %v2743_v23, %v2742_v24  ;;  %v2746_v31 = vrot.slane %v2742_v24, 4  ;;  %v2728_v38 = vor.u32 %v2726_v10, %v2725_v4  ;;  %v2729_v39 = vrot.slane %v2725_v4, 4 }
 0x29b   : > { %2974 = vst.msk [vmem:[#allocation3 + $0x40] sm:$0xf] %vm442_vm11, %v2703_v30  ;;  %2977 = vst [vmem:[#allocation3 + $0x44] sm:$0x1] %v2976_v32  ;;  %v2748_v17 = vshrl.u32 %v7174_v27, 16  ;;  %v2751_v34 = vshll.u32 %v7174_v27, 16  ;;  %v8938_v3 = vsel %vm1616_vm5, %v3511_v46, %v3512_v0  ;;  %v2476_v62 = vadd.f32 %v8743_v40, %v8895_v63 }
 0x29c   : > { %v2731_v25 = vshrl.u32 %v7172_v28, 16  ;;  %v2734_v49 = vshll.u32 %v7172_v28, 16  ;;  %v8929_v22 = vpop.f32.mrb[20].mxu0  ;;  %v2993_v51 = vsel %vm8776_vm13, %v2745_v16, %v2992_v53  ;;  %v2986_v45 = vsel %vm8776_vm13, %v2728_v38, %v2985_v35  ;;  %6937 = vmatprep.mubr.msk.bf16.mxu0 %vm3559_vm3, %v8938_v3  ;;  %v8979_v4 = vld [vmem:[#allocation3 + $0x30] sm:$0xff]   ;;  %v3006_v35 = vld [vmem:[#allocation3 + $0x78] sm:$0xf] }
 0x29d   : > { %v3508_v11 = vrot.slane %v8909_v6, 1  ;;  %v8941_v55 = vpop.f32.mrb[21].mxu0  ;;  %2994 = vst [vmem:[#allocation3 + $0x60] sm:$0xf] %v2993_v51  ;;  %2987 = vst [vmem:[#allocation3 + $0x54] sm:$0xf] %v2986_v45  ;;  %v2479_v53 = vadd.f32 %v8899_v2, %v8743_v40  ;;  %v2477_v24 = vadd.f32 %v8743_v40, %v8904_v12 }
 0x29e   : > { %v2750_v56 = vrot.slane %v2748_v17, 7  ;;  %v2733_v42 = vrot.slane %v2731_v25, 7  ;;  %v3509_v52 = vrot.slane %v8925_v36, 1  ;;  %v8948_v57 = vpop.f32.mrb[22].mxu0  ;;  %v3278_v21 = vshrl.u32 %v8879_v43, 16 }
 0x29f   : > { %v3280_v54 = vshll.u32 %v8879_v43, 16  ;;  %v3285_v13 = vshll.u32 %v8881_v44, 16  ;;  %v8955_v41 = vpop.f32.mrb[23].mxu0  ;;  %v2510_v5 = vmax.f32 %v2478_v58, 0.0  ;;  %v2508_v60 = vmax.f32 %v2476_v62, 0.0 }
 0x2a0   : > { %v2753_v47 = vor.u32 %v2751_v34, %v2750_v56  ;;  %v2755_v37 = vrot.slane %v2750_v56, 4  ;;  %v2736_v46 = vor.u32 %v2734_v49, %v2733_v42  ;;  %v2738_v0 = vrot.slane %v2733_v42, 4  ;;  %v2999_v49 = vld [vmem:[#allocation3 + $0x6c] sm:$0xf] }
 0x2a1   : > { %v8958_v18 = vsel %vm1616_vm5, %v3508_v11, %v3509_v52  ;;  %v3282_v26 = vrot.slane %v3280_v54, 1  ;;  %v3287_v23 = vrot.slane %v3285_v13, 1  ;;  %v7177_v10 = vpack.c.bf16 %v2510_v5, %v2510_v5 }
 0x2a2   : > { %v2754_v43 = vsel %vm7831_vm8, %v2746_v31, %v2753_v47  ;;  %v2997_v44 = vsel %vm8566_vm12, %v2755_v37, %v2996_v48  ;;  %v2737_v63 = vsel %vm7831_vm8, %v2729_v39, %v2736_v46  ;;  %v2990_v9 = vsel %vm8566_vm12, %v2738_v0, %v2989_v59  ;;  %6857 = vmatprep.mubr.msk.bf16.mxu1 %vm3559_vm3, %v8958_v18  ;;  %v8994_v59 = vld [vmem:[#allocation3 + $0x38] ss:$0 sps:$4 sm:$0xff]   ;;  %v3010_v0 = vld [vmem:[#allocation3 + $0x80] sm:$0x1] }
 0x2a3   : > { %2995 = vst.msk [vmem:[#allocation3 + $0x64] sm:$0xf] %vm442_vm11, %v2754_v43  ;;  %2998 = vst [vmem:[#allocation3 + $0x68] sm:$0x1] %v2997_v44  ;;  %v3283_v14 = vor.u32 %v3282_v26, %v3278_v21  ;;  %v3266_v15 = vshrl.u32 %v8909_v6, 16  ;;  %v3268_v20 = vshll.u32 %v8909_v6, 16  ;;  %v7175_v30 = vpack.c.bf16 %v2508_v60, %v2508_v60 }
 0x2a4   : > { %2988 = vst.msk [vmem:[#allocation3 + $0x58] sm:$0xf] %vm442_vm11, %v2737_v63  ;;  %2991 = vst [vmem:[#allocation3 + $0x5c] sm:$0x1] %v2990_v9  ;;  %v3273_v1 = vshll.u32 %v8925_v36, 16  ;;  %v8981_v27 = vpop.f32.mrb[24].mxu0  ;;  %v2482_v34 = vadd.f32 %v8929_v22, %v8743_v40  ;;  %v2480_v60 = vadd.f32 %v8743_v40, %v8941_v55 }
 0x2a5   : > { %v2774_v28 = vshrl.u32 %v7177_v10, 16  ;;  %v2777_v29 = vshll.u32 %v7177_v10, 16  ;;  %v3288_v19 = vsel %vm1363_vm6, %v3283_v14, %v3287_v23  ;;  %v8984_v32 = vpop.f32.mrb[25].mxu0  ;;  %v3270_v36 = vrot.slane %v3268_v20, 1  ;;  %v8996_v21 = vld [vmem:[#allocation3 + $0x24] sm:$0xff]  }
 0x2a6   : > { %3473 = vrot.lane.b32.xlu0 %v3288_v19, %s7735_s17  ;;  %v3275_v2 = vrot.slane %v3273_v1, 1  ;;  %v2511_v16 = vmax.f32 %v2479_v53, 0.0  ;;  %v2509_v31 = vmax.f32 %v2477_v24, 0.0  ;;  %v8987_v12 = vpop.f32.mrb[26].mxu0  ;;  %v2757_v39 = vshrl.u32 %v7175_v30, 16 }
 0x2a7   : > { %v2776_v38 = vrot.slane %v2774_v28, 7  ;;  %v2760_v17 = vshll.u32 %v7175_v30, 16  ;;  %v8991_v25 = vpop.f32.mrb[27].mxu0  ;;  %v3271_v51 = vor.u32 %v3270_v36, %v3266_v15  ;;  %v3302_v11 = vshrl.u32 %v8979_v4, 16  ;;  %v3003_v26 = vld [vmem:[#allocation3 + $0x74] sm:$0x1] }
 0x2a8   : > { %v7178_v45 = vpack.c.bf16 %v2511_v16, %v2511_v16  ;;  %v7176_v48 = vpack.c.bf16 %v2509_v31, %v2509_v31  ;;  %v2759_v52 = vrot.slane %v2757_v39, 7  ;;  %v2514_v58 = vmax.f32 %v2482_v34, 0.0 }
 0x2a9   : > { %v2779_v56 = vor.u32 %v2777_v29, %v2776_v38  ;;  %v2780_v42 = vrot.slane %v2776_v38, 4  ;;  %v3276_v54 = vsel %vm1363_vm6, %v3271_v51, %v3275_v2  ;;  %v3304_v63 = vshll.u32 %v8979_v4, 16  ;;  %v9013_v29 = vld [vmem:[#allocation3 + $0x2c] ss:$0 sps:$4 sm:$0xff]  }
 0x2aa   : > { %v2782_v13 = vshrl.u32 %v7178_v45, 16  ;;  %v2785_v22 = vshll.u32 %v7178_v45, 16  ;;  %v2765_v62 = vshrl.u32 %v7176_v48, 16  ;;  %v2762_v37 = vor.u32 %v2760_v17, %v2759_v52  ;;  %3471 = vrot.lane.b32.xlu1 %v3276_v54, %s7735_s17  ;;  %v3020_v45 = vld [vmem:[#allocation3 + $0x90] sm:$0xf] }
 0x2ab   : > { %v3007_v47 = vsel %vm8776_vm13, %v2779_v56, %v3006_v35  ;;  %v2763_v46 = vrot.slane %v2759_v52, 4  ;;  %v2768_v5 = vshll.u32 %v7176_v48, 16  ;;  %v7181_v44 = vpack.c.bf16 %v2514_v58, %v2514_v58  ;;  %v9003_v9 = vpop.f32.mrb[28].mxu0  ;;  %v9039_v58 = vld [vmem:[#allocation3 + $0x48] sm:$0xff]  }
 0x2ac   : > { %3008 = vst [vmem:[#allocation3 + $0x78] sm:$0xf] %v3007_v47  ;;  %v2784_v23 = vrot.slane %v2782_v13, 7  ;;  %v2767_v43 = vrot.slane %v2765_v62, 7  ;;  %v3000_v10 = vsel %vm8776_vm13, %v2762_v37, %v2999_v49  ;;  %v3309_v14 = vshll.u32 %v8994_v59, 16  ;;  %v9011_v20 = vpop.f32.mrb[29].mxu0 }
 0x2ad   : > { %v3290_v15 = vshrl.u32 %v8996_v21, 16  ;;  %3001 = vst [vmem:[#allocation3 + $0x6c] sm:$0xf] %v3000_v10  ;;  %v9015_v19 = vpop.f32.mrb[30].mxu0  ;;  %v2808_v30 = vshrl.u32 %v7181_v44, 16  ;;  %v2811_v35 = vshll.u32 %v7181_v44, 16  ;;  %v2483_v56 = vadd.f32 %v8948_v57, %v8743_v40 }
 0x2ae   : > { %v2787_v1 = vor.u32 %v2785_v22, %v2784_v23  ;;  %v2789_v53 = vrot.slane %v2784_v23, 4  ;;  %v2770_v24 = vor.u32 %v2768_v5, %v2767_v43  ;;  %v2772_v28 = vrot.slane %v2767_v43, 4  ;;  %v9017_v16 = vpop.f32.mrb[31].mxu0  ;;  %v9044_v62 = vld [vmem:[#allocation3 + $0x50] ss:$0 sps:$4 sm:$0xff]  }
 0x2af   : > { %v3306_v36 = vrot.slane %v3304_v63, 1  ;;  %v3311_v2 = vrot.slane %v3309_v14, 1  ;;  %v9029_v17 = vrot.slane %v2808_v30, 7  ;;  %v2512_v49 = vmax.f32 %v2480_v60, 0.0  ;;  %v3013_v10 = vld [vmem:[#allocation3 + $0x84] sm:$0xf] }
 0x2b0   : > { %v2788_v55 = vsel %vm7831_vm8, %v2780_v42, %v2787_v1  ;;  %v3011_v31 = vsel %vm8566_vm12, %v2789_v53, %v3010_v0  ;;  %v2771_v38 = vsel %vm7831_vm8, %v2763_v46, %v2770_v24  ;;  %v3004_v39 = vsel %vm8566_vm12, %v2772_v28, %v3003_v26 }
 0x2b1   : > { %3009 = vst.msk [vmem:[#allocation3 + $0x7c] sm:$0xf] %vm442_vm11, %v2788_v55  ;;  %3012 = vst [vmem:[#allocation3 + $0x80] sm:$0x1] %v3011_v31  ;;  %v3307_v34 = vor.u32 %v3306_v36, %v3302_v11  ;;  %v3292_v51 = vshll.u32 %v8996_v21, 16  ;;  %v3297_v48 = vshll.u32 %v9013_v29, 16  ;;  %v2481_v42 = vadd.f32 %v8743_v40, %v8955_v41 }
 0x2b2   : > { %3002 = vst.msk [vmem:[#allocation3 + $0x70] sm:$0xf] %vm442_vm11, %v2771_v38  ;;  %3005 = vst [vmem:[#allocation3 + $0x74] sm:$0x1] %v3004_v39  ;;  %v2486_v52 = vadd.f32 %v8981_v27, %v8743_v40  ;;  %v2813_v54 = vor.u32 %v2811_v35, %v9029_v17  ;;  %v2814_v11 = vrot.slane %v9029_v17, 4  ;;  %v7179_v22 = vpack.c.bf16 %v2512_v49, %v2512_v49  ;;  %v9054_v49 = vld [vmem:[#allocation3 + $0x3c] sm:$0xff]  }
 0x2b3   : > { %v3312_v13 = vsel %vm1363_vm6, %v3307_v34, %v3311_v2  ;;  %v3294_v57 = vrot.slane %v3292_v51, 1  ;;  %v3299_v47 = vrot.slane %v3297_v48, 1  ;;  %v2515_v37 = vmax.f32 %v2483_v56, 0.0  ;;  %v3017_v55 = vld [vmem:[#allocation3 + $0x8c] sm:$0x1] }
 0x2b4   : > { %3477 = vrot.lane.b32.xlu0 %v3312_v13, %s7735_s17  ;;  %v2513_v41 = vmax.f32 %v2481_v42, 0.0  ;;  %v3021_v27 = vsel %vm8776_vm13, %v2813_v54, %v3020_v45  ;;  %v2791_v46 = vshrl.u32 %v7179_v22, 16  ;;  %v2794_v0 = vshll.u32 %v7179_v22, 16  ;;  %v3034_v22 = vld [vmem:[#allocation3 + $0xa8] sm:$0xf] }
 0x2b5   : > { %v2518_v5 = vmax.f32 %v2486_v52, 0.0  ;;  %3022 = vst [vmem:[#allocation3 + $0x90] sm:$0xf] %v3021_v27  ;;  %v3295_v26 = vor.u32 %v3294_v57, %v3290_v15  ;;  %v7182_v23 = vpack.c.bf16 %v2515_v37, %v2515_v37  ;;  %v3326_v44 = vshrl.u32 %v9039_v58, 16  ;;  %v3024_v15 = vld [vmem:[#allocation3 + $0x98] sm:$0x1] }
 0x2b6   : > { %v7180_v43 = vpack.c.bf16 %v2513_v41, %v2513_v41  ;;  %v2793_v63 = vrot.slane %v2791_v46, 7  ;;  %v3328_v60 = vshll.u32 %v9039_v58, 16  ;;  %v3333_v1 = vshll.u32 %v9044_v62, 16  ;;  %v9062_v57 = vld [vmem:[#allocation3 + $0x44] ss:$0 sps:$4 sm:$0xff]  }
 0x2b7   : > { %v7185_v14 = vpack.c.bf16 %v2518_v5, %v2518_v5  ;;  %v3300_v53 = vsel %vm1363_vm6, %v3295_v26, %v3299_v47  ;;  %v2816_v24 = vshrl.u32 %v7182_v23, 16  ;;  %v2819_v28 = vshll.u32 %v7182_v23, 16  ;;  %v9066_v46 = vld [vmem:[#allocation3 + $0x60] sm:$0xff]  }
 0x2b8   : > { %v2799_v30 = vshrl.u32 %v7180_v43, 16  ;;  %v2796_v35 = vor.u32 %v2794_v0, %v2793_v63  ;;  %v2797_v36 = vrot.slane %v2793_v63, 4  ;;  %3475 = vrot.lane.b32.xlu1 %v3300_v53, %s7735_s17  ;;  %v2802_v2 = vshll.u32 %v7180_v43, 16  ;;  %v9082_v63 = vld [vmem:[#allocation3 + $0x68] ss:$0 sps:$4 sm:$0xff]  }
 0x2b9   : > { %v2842_v31 = vshrl.u32 %v7185_v14, 16  ;;  %v2818_v38 = vrot.slane %v2816_v24, 7  ;;  %v2845_v17 = vshll.u32 %v7185_v14, 16  ;;  %v3330_v34 = vrot.slane %v3328_v60, 1 }
 0x2ba   : > { %v2801_v39 = vrot.slane %v2799_v30, 7  ;;  %v3014_v51 = vsel %vm8776_vm13, %v2796_v35, %v3013_v10  ;;  %v3335_v48 = vrot.slane %v3333_v1, 1  ;;  %v2484_v56 = vadd.f32 %v8743_v40, %v8984_v32 }
 0x2bb   : > { %v9058_v45 = vrot.slane %v2842_v31, 7  ;;  %3015 = vst [vmem:[#allocation3 + $0x84] sm:$0xf] %v3014_v51  ;;  %v2821_v42 = vor.u32 %v2819_v28, %v2818_v38  ;;  %v2823_v52 = vrot.slane %v2818_v38, 4  ;;  %v3331_v41 = vor.u32 %v3330_v34, %v3326_v44 }
 0x2bc   : > { %v2804_v54 = vor.u32 %v2802_v2, %v2801_v39  ;;  %v2806_v13 = vrot.slane %v2801_v39, 4  ;;  %v2516_v27 = vmax.f32 %v2484_v56, 0.0  ;;  %v3314_v44 = vshrl.u32 %v9054_v49, 16  ;;  %v3027_v39 = vld [vmem:[#allocation3 + $0x9c] sm:$0xf] }
 0x2bd   : > { %v2847_v47 = vor.u32 %v2845_v17, %v9058_v45  ;;  %v2848_v37 = vrot.slane %v9058_v45, 4  ;;  %v2822_v0 = vsel %vm7831_vm8, %v2814_v11, %v2821_v42  ;;  %v3025_v32 = vsel %vm8566_vm12, %v2823_v52, %v3024_v15  ;;  %v9100_v52 = vld [vmem:[#allocation3 + $0x54] sm:$0xff]  }
 0x2be   : > { %v2805_v5 = vsel %vm7831_vm8, %v2797_v36, %v2804_v54  ;;  %v3018_v26 = vsel %vm8566_vm12, %v2806_v13, %v3017_v55  ;;  %3023 = vst.msk [vmem:[#allocation3 + $0x94] sm:$0xf] %vm442_vm11, %v2822_v0  ;;  %3026 = vst [vmem:[#allocation3 + $0x98] sm:$0x1] %v3025_v32  ;;  %v3336_v11 = vsel %vm1363_vm6, %v3331_v41, %v3335_v48  ;;  %v3316_v10 = vshll.u32 %v9054_v49, 16 }
 0x2bf   : > { %3016 = vst.msk [vmem:[#allocation3 + $0x88] sm:$0xf] %vm442_vm11, %v2805_v5  ;;  %3019 = vst [vmem:[#allocation3 + $0x8c] sm:$0x1] %v3018_v26  ;;  %v3035_v23 = vsel %vm8776_vm13, %v2847_v47, %v3034_v22  ;;  %v7183_v43 = vpack.c.bf16 %v2516_v27, %v2516_v27  ;;  %3481 = vrot.lane.b32.xlu0 %v3336_v11, %s7735_s17  ;;  %v3321_v14 = vshll.u32 %v9062_v57, 16  ;;  %v3350_v30 = vshrl.u32 %v9066_v46, 16 }
 0x2c0   : > { %3036 = vst [vmem:[#allocation3 + $0xa8] sm:$0xf] %v3035_v23  ;;  %v2487_v60 = vadd.f32 %v8987_v12, %v8743_v40  ;;  %v2485_v1 = vadd.f32 %v8743_v40, %v8991_v25  ;;  %v2490_v28 = vadd.f32 %v9003_v9, %v8743_v40  ;;  %v3318_v35 = vrot.slane %v3316_v10, 1  ;;  %v7711_v40 = vld [vmem:[%s10717_s3] ss:$0 sm:$0xff] }
 0x2c1   : > { %v2825_v53 = vshrl.u32 %v7183_v43, 16  ;;  %v2828_v24 = vshll.u32 %v7183_v43, 16  ;;  %v3323_v36 = vrot.slane %v3321_v14, 1  ;;  %v3352_v38 = vshll.u32 %v9066_v46, 16  ;;  %v3038_v27 = vld [vmem:[#allocation3 + $0xb0] sm:$0x1] }
 0x2c2   : > { %v2519_v15 = vmax.f32 %v2487_v60, 0.0  ;;  %v2517_v2 = vmax.f32 %v2485_v1, 0.0  ;;  %v2522_v31 = vmax.f32 %v2490_v28, 0.0  ;;  %v3357_v12 = vshll.u32 %v9082_v63, 16  ;;  %v3031_v32 = vld [vmem:[#allocation3 + $0xa4] sm:$0x1] }
 0x2c3   : > { %v2827_v55 = vrot.slane %v2825_v53, 7  ;;  %v3319_v17 = vor.u32 %v3318_v35, %v3314_v44  ;;  %v2488_v9 = vadd.f32 %v7711_v40, %v9011_v20  ;;  %v3354_v42 = vrot.slane %v3352_v38, 1  ;;  %v3048_v11 = vld [vmem:[#allocation3 + $0xc0] sm:$0xf]  ;;  %v9106_v10 = vld [vmem:[#allocation3 + $0x5c] ss:$0 sps:$4 sm:$0xff]  }
 0x2c4   : > { %v7186_v25 = vpack.c.bf16 %v2519_v15, %v2519_v15  ;;  %v7184_v34 = vpack.c.bf16 %v2517_v2, %v2517_v2  ;;  %v7189_v56 = vpack.c.bf16 %v2522_v31, %v2522_v31  ;;  %v3359_v44 = vrot.slane %v3357_v12, 1  ;;  %v9112_v15 = vld [vmem:[#allocation3 + $0x78] sm:$0xff]   ;;  %v9117_v38 = vld [vmem:[#allocation3 + $0x80] ss:$0 sps:$4 sm:$0xff]  }
 0x2c5   : > { %v2830_v51 = vor.u32 %v2828_v24, %v2827_v55  ;;  %v2831_v48 = vrot.slane %v2827_v55, 4  ;;  %v3324_v54 = vsel %vm1363_vm6, %v3319_v17, %v3323_v36  ;;  %v3355_v43 = vor.u32 %v3354_v42, %v3350_v30 }
 0x2c6   : > { %v2850_v13 = vshrl.u32 %v7186_v25, 16  ;;  %v2853_v22 = vshll.u32 %v7186_v25, 16  ;;  %v2833_v47 = vshrl.u32 %v7184_v34, 16  ;;  %3479 = vrot.lane.b32.xlu1 %v3324_v54, %s7735_s17  ;;  %v2836_v0 = vshll.u32 %v7184_v34, 16  ;;  %v9130_v34 = vld [vmem:[#allocation3 + $0x6c] sm:$0xff]  }
 0x2c7   : > { %v3028_v41 = vsel %vm8776_vm13, %v2830_v51, %v3027_v39  ;;  %v2876_v20 = vshrl.u32 %v7189_v56, 16  ;;  %v2879_v5 = vshll.u32 %v7189_v56, 16  ;;  %v2520_v60 = vmax.f32 %v2488_v9, 0.0 }
 0x2c8   : > { %3029 = vst [vmem:[#allocation3 + $0x9c] sm:$0xf] %v3028_v41  ;;  %v2852_v26 = vrot.slane %v2850_v13, 7  ;;  %v2835_v23 = vrot.slane %v2833_v47, 7  ;;  %v3338_v1 = vshrl.u32 %v9100_v52, 16  ;;  %v3340_v53 = vshll.u32 %v9100_v52, 16 }
 0x2c9   : > { %v9108_v14 = vrot.slane %v2876_v20, 7  ;;  %v3360_v55 = vsel %vm1363_vm6, %v3355_v43, %v3359_v44  ;;  %v7187_v31 = vpack.c.bf16 %v2520_v60, %v2520_v60  ;;  %v2491_v56 = vadd.f32 %v7711_v40, %v9015_v19  ;;  %v9140_v13 = vld [vmem:[#allocation3 + $0x74] ss:$0 sps:$4 sm:$0xff]  }
 0x2ca   : > { %v2855_v24 = vor.u32 %v2853_v22, %v2852_v26  ;;  %v2857_v28 = vrot.slane %v2852_v26, 4  ;;  %v2838_v35 = vor.u32 %v2836_v0, %v2835_v23  ;;  %v2840_v36 = vrot.slane %v2835_v23, 4  ;;  %3485 = vrot.lane.b32.xlu0 %v3360_v55, %s7735_s17  ;;  %v9144_v0 = vld [vmem:[#allocation3 + $0x90] sm:$0xff]   ;;  %v9158_v55 = vld [vmem:[#allocation3 + $0x8c] ss:$0 sps:$4 sm:$0xff]  }
 0x2cb   : > { %v2881_v2 = vor.u32 %v2879_v5, %v9108_v14  ;;  %v2882_v30 = vrot.slane %v9108_v14, 4  ;;  %v2862_v9 = vshll.u32 %v7187_v31, 16  ;;  %v3342_v51 = vrot.slane %v3340_v53, 1  ;;  %v9149_v53 = vld [vmem:[#allocation3 + $0x98] ss:$0 sps:$4 sm:$0xff]  }
 0x2cc   : > { %v2856_v12 = vsel %vm7831_vm8, %v2848_v37, %v2855_v24  ;;  %v3039_v39 = vsel %vm8566_vm12, %v2857_v28, %v3038_v27  ;;  %v2839_v17 = vsel %vm7831_vm8, %v2831_v48, %v2838_v35  ;;  %v3032_v25 = vsel %vm8566_vm12, %v2840_v36, %v3031_v32  ;;  %v3041_v32 = vld [vmem:[#allocation3 + $0xb4] sm:$0xf]  ;;  %v9151_v24 = vld [vmem:[#allocation3 + $0x84] sm:$0xff]  }
 0x2cd   : > { %3037 = vst.msk [vmem:[#allocation3 + $0xac] sm:$0xf] %vm442_vm11, %v2856_v12  ;;  %3040 = vst [vmem:[#allocation3 + $0xb0] sm:$0x1] %v3039_v39  ;;  %v3049_v45 = vsel %vm8776_vm13, %v2881_v2, %v3048_v11  ;;  %v2859_v37 = vshrl.u32 %v7187_v31, 16  ;;  %v3345_v48 = vshll.u32 %v9106_v10, 16  ;;  %v2489_v42 = vadd.f32 %v7711_v40, %v9017_v16 }
 0x2ce   : > { %3030 = vst.msk [vmem:[#allocation3 + $0xa0] sm:$0xf] %vm442_vm11, %v2839_v17  ;;  %3033 = vst [vmem:[#allocation3 + $0xa4] sm:$0x1] %v3032_v25  ;;  %v3374_v54 = vshrl.u32 %v9112_v15, 16  ;;  %v3343_v47 = vor.u32 %v3342_v51, %v3338_v1  ;;  %v3376_v41 = vshll.u32 %v9112_v15, 16 }
 0x2cf   : > { %3050 = vst [vmem:[#allocation3 + $0xc0] sm:$0xf] %v3049_v45  ;;  %v2861_v22 = vrot.slane %v2859_v37, 7  ;;  %v3381_v27 = vshll.u32 %v9117_v38, 16  ;;  %v3347_v20 = vrot.slane %v3345_v48, 1  ;;  %v2523_v5 = vmax.f32 %v2491_v56, 0.0 }
 0x2d0   : > { %v2521_v26 = vmax.f32 %v2489_v42, 0.0  ;;  %v3362_v19 = vshrl.u32 %v9130_v34, 16  ;;  %v3378_v40 = vrot.slane %v3376_v41, 1  ;;  %v3364_v1 = vshll.u32 %v9130_v34, 16  ;;  %v3052_v25 = vld [vmem:[#allocation3 + $0xc8] sm:$0x1] }
 0x2d1   : > { %v2864_v23 = vor.u32 %v2862_v9, %v2861_v22  ;;  %v2865_v16 = vrot.slane %v2861_v22, 4  ;;  %v3383_v11 = vrot.slane %v3381_v27, 1  ;;  %v3348_v43 = vsel %vm1363_vm6, %v3343_v47, %v3347_v20  ;;  %v3045_v45 = vld [vmem:[#allocation3 + $0xbc] sm:$0x1] }
 0x2d2   : > { %v7190_v44 = vpack.c.bf16 %v2523_v5, %v2523_v5  ;;  %v7188_v60 = vpack.c.bf16 %v2521_v26, %v2521_v26  ;;  %3483 = vrot.lane.b32.xlu1 %v3348_v43, %s7735_s17  ;;  %v3379_v35 = vor.u32 %v3378_v40, %v3374_v54  ;;  %v3369_v36 = vshll.u32 %v9140_v13, 16 }
 0x2d3   : > { %v3042_v28 = vsel %vm8776_vm13, %v2864_v23, %v3041_v32  ;;  %v3398_v2 = vshrl.u32 %v9144_v0, 16  ;;  %v3366_v9 = vrot.slane %v3364_v1, 1  ;;  %v3400_v48 = vshll.u32 %v9144_v0, 16 }
 0x2d4   : > { %3043 = vst [vmem:[#allocation3 + $0xb4] sm:$0xf] %v3042_v28  ;;  %v2884_v31 = vshrl.u32 %v7190_v44, 16  ;;  %v2887_v12 = vshll.u32 %v7190_v44, 16  ;;  %v2867_v39 = vshrl.u32 %v7188_v60, 16  ;;  %v2870_v17 = vshll.u32 %v7188_v60, 16 }
 0x2d5   : > { %v3384_v37 = vsel %vm1363_vm6, %v3379_v35, %v3383_v11  ;;  %v3371_v51 = vrot.slane %v3369_v36, 1  ;;  %v3405_v54 = vshll.u32 %v9149_v53, 16  ;;  %v3386_v22 = vshrl.u32 %v9151_v24, 16  ;;  %v9165_v47 = vld [vmem:[#allocation3 + $0xb0] ss:$0 sps:$4 sm:$0xff]   ;;  %v9169_v11 = vld [vmem:[#allocation3 + $0xa8] sm:$0xff]  }
 0x2d6   : > { %v2886_v56 = vrot.slane %v2884_v31, 7  ;;  %v2869_v42 = vrot.slane %v2867_v39, 7  ;;  %3489 = vrot.lane.b32.xlu0 %v3384_v37, %s7735_s17  ;;  %v3367_v41 = vor.u32 %v3366_v9, %v3362_v19  ;;  %v3402_v27 = vrot.slane %v3400_v48, 1  ;;  %v9171_v43 = vld [vmem:[#allocation3 + $0x9c] sm:$0xff]   ;;  %v9174_v35 = vld [vmem:[#allocation3 + $0xa4] ss:$0 sps:$4 sm:$0xff]  }
 0x2d7   : > { %v3388_v32 = vshll.u32 %v9151_v24, 16  ;;  %v3393_v20 = vshll.u32 %v9158_v55, 16  ;;  %v3407_v1 = vrot.slane %v3405_v54, 1  ;;  %v3424_v39 = vshll.u32 %v9169_v11, 16  ;;  %v507_v9 = vld [vmem:[#allocation3 + $0x8] sm:$0x1] }
 0x2d8   : > { %v2889_v5 = vor.u32 %v2887_v12, %v2886_v56  ;;  %v2891_v26 = vrot.slane %v2886_v56, 4  ;;  %v2872_v23 = vor.u32 %v2870_v17, %v2869_v42  ;;  %v2874_v40 = vrot.slane %v2869_v42, 4 }
 0x2d9   : > { %v3372_v44 = vsel %vm1363_vm6, %v3367_v41, %v3371_v51  ;;  %v3403_v60 = vor.u32 %v3402_v27, %v3398_v2  ;;  %v3390_v28 = vrot.slane %v3388_v32, 1  ;;  %v3395_v2 = vrot.slane %v3393_v20, 1 }
 0x2da   : > { %v2890_v19 = vsel %vm7831_vm8, %v2882_v30, %v2889_v5  ;;  %v3053_v36 = vsel %vm8566_vm12, %v2891_v26, %v3052_v25  ;;  %v2873_v31 = vsel %vm7831_vm8, %v2865_v16, %v2872_v23  ;;  %v3046_v12 = vsel %vm8566_vm12, %v2874_v40, %v3045_v45  ;;  %3487 = vrot.lane.b32.xlu1 %v3372_v44, %s7735_s17  ;;  %v452_v25 = vld [vmem:[#allocation3] sm:$0x1] }
 0x2db   : > { %3051 = vst.msk [vmem:[#allocation3 + $0xc4] sm:$0xf] %vm442_vm11, %v2890_v19  ;;  %3054 = vst [vmem:[#allocation3 + $0xc8] sm:$0x1] %v3053_v36  ;;  %v3408_v14 = vsel %vm1363_vm6, %v3403_v60, %v3407_v1  ;;  %v3391_v30 = vor.u32 %v3390_v28, %v3386_v22  ;;  %v3429_v16 = vshll.u32 %v9165_v47, 16  ;;  %v3412_v17 = vshll.u32 %v9171_v43, 16 }
 0x2dc   : > { %3044 = vst.msk [vmem:[#allocation3 + $0xb8] sm:$0xf] %vm442_vm11, %v2873_v31  ;;  %3047 = vst [vmem:[#allocation3 + $0xbc] sm:$0x1] %v3046_v12  ;;  %3493 = vrot.lane.b32.xlu0 %v3408_v14, %s7735_s17  ;;  %v3417_v37 = vshll.u32 %v9174_v35, 16  ;;  %v3422_v51 = vshrl.u32 %v9169_v11, 16 }
 0x2dd   : > { %v3396_v45 = vsel %vm1363_vm6, %v3391_v30, %v3395_v2  ;;  %v3426_v48 = vrot.slane %v3424_v39, 1  ;;  %v3410_v56 = vshrl.u32 %v9171_v43, 16  ;;  %v3414_v42 = vrot.slane %v3412_v17, 1 }
 0x2de   : > { %3491 = vrot.lane.b32.xlu1 %v3396_v45, %s7735_s17  ;;  %v3431_v54 = vrot.slane %v3429_v16, 1  ;;  %v453_v22 = vsel %vm8566_vm12, 0, %v452_v25  ;;  %v3419_v32 = vrot.slane %v3417_v37, 1  ;;  %v508_v20 = vsel %vm8662_vm1, 0, %v507_v9 }
 0x2df   : > { %v3427_v41 = vor.u32 %v3426_v48, %v3422_v51  ;;  %v3415_v27 = vor.u32 %v3414_v42, %v3410_v56  ;;  %454 = vst [vmem:[#allocation3] sm:$0x1] %v453_v22  ;;  %509 = vst [vmem:[#allocation3 + $0x8] sm:$0x1] %v508_v20 }
 0x2e1   : > { %v3432_v5 = vsel %vm1363_vm6, %v3427_v41, %v3431_v54  ;;  %v3420_v26 = vsel %vm1363_vm6, %v3415_v27, %v3419_v32  ;;  %v3514_v27 = vrot.slane %v8996_v21, 1  ;;  %v3515_v32 = vrot.slane %v9013_v29, 1 }
 0x2e2   : > { %v9205_v23 = vld [vmem:[#allocation3 + $0xc0] sm:$0xff]   ;;  %3497 = vrot.lane.b32.xlu0 %v3432_v5, %s7735_s17  ;;  %3495 = vrot.lane.b32.xlu1 %v3420_v26, %s7735_s17  ;;  %v9209_v40 = vld [vmem:[#allocation3 + $0xc8] ss:$0 sps:$4 sm:$0xff]   ;;  %v7712_v5 = vld [vmem:[#allocation3 + $0x18] sm:$0xff]  }
 0x2e3   : > { %v3448_v44 = vshll.u32 %v9205_v23, 16  ;;  %v9212_v60 = vld [vmem:[#allocation3 + $0xb4] sm:$0xff]   ;;  %v9214_v1 = vld [vmem:[#allocation3 + $0xbc] ss:$0 sps:$4 sm:$0xff]   ;;  %v3453_v28 = vshll.u32 %v9209_v40, 16  ;;  %v3446_v19 = vshrl.u32 %v9205_v23, 16 }
 0x2e4   : > { %v3436_v31 = vshll.u32 %v9212_v60, 16  ;;  %v3441_v12 = vshll.u32 %v9214_v1, 16  ;;  %v3434_v14 = vshrl.u32 %v9212_v60, 16 }
 0x2e5   : > { %v3450_v36 = vrot.slane %v3448_v44, 1  ;;  %v3455_v39 = vrot.slane %v3453_v28, 1  ;;  %v9241_v44 = vsel %vm1616_vm5, %v3514_v27, %v3515_v32  ;;  %v7623_v28 = vld [vmem:[%s10718_s4] sm:$0xff]   ;;  %v3520_v32 = vrot.slane %v9054_v49, 1 }
 0x2e6   : > { %v9221_v30 = vld [vmem:[#allocation3] sm:$0xff]   ;;  %v3438_v16 = vrot.slane %v3436_v31, 1  ;;  %v9223_v17 = vld [vmem:[#allocation3 + $0x8] ss:$0 sps:$4 sm:$0xff]   ;;  %v3443_v51 = vrot.slane %v3441_v12, 1 }
 0x2e7   : > { %v3451_v2 = vor.u32 %v3450_v36, %v3446_v19  ;;  %v3254_v25 = vshrl.u32 %v9221_v30, 16  ;;  %v3256_v45 = vshll.u32 %v9221_v30, 16  ;;  %v3261_v48 = vshll.u32 %v9223_v17, 16  ;;  %v7624_v36 = vld [vmem:[%s10718_s4 + $0x8] sm:$0xff]   ;;  %v503_v31 = vld [vmem:[#allocation3 + $0xcc] sm:$0x1] }
 0x2e8   : > { %v3439_v9 = vor.u32 %v3438_v16, %v3434_v14  ;;  %v558_v12 = vld [vmem:[#allocation3 + $0xd4] sm:$0x1]  ;;  %v504_v14 = vsel %vm8566_vm12, 0, %v503_v31  ;;  %v3518_v16 = vrot.slane %v8994_v59, 1  ;;  %v7629_v59 = vld [vmem:[%s10718_s4 + $0x20] sm:$0xff]   ;;  %v3523_v31 = vrot.slane %v9039_v58, 1 }
 0x2e9   : > { %v3456_v37 = vsel %vm1363_vm6, %v3451_v2, %v3455_v39  ;;  %v3258_v56 = vrot.slane %v3256_v45, 1  ;;  %v3263_v54 = vrot.slane %v3261_v48, 1  ;;  %505 = vst [vmem:[#allocation3 + $0xcc] sm:$0x1] %v504_v14  ;;  %v7627_v2 = vld [vmem:[%s10718_s4 + $0x10] sm:$0xff]   ;;  %v3517_v39 = vrot.slane %v8979_v4, 1 }
 0x2ea   : > { %3501 = vrot.lane.b32.xlu0 %v3456_v37, %s7735_s17  ;;  %v3444_v42 = vsel %vm1363_vm6, %v3439_v9, %v3443_v51 }
 0x2eb   : > { %3499 = vrot.lane.b32.xlu1 %v3444_v42, %s7735_s17  ;;  %v3259_v22 = vor.u32 %v3258_v56, %v3254_v25  ;;  %v9292_v42 = vsel %vm1616_vm5, %v3517_v39, %v3518_v16  ;;  %v3526_v39 = vrot.slane %v9100_v52, 1 }
 0x2ed   : > { %v3264_v41 = vsel %vm1363_vm6, %v3259_v22, %v3263_v54 }
 0x2ef   : > { %3469 = vrot.lane.b32.xlu1 %v3264_v41, %s7735_s17  ;;  %v7630_v41 = vld [vmem:[%s10718_s4 + $0x28] sm:$0xff]  }
 0x2f0   : > { %v9276_v25 = vld [vmem:[#allocation3 + $0xcc] sm:$0xff]  }
 0x2f1   : > { %v3458_v9 = vshrl.u32 %v9276_v25, 16  ;;  %v3460_v51 = vshll.u32 %v9276_v25, 16 }
 0x2f3   : > { %v3462_v54 = vrot.slane %v3460_v51, 1  ;;  %v3529_v51 = vrot.slane %v9066_v46, 1 }
 0x2f5   : > { %v3463_v22 = vor.u32 %v3462_v54, %v3458_v9 }
 0x318   : > { %v3474_v20 = vpop.permute.xlu0 %3473 }
 0x319   : > { %v9237_v26 = vsel %vm3559_vm3, %v7712_v5, %v3474_v20  ;;  %v3521_v20 = vrot.slane %v9062_v57, 1 }
 0x31a   : > { %4313 = vmatmul.mubr.bf16.vlgmr.msra.gmra.mrb[32].mxu0 %v9237_v26 }
 0x31b   : > { %6938 = vmatprep.mubr.msk.bf16.mxu0 %vm3559_vm3, %v9241_v44 }
 0x31c   : > { %v3472_v19 = vpop.permute.xlu1 %3471 }
 0x31d   : > { %v9250_v29 = vsel %vm3559_vm3, %v8909_v6, %v3472_v19  ;;  %v559_v6 = vsel %vm8662_vm1, 0, %v558_v12  ;;  %v7631_v19 = vld [vmem:[%s10718_s4 + $0x30] sm:$0xff]   ;;  %v3524_v12 = vrot.slane %v9044_v62, 1  ;;  %v7634_v62 = vld [vmem:[%s10718_s4 + $0x48] sm:$0xff]  }
 0x31e   : > { %3816 = vmatmul.mubr.bf16.vlgmr.msra.gmra.mrb[0].mxu1 %v9250_v29  ;;  %560 = vst [vmem:[#allocation3 + $0xd4] sm:$0x1] %v559_v6  ;;  %v7633_v6 = vld [vmem:[%s10718_s4 + $0x40] sm:$0xff]  }
 0x31f   : > { %4020 = vmatpush1.bf16.msra.mxu1 %v7623_v28  ;;  %6858 = vmatprep.mubr.msk.bf16.mxu1 %vm3559_vm3, %v8938_v3 }
 0x320   : > { %4021 = vmatprep.subr.bf16.mxu1 %v10723_v50 }
 0x323   : > { %4022 = vmatpush1.bf16.msra.mxu1 %v7624_v36  ;;  %v9317_v36 = vsel %vm1616_vm5, %v3520_v32, %v3521_v20  ;;  %v3536_v32 = vrot.slane %v9117_v38, 1  ;;  %v3538_v38 = vrot.slane %v9151_v24, 1 }
 0x324   : > { %4023 = vmatprep.subr.bf16.mxu1 %v10723_v50 }
 0x325   : > { %v9278_v45 = vld [vmem:[#allocation3 + $0xd4] ss:$0 sps:$4 sm:$0xff]  }
 0x326   : > { %3824 = vmatmul.mubr.bf16.gmra.mrb[4].mxu1 %v9237_v26  ;;  %v3465_v56 = vshll.u32 %v9278_v45, 16  ;;  %v3478_v27 = vpop.permute.xlu0 %3477 }
 0x327   : > { %6859 = vmatprep.mubr.msk.bf16.mxu1 %vm3559_vm3, %v9241_v44  ;;  %4024 = vmatpush1.bf16.msra.mxu1 %v7627_v2  ;;  %v9310_v28 = vsel %vm3559_vm3, %v8979_v4, %v3478_v27  ;;  %v7632_v4 = vld [vmem:[%s10718_s4 + $0x38] sm:$0xff]   ;;  %v9340_v2 = vsel %vm1616_vm5, %v3523_v31, %v3524_v12  ;;  %v3542_v31 = vrot.slane %v9149_v53, 1  ;;  %v3544_v53 = vrot.slane %v9171_v43, 1 }
 0x328   : > { %4025 = vmatprep.subr.bf16.mxu1 %v10723_v50 }
 0x32a   : > { %v3476_v37 = vpop.permute.xlu1 %3475 }
 0x32b   : > { %v9284_v48 = vsel %vm3559_vm3, %v8996_v21, %v3476_v37  ;;  %4026 = vmatpush1.bf16.msra.mxu1 %v7628_v7  ;;  %v3467_v21 = vrot.slane %v3465_v56, 1  ;;  %v3527_v7 = vrot.slane %v9106_v10, 1  ;;  %v7635_v37 = vld [vmem:[%s10718_s4 + $0x50] sm:$0xff]  }
 0x32c   : > { %4321 = vmatmul.mubr.bf16.gmra.mrb[36].mxu0 %v9284_v48  ;;  %4027 = vmatprep.subr.bf16.mxu1 %v10723_v50 }
 0x32d   : > { %6939 = vmatprep.mubr.msk.bf16.mxu0 %vm3559_vm3, %v9292_v42  ;;  %v3468_v5 = vsel %vm1363_vm6, %v3463_v22, %v3467_v21  ;;  %v9363_v9 = vsel %vm1616_vm5, %v3526_v39, %v3527_v7  ;;  %v3533_v21 = vrot.slane %v9140_v13, 1  ;;  %v3535_v13 = vrot.slane %v9112_v15, 1 }
 0x32e   : > { %3832 = vmatmul.mubr.bf16.gmra.mrb[8].mxu1 %v9284_v48  ;;  %3503 = vrot.lane.b32.xlu0 %v3468_v5, %s7735_s17  ;;  %v3548_v7 = vrot.slane %v9165_v47, 1  ;;  %v3550_v47 = vrot.slane %v9212_v60, 1 }
 0x32f   : > { %6860 = vmatprep.mubr.msk.bf16.mxu1 %vm3559_vm3, %v9292_v42  ;;  %4028 = vmatpush1.bf16.msra.mxu1 %v7629_v59  ;;  %v3530_v59 = vrot.slane %v9082_v63, 1  ;;  %v9414_v20 = vsel %vm1616_vm5, %v3535_v13, %v3536_v32  ;;  %v3506_v13 = vrot.slane %v9223_v17, 1 }
 0x330   : > { %4029 = vmatprep.subr.bf16.mxu1 %v10723_v50 }
 0x331   : > { %v9383_v54 = vsel %vm1616_vm5, %v3529_v51, %v3530_v59 }
 0x333   : > { %4030 = vmatpush1.bf16.msra.mxu1 %v7630_v41 }
 0x334   : > { %4329 = vmatmul.mubr.bf16.gmra.mrb[40].mxu0 %v9310_v28  ;;  %4031 = vmatprep.subr.bf16.mxu1 %v10723_v50 }
 0x335   : > { %6940 = vmatprep.mubr.msk.bf16.mxu0 %vm3559_vm3, %v9317_v36 }
 0x336   : > { %3840 = vmatmul.mubr.bf16.gmra.mrb[12].mxu1 %v9310_v28 }
 0x337   : > { %6861 = vmatprep.mubr.msk.bf16.mxu1 %vm3559_vm3, %v9317_v36  ;;  %4032 = vmatpush1.bf16.msra.mxu1 %v7631_v19  ;;  %v3539_v19 = vrot.slane %v9158_v55, 1  ;;  %v3541_v55 = vrot.slane %v9144_v0, 1 }
 0x338   : > { %v3480_v57 = vpop.permute.xlu1 %3479  ;;  %4033 = vmatprep.subr.bf16.mxu1 %v10723_v50 }
 0x339   : > { %v9333_v14 = vsel %vm3559_vm3, %v9054_v49, %v3480_v57  ;;  %v3482_v49 = vpop.permute.xlu0 %3481  ;;  %v9444_v12 = vsel %vm1616_vm5, %v3541_v55, %v3542_v31 }
 0x33a   : > { %v9356_v16 = vsel %vm3559_vm3, %v9039_v58, %v3482_v49  ;;  %v7636_v58 = vld [vmem:[%s10718_s4 + $0x58] sm:$0xff]  }
 0x33b   : > { %4034 = vmatpush1.bf16.msra.mxu1 %v7632_v4  ;;  %v9429_v4 = vsel %vm1616_vm5, %v3538_v38, %v3539_v19  ;;  %v3557_v38 = vrot.slane %v9278_v45, 1 }
 0x33c   : > { %4337 = vmatmul.mubr.bf16.gmra.mrb[44].mxu0 %v9333_v14  ;;  %4035 = vmatprep.subr.bf16.mxu1 %v10723_v50 }
 0x33d   : > { %6941 = vmatprep.mubr.msk.bf16.mxu0 %vm3559_vm3, %v9340_v2  ;;  %v3486_v63 = vpop.permute.xlu0 %3485 }
 0x33e   : > { %3848 = vmatmul.mubr.bf16.gmra.mrb[16].mxu1 %v9333_v14  ;;  %v9395_v22 = vsel %vm3559_vm3, %v9066_v46, %v3486_v63  ;;  %v3554_v63 = vrot.slane %v9209_v40, 1 }
 0x33f   : > { %6862 = vmatprep.mubr.msk.bf16.mxu1 %vm3559_vm3, %v9340_v2  ;;  %4036 = vmatpush1.bf16.msra.mxu1 %v7633_v6 }
 0x340   : > { %4037 = vmatprep.subr.bf16.mxu1 %v10723_v50 }
 0x343   : > { %4038 = vmatpush1.bf16.msra.mxu1 %v7634_v62  ;;  %v3545_v62 = vrot.slane %v9174_v35, 1  ;;  %v3547_v35 = vrot.slane %v9169_v11, 1 }
 0x344   : > { %4345 = vmatmul.mubr.bf16.gmra.mrb[48].mxu0 %v9356_v16  ;;  %4039 = vmatprep.subr.bf16.mxu1 %v10723_v50  ;;  %v3484_v10 = vpop.permute.xlu1 %3483 }
 0x345   : > { %6942 = vmatprep.mubr.msk.bf16.mxu0 %vm3559_vm3, %v9363_v9  ;;  %v9379_v56 = vsel %vm3559_vm3, %v9100_v52, %v3484_v10  ;;  %v3532_v52 = vrot.slane %v9130_v34, 1  ;;  %v9459_v49 = vsel %vm1616_vm5, %v3544_v53, %v3545_v62  ;;  %v3551_v10 = vrot.slane %v9214_v1, 1 }
 0x346   : > { %3856 = vmatmul.mubr.bf16.gmra.mrb[20].mxu1 %v9356_v16  ;;  %v3553_v1 = vrot.slane %v9205_v23, 1 }
 0x347   : > { %6863 = vmatprep.mubr.msk.bf16.mxu1 %vm3559_vm3, %v9363_v9  ;;  %4040 = vmatpush1.bf16.msra.mxu1 %v7635_v37  ;;  %v9399_v41 = vsel %vm1616_vm5, %v3532_v52, %v3533_v21  ;;  %v9474_v37 = vsel %vm1616_vm5, %v3547_v35, %v3548_v7  ;;  %v9489_v51 = vsel %vm1616_vm5, %v3550_v47, %v3551_v10 }
 0x348   : > { %4041 = vmatprep.subr.bf16.mxu1 %v10723_v50  ;;  %v3490_v5 = vpop.permute.xlu0 %3489  ;;  %v3555_v52 = vsel %vm1616_vm5, %v3553_v1, %v3554_v63 }
 0x34b   : > { %4042 = vmatpush1.bf16.msra.mxu1 %v7636_v58 }
 0x34c   : > { %4353 = vmatmul.mubr.bf16.gmra.mrb[52].mxu0 %v9379_v56  ;;  %5799 = vmatprep.subr.bf16.mxu1 %v10723_v50  ;;  %v3488_v27 = vpop.permute.xlu1 %3487 }
 0x34d   : > { %6943 = vmatprep.mubr.msk.bf16.mxu0 %vm3559_vm3, %v9383_v54  ;;  %v9410_v46 = vsel %vm3559_vm3, %v9130_v34, %v3488_v27  ;;  %v9425_v34 = vsel %vm3559_vm3, %v9112_v15, %v3490_v5  ;;  %v3505_v27 = vrot.slane %v9221_v30, 1  ;;  %v3556_v5 = vrot.slane %v9276_v25, 1 }
 0x34e   : > { %3864 = vmatmul.mubr.bf16.gmra.mrb[24].mxu1 %v9379_v56  ;;  %v3494_v6 = vpop.permute.xlu0 %3493 }
 0x34f   : > { %6864 = vmatprep.mubr.msk.bf16.mxu1 %vm3559_vm3, %v9383_v54 }
 0x350   : > { %v3492_v57 = vpop.permute.xlu1 %3491 }
 0x351   : > { %v9440_v15 = vsel %vm3559_vm3, %v9151_v24, %v3492_v57  ;;  %v9455_v24 = vsel %vm3559_vm3, %v9144_v0, %v3494_v6  ;;  %v3558_v57 = vsel %vm1616_vm5, %v3556_v5, %v3557_v38  ;;  %v7642_v5 = vld [vmem:[%s10720_s6 + $0x68] sm:$0xff]  }
 0x354   : > { %4361 = vmatmul.mubr.bf16.gmra.mrb[56].mxu0 %v9395_v22  ;;  %v3496_v39 = vpop.permute.xlu1 %3495  ;;  %v3498_v58 = vpop.permute.xlu0 %3497 }
 0x355   : > { %6944 = vmatprep.mubr.msk.bf16.mxu0 %vm3559_vm3, %v9399_v41  ;;  %v9470_v0 = vsel %vm3559_vm3, %v9171_v43, %v3496_v39  ;;  %v9485_v43 = vsel %vm3559_vm3, %v9169_v11, %v3498_v58 }
 0x356   : > { %3872 = vmatmul.mubr.bf16.gmra.mrb[28].mxu1 %v9395_v22 }
 0x357   : > { %6865 = vmatprep.mubr.msk.bf16.mxu1 %vm3559_vm3, %v9399_v41 }
 0x35c   : > { %4369 = vmatmul.mubr.bf16.gmra.mrb[60].mxu0 %v9410_v46  ;;  %v3502_v21 = vpop.permute.xlu0 %3501 }
 0x35d   : > { %6945 = vmatprep.mubr.msk.bf16.mxu0 %vm3559_vm3, %v9414_v20  ;;  %v3500_v59 = vpop.permute.xlu1 %3499  ;;  %v3609_v40 = vsel %vm3559_vm3, %v9205_v23, %v3502_v21 }
 0x35e   : > { %3880 = vmatmul.mubr.bf16.gmra.mrb[32].mxu1 %v9410_v46  ;;  %v9500_v11 = vsel %vm3559_vm3, %v9212_v60, %v3500_v59  ;;  %v3507_v60 = vsel %vm1616_vm5, %v3505_v27, %v3506_v13  ;;  %v7639_v59 = vld [vmem:[%s10720_s6 + $0x60] sm:$0xff]  }
 0x35f   : > { %6866 = vmatprep.mubr.msk.bf16.mxu1 %vm3559_vm3, %v9414_v20 }
 0x361   : > { %v3470_v32 = vpop.permute.xlu1 %3469 }
 0x362   : > { %v3561_v19 = vsel %vm3559_vm3, %v9221_v30, %v3470_v32 }
 0x364   : > { %4377 = vmatmul.mubr.bf16.gmra.mrb[64].mxu0 %v9425_v34 }
 0x365   : > { %6946 = vmatprep.mubr.msk.bf16.mxu0 %vm3559_vm3, %v9429_v4 }
 0x366   : > { %3888 = vmatmul.mubr.bf16.gmra.mrb[36].mxu1 %v9425_v34 }
 0x367   : > { %6867 = vmatprep.mubr.msk.bf16.mxu1 %vm3559_vm3, %v9429_v4 }
 0x36c   : > { %4385 = vmatmul.mubr.bf16.gmra.mrb[68].mxu0 %v9440_v15 }
 0x36d   : > { %6947 = vmatprep.mubr.msk.bf16.mxu0 %vm3559_vm3, %v9444_v12 }
 0x36e   : > { %3896 = vmatmul.mubr.bf16.gmra.mrb[40].mxu1 %v9440_v15 }
 0x36f   : > { %6868 = vmatprep.mubr.msk.bf16.mxu1 %vm3559_vm3, %v9444_v12 }
 0x374   : > { %4393 = vmatmul.mubr.bf16.gmra.mrb[72].mxu0 %v9455_v24 }
 0x375   : > { %6948 = vmatprep.mubr.msk.bf16.mxu0 %vm3559_vm3, %v9459_v49 }
 0x376   : > { %3904 = vmatmul.mubr.bf16.gmra.mrb[44].mxu1 %v9455_v24 }
 0x377   : > { %6869 = vmatprep.mubr.msk.bf16.mxu1 %vm3559_vm3, %v9459_v49 }
 0x37c   : > { %4401 = vmatmul.mubr.bf16.gmra.mrb[76].mxu0 %v9470_v0 }
 0x37d   : > { %6949 = vmatprep.mubr.msk.bf16.mxu0 %vm3559_vm3, %v9474_v37 }
 0x37e   : > { %3912 = vmatmul.mubr.bf16.gmra.mrb[48].mxu1 %v9470_v0 }
 0x37f   : > { %6870 = vmatprep.mubr.msk.bf16.mxu1 %vm3559_vm3, %v9474_v37 }
 0x384   : > { %4409 = vmatmul.mubr.bf16.gmra.mrb[80].mxu0 %v9485_v43 }
 0x385   : > { %6950 = vmatprep.mubr.msk.bf16.mxu0 %vm3559_vm3, %v9489_v51 }
 0x386   : > { %3920 = vmatmul.mubr.bf16.gmra.mrb[52].mxu1 %v9485_v43 }
 0x387   : > { %6871 = vmatprep.mubr.msk.bf16.mxu1 %vm3559_vm3, %v9489_v51 }
 0x38c   : > { %4417 = vmatmul.mubr.bf16.gmra.mrb[84].mxu0 %v9500_v11 }
 0x38d   : > { %6951 = vmatprep.mubr.msk.bf16.mxu0 %vm3559_vm3, %v3555_v52 }
 0x38e   : > { %3928 = vmatmul.mubr.bf16.gmra.mrb[56].mxu1 %v9500_v11 }
 0x38f   : > { %6872 = vmatprep.mubr.msk.bf16.mxu1 %vm3559_vm3, %v3555_v52 }
 0x394   : > { %4425 = vmatmul.mubr.bf16.gmra.mrb[88].mxu0 %v3609_v40 }
 0x395   : > { %6952 = vmatprep.mubr.msk.bf16.mxu0 %vm3559_vm3, %v3558_v57 }
 0x396   : > { %3936 = vmatmul.mubr.bf16.gmra.mrb[60].mxu1 %v3609_v40 }
 0x397   : > { %6885 = vmatprep.mubr.msk.bf16.mxu1 %vm3559_vm3, %v3507_v60 }
 0x39e   : > { %4052 = vmatmul.mubr.bf16.vlgmr.msra.gmra.mrb[64].mxu1 %v3561_v19 }
 0x39f   : > { %6886 = vmatprep.mubr.msk.bf16.mxu1 %vm3559_vm3, %v8958_v18  ;;  %5800 = vmatpush1.bf16.msra.mxu1 %v7639_v59 }
 0x3a0   : > { %v3504_v23 = vpop.permute.xlu0 %3503  ;;  %5801 = vmatprep.subr.bf16.mxu1 %v10723_v50 }
 0x3a1   : > { %v3612_v17 = vsel %vm3559_vm3, %v9276_v25, %v3504_v23 }
 0x3a2   : > { %4433 = vmatmul.mubr.bf16.gmra.mrb[92].mxu0 %v3612_v17 }
 0x3a3   : > { %5802 = vmatpush1.bf16.msra.mxu1 %v7642_v5 }
 0x3a4   : > { %5803 = vmatprep.subr.bf16.mxu1 %v10723_v50 }
 0x3a6   : > { %4060 = vmatmul.mubr.bf16.gmra.mrb[68].mxu1 %v9250_v29 }
 0x3a7   : > { %6887 = vmatprep.mubr.msk.bf16.mxu1 %vm3559_vm3, %v8938_v3 }
 0x3ae   : > { %4068 = vmatmul.mubr.bf16.gmra.mrb[72].mxu1 %v9237_v26 }
 0x3af   : > { %6888 = vmatprep.mubr.msk.bf16.mxu1 %vm3559_vm3, %v9241_v44 }
 0x3b6   : > { %4076 = vmatmul.mubr.bf16.gmra.mrb[76].mxu1 %v9284_v48 }
 0x3b7   : > { %6889 = vmatprep.mubr.msk.bf16.mxu1 %vm3559_vm3, %v9292_v42 }
 0x3be   : > { %4084 = vmatmul.mubr.bf16.gmra.mrb[80].mxu1 %v9310_v28 }
 0x3bf   : > { %6890 = vmatprep.mubr.msk.bf16.mxu1 %vm3559_vm3, %v9317_v36 }
 0x3c6   : > { %4092 = vmatmul.mubr.bf16.gmra.mrb[84].mxu1 %v9333_v14 }
 0x3c7   : > { %6891 = vmatprep.mubr.msk.bf16.mxu1 %vm3559_vm3, %v9340_v2 }
 0x3ce   : > { %4100 = vmatmul.mubr.bf16.gmra.mrb[88].mxu1 %v9356_v16 }
 0x3cf   : > { %6892 = vmatprep.mubr.msk.bf16.mxu1 %vm3559_vm3, %v9363_v9 }
 0x3d6   : > { %4108 = vmatmul.mubr.bf16.gmra.mrb[92].mxu1 %v9379_v56 }
 0x3d7   : > { %6893 = vmatprep.mubr.msk.bf16.mxu1 %vm3559_vm3, %v9383_v54 }
 0x3de   : > { %4116 = vmatmul.mubr.bf16.gmra.mrb[96].mxu1 %v9395_v22 }
 0x3df   : > { %6894 = vmatprep.mubr.msk.bf16.mxu1 %vm3559_vm3, %v9399_v41 }
 0x3e6   : > { %4124 = vmatmul.mubr.bf16.gmra.mrb[100].mxu1 %v9410_v46 }
 0x3e7   : > { %6895 = vmatprep.mubr.msk.bf16.mxu1 %vm3559_vm3, %v9414_v20 }
 0x3ed   : > { %v9550_v3 = vpop.f32.mrb[32].mxu0 }
 0x3ee   : > { %v4316_v18 = vpop.f32.mrb[33].mxu0  ;;  %4132 = vmatmul.mubr.bf16.gmra.mrb[104].mxu1 %v9425_v34 }
 0x3ef   : > { %v9553_v30 = vpop.f32.mrb[34].mxu0  ;;  %6896 = vmatprep.mubr.msk.bf16.mxu1 %vm3559_vm3, %v9429_v4 }
 0x3f0   : > { %v4319_v26 = vpop.f32.mrb[35].mxu0 }
 0x3f1   : > { %v9557_v44 = vpop.f32.mrb[0].mxu1 }
 0x3f2   : > { %v3819_v29 = vpop.f32.mrb[1].mxu1 }
 0x3f3   : > { %v9559_v25 = vpop.f32.mrb[2].mxu1  ;;  %v7645_v29 = vld [vmem:[%s10720_s6 + $0x70] sm:$0xff]  }
 0x3f4   : > { %v3822_v45 = vpop.f32.mrb[3].mxu1  ;;  %5804 = vmatpush1.bf16.msra.mxu1 %v7645_v29 }
 0x3f5   : > { %5805 = vmatprep.subr.bf16.mxu1 %v10723_v50 }
 0x3f6   : > { %4140 = vmatmul.mubr.bf16.gmra.mrb[108].mxu1 %v9440_v15 }
 0x3f7   : > { %6897 = vmatprep.mubr.msk.bf16.mxu1 %vm3559_vm3, %v9444_v12 }
 0x3f9   : > { %v9564_v48 = vpop.f32.mrb[4].mxu1 }
 0x3fa   : > { %v3827_v42 = vpop.f32.mrb[5].mxu1 }
 0x3fb   : > { %v9566_v28 = vpop.f32.mrb[6].mxu1 }
 0x3fc   : > { %v3830_v36 = vpop.f32.mrb[7].mxu1 }
 0x3fe   : > { %4148 = vmatmul.mubr.bf16.gmra.mrb[112].mxu1 %v9455_v24 }
 0x3ff   : > { %v9569_v14 = vpop.f32.mrb[36].mxu0  ;;  %6898 = vmatprep.mubr.msk.bf16.mxu1 %vm3559_vm3, %v9459_v49 }
 0x400   : > { %v4324_v2 = vpop.f32.mrb[37].mxu0 }
 0x401   : > { %v9573_v16 = vpop.f32.mrb[38].mxu0  ;;  %v9575_v9 = vpop.f32.mrb[8].mxu1 }
 0x402   : > { %v4327_v56 = vpop.f32.mrb[39].mxu0  ;;  %v3835_v54 = vpop.f32.mrb[9].mxu1 }
 0x403   : > { %v9577_v22 = vpop.f32.mrb[10].mxu1 }
 0x404   : > { %v3838_v41 = vpop.f32.mrb[11].mxu1 }
 0x406   : > { %4156 = vmatmul.mubr.bf16.gmra.mrb[116].mxu1 %v9470_v0 }
 0x407   : > { %v9580_v46 = vpop.f32.mrb[40].mxu0  ;;  %6899 = vmatprep.mubr.msk.bf16.mxu1 %vm3559_vm3, %v9474_v37 }
 0x408   : > { %v4332_v20 = vpop.f32.mrb[41].mxu0 }
 0x409   : > { %v9584_v34 = vpop.f32.mrb[42].mxu0  ;;  %v9586_v4 = vpop.f32.mrb[12].mxu1 }
 0x40a   : > { %v4335_v55 = vpop.f32.mrb[43].mxu0  ;;  %v3843_v31 = vpop.f32.mrb[13].mxu1 }
 0x40b   : > { %v9588_v15 = vpop.f32.mrb[14].mxu1 }
 0x40c   : > { %v3846_v12 = vpop.f32.mrb[15].mxu1 }
 0x40e   : > { %4164 = vmatmul.mubr.bf16.gmra.mrb[120].mxu1 %v9485_v43 }
 0x40f   : > { %v9591_v6 = vpop.f32.mrb[44].mxu0  ;;  %6900 = vmatprep.mubr.msk.bf16.mxu1 %vm3559_vm3, %v9489_v51 }
 0x410   : > { %v4340_v53 = vpop.f32.mrb[45].mxu0 }
 0x411   : > { %v9595_v62 = vpop.f32.mrb[46].mxu0  ;;  %v9597_v24 = vpop.f32.mrb[16].mxu1 }
 0x412   : > { %v4343_v49 = vpop.f32.mrb[47].mxu0  ;;  %v3851_v39 = vpop.f32.mrb[17].mxu1 }
 0x413   : > { %v9599_v35 = vpop.f32.mrb[18].mxu1 }
 0x414   : > { %v3854_v7 = vpop.f32.mrb[19].mxu1 }
 0x416   : > { %4172 = vmatmul.mubr.bf16.gmra.mrb[124].mxu1 %v9500_v11 }
 0x417   : > { %v9602_v0 = vpop.f32.mrb[48].mxu0 }
 0x418   : > { %v4348_v37 = vpop.f32.mrb[49].mxu0 }
 0x419   : > { %v9604_v58 = vpop.f32.mrb[50].mxu0  ;;  %v9606_v47 = vpop.f32.mrb[20].mxu1  ;;  %v7648_v37 = vld [vmem:[%s10720_s6 + $0x78] sm:$0xff]  }
 0x41a   : > { %v4351_v10 = vpop.f32.mrb[51].mxu0  ;;  %v3859_v43 = vpop.f32.mrb[21].mxu1  ;;  %5806 = vmatpush1.bf16.msra.mxu1 %v7648_v37 }
 0x41b   : > { %v9608_v51 = vpop.f32.mrb[22].mxu1  ;;  %5807 = vmatprep.subr.bf16.mxu1 %v10723_v50 }
 0x41c   : > { %v3862_v1 = vpop.f32.mrb[23].mxu1 }
 0x41f   : > { %v9614_v63 = vpop.f32.mrb[52].mxu0 }
 0x420   : > { %v4356_v11 = vpop.f32.mrb[53].mxu0 }
 0x421   : > { %v9616_v52 = vpop.f32.mrb[54].mxu0  ;;  %v9618_v21 = vpop.f32.mrb[24].mxu1 }
 0x422   : > { %v4359_v27 = vpop.f32.mrb[55].mxu0  ;;  %v3867_v13 = vpop.f32.mrb[25].mxu1 }
 0x423   : > { %v9620_v40 = vpop.f32.mrb[26].mxu1 }
 0x424   : > { %v3870_v60 = vpop.f32.mrb[27].mxu1 }
 0x427   : > { %v9622_v32 = vpop.f32.mrb[56].mxu0 }
 0x428   : > { %v4364_v38 = vpop.f32.mrb[57].mxu0 }
 0x429   : > { %v9627_v19 = vpop.f32.mrb[58].mxu0  ;;  %v9629_v57 = vpop.f32.mrb[28].mxu1 }
 0x42a   : > { %v4367_v23 = vpop.f32.mrb[59].mxu0  ;;  %v3875_v17 = vpop.f32.mrb[29].mxu1 }
 0x42b   : > { %v9632_v18 = vpop.f32.mrb[30].mxu1  ;;  %v7651_v23 = vld [vmem:[%s10720_s6 + $0x80] sm:$0xff]  }
 0x42c   : > { %v3878_v26 = vpop.f32.mrb[31].mxu1  ;;  %5808 = vmatpush1.bf16.msra.mxu1 %v7651_v23 }
 0x42d   : > { %5809 = vmatprep.subr.bf16.mxu1 %v10723_v50 }
 0x42f   : > { %v9637_v45 = vpop.f32.mrb[60].mxu0 }
 0x430   : > { %v4372_v42 = vpop.f32.mrb[61].mxu0 }
 0x431   : > { %v9639_v36 = vpop.f32.mrb[62].mxu0  ;;  %v9641_v2 = vpop.f32.mrb[32].mxu1 }
 0x432   : > { %v4375_v56 = vpop.f32.mrb[63].mxu0  ;;  %v3883_v54 = vpop.f32.mrb[33].mxu1 }
 0x433   : > { %v9644_v41 = vpop.f32.mrb[34].mxu1 }
 0x434   : > { %v3886_v20 = vpop.f32.mrb[35].mxu1 }
 0x435   : > { %v7654_v20 = vld [vmem:[%s10720_s6] sm:$0xff]  }
 0x436   : > { %6036 = vmatpush1.bf16.msra.mxu0 %v7654_v20 }
 0x437   : > { %v9646_v55 = vpop.f32.mrb[64].mxu0  ;;  %6037 = vmatprep.subr.bf16.mxu0 %v10723_v50 }
 0x438   : > { %v4380_v31 = vpop.f32.mrb[65].mxu0 }
 0x439   : > { %v9648_v12 = vpop.f32.mrb[66].mxu0  ;;  %v9650_v53 = vpop.f32.mrb[36].mxu1 }
 0x43a   : > { %v4383_v49 = vpop.f32.mrb[67].mxu0  ;;  %v3891_v39 = vpop.f32.mrb[37].mxu1 }
 0x43b   : > { %v9652_v7 = vpop.f32.mrb[38].mxu1  ;;  %v7659_v49 = vld [vmem:[%s10720_s6 + $0x88] sm:$0xff]  }
 0x43c   : > { %v3894_v10 = vpop.f32.mrb[39].mxu1  ;;  %5810 = vmatpush1.bf16.msra.mxu1 %v7659_v49 }
 0x43d   : > { %5811 = vmatprep.subr.bf16.mxu1 %v10723_v50 }
 0x43f   : > { %v9658_v43 = vpop.f32.mrb[68].mxu0 }
 0x440   : > { %v4388_v59 = vpop.f32.mrb[69].mxu0 }
 0x441   : > { %v9660_v1 = vpop.f32.mrb[70].mxu0  ;;  %v9662_v11 = vpop.f32.mrb[40].mxu1 }
 0x442   : > { %v4391_v27 = vpop.f32.mrb[71].mxu0  ;;  %v3899_v13 = vpop.f32.mrb[41].mxu1 }
 0x443   : > { %v9664_v60 = vpop.f32.mrb[42].mxu1 }
 0x444   : > { %v3902_v5 = vpop.f32.mrb[43].mxu1 }
 0x447   : > { %v9666_v38 = vpop.f32.mrb[72].mxu0 }
 0x448   : > { %v4396_v17 = vpop.f32.mrb[73].mxu0 }
 0x449   : > { %v9671_v26 = vpop.f32.mrb[74].mxu0  ;;  %v9673_v29 = vpop.f32.mrb[44].mxu1 }
 0x44a   : > { %v4399_v42 = vpop.f32.mrb[75].mxu0  ;;  %v3907_v56 = vpop.f32.mrb[45].mxu1 }
 0x44b   : > { %v9676_v54 = vpop.f32.mrb[46].mxu1  ;;  %v7660_v42 = vld [vmem:[%s10720_s6 + $0x8] sm:$0xff]  }
 0x44c   : > { %10745 = vst [vmem:[#allocation4_spill] sm:$0xff] %v9676_v54  ;;  %v3910_v31 = vpop.f32.mrb[47].mxu1  ;;  %6038 = vmatpush1.bf16.msra.mxu0 %v7660_v42 }
 0x44d   : > { %6039 = vmatprep.subr.bf16.mxu0 %v10723_v50 }
 0x44f   : > { %v9685_v39 = vpop.f32.mrb[76].mxu0 }
 0x450   : > { %10746 = vst [vmem:[#allocation5_spill] sm:$0xff] %v9685_v39  ;;  %v4404_v37 = vpop.f32.mrb[77].mxu0 }
 0x451   : > { %v9687_v10 = vpop.f32.mrb[78].mxu0  ;;  %v9689_v59 = vpop.f32.mrb[48].mxu1 }
 0x452   : > { %10747 = vst [vmem:[#allocation6_spill] sm:$0xff] %v9687_v10  ;;  %10748 = vst [vmem:[#allocation7_spill] sm:$0xff] %v9689_v59  ;;  %v4407_v27 = vpop.f32.mrb[79].mxu0  ;;  %v3915_v13 = vpop.f32.mrb[49].mxu1 }
 0x453   : > { %v9692_v5 = vpop.f32.mrb[50].mxu1  ;;  %v7663_v13 = vld [vmem:[%s10720_s6 + $0x90] sm:$0xff]  }
 0x454   : > { %10749 = vst [vmem:[#allocation8_spill] sm:$0xff] %v9692_v5  ;;  %v3918_v23 = vpop.f32.mrb[51].mxu1  ;;  %5812 = vmatpush1.bf16.msra.mxu1 %v7663_v13 }
 0x455   : > { %5813 = vmatprep.subr.bf16.mxu1 %v10723_v50 }
 0x457   : > { %v9694_v17 = vpop.f32.mrb[80].mxu0 }
 0x458   : > { %10750 = vst [vmem:[#allocation9_spill] sm:$0xff] %v9694_v17  ;;  %v4412_v56 = vpop.f32.mrb[81].mxu0  ;;  %v7667_v17 = vld [vmem:[%s10720_s6 + $0x98] sm:$0xff]  }
 0x459   : > { %v9699_v20 = vpop.f32.mrb[82].mxu0  ;;  %v9701_v31 = vpop.f32.mrb[52].mxu1  ;;  %v7666_v56 = vld [vmem:[%s10720_s6 + $0x10] sm:$0xff]   ;;  %5814 = vmatpush1.bf16.msra.mxu1 %v7667_v17 }
 0x45a   : > { %10751 = vst [vmem:[#allocation10_spill] sm:$0xff] %v9699_v20  ;;  %10752 = vst [vmem:[#allocation11_spill] sm:$0xff] %v9701_v31  ;;  %v4415_v49 = vpop.f32.mrb[83].mxu0  ;;  %v3923_v37 = vpop.f32.mrb[53].mxu1  ;;  %6040 = vmatpush1.bf16.msra.mxu0 %v7666_v56  ;;  %5815 = vmatprep.subr.bf16.mxu1 %v10723_v50 }
 0x45b   : > { %v9704_v27 = vpop.f32.mrb[54].mxu1  ;;  %6041 = vmatprep.subr.bf16.mxu0 %v10723_v50 }
 0x45c   : > { %10753 = vst [vmem:[#allocation12_spill] sm:$0xff] %v9704_v27  ;;  %v3926_v23 = vpop.f32.mrb[55].mxu1 }
 0x45f   : > { %v9713_v31 = vpop.f32.mrb[84].mxu0 }
 0x460   : > { %10754 = vst [vmem:[#allocation13_spill] sm:$0xff] %v9713_v31  ;;  %v4420_v42 = vpop.f32.mrb[85].mxu0 }
 0x461   : > { %v9715_v49 = vpop.f32.mrb[86].mxu0  ;;  %v9717_v37 = vpop.f32.mrb[56].mxu1 }
 0x462   : > { %10755 = vst [vmem:[#allocation14_spill] sm:$0xff] %v9715_v49  ;;  %10756 = vst [vmem:[#allocation15_spill] sm:$0xff] %v9717_v37  ;;  %v4423_v27 = vpop.f32.mrb[87].mxu0  ;;  %v3931_v20 = vpop.f32.mrb[57].mxu1 }
 0x463   : > { %v9720_v23 = vpop.f32.mrb[58].mxu1  ;;  %v7670_v27 = vld [vmem:[%s10720_s6 + $0x18] sm:$0xff]  }
 0x464   : > { %10757 = vst [vmem:[#allocation16_spill] sm:$0xff] %v9720_v23  ;;  %v3934_v13 = vpop.f32.mrb[59].mxu1  ;;  %6042 = vmatpush1.bf16.msra.mxu0 %v7670_v27 }
 0x465   : > { %6043 = vmatprep.subr.bf16.mxu0 %v10723_v50 }
 0x467   : > { %v9722_v5 = vpop.f32.mrb[88].mxu0 }
 0x468   : > { %10758 = vst [vmem:[#allocation17_spill] sm:$0xff] %v9722_v5  ;;  %v4428_v31 = vpop.f32.mrb[89].mxu0 }
 0x469   : > { %v9727_v42 = vpop.f32.mrb[90].mxu0  ;;  %v9729_v56 = vpop.f32.mrb[60].mxu1  ;;  %v7673_v31 = vld [vmem:[%s10720_s6 + $0xa0] sm:$0xff]  }
 0x46a   : > { %10759 = vst [vmem:[#allocation18_spill] sm:$0xff] %v9727_v42  ;;  %10760 = vst [vmem:[#allocation19_spill] sm:$0xff] %v9729_v56  ;;  %v4431_v37 = vpop.f32.mrb[91].mxu0  ;;  %v3939_v49 = vpop.f32.mrb[61].mxu1  ;;  %5816 = vmatpush1.bf16.msra.mxu1 %v7673_v31 }
 0x46b   : > { %v9732_v20 = vpop.f32.mrb[62].mxu1  ;;  %5817 = vmatprep.subr.bf16.mxu1 %v10723_v50 }
 0x46c   : > { %10761 = vst [vmem:[#allocation20_spill] sm:$0xff] %v9732_v20  ;;  %v3942_v13 = vpop.f32.mrb[63].mxu1  ;;  %v9746_v20 = vld [vmem:[%s10719_s5] ss:$0 sm:$0xff] }
 0x471   : > { %v4053_v17 = vpop.f32.mrb[64].mxu1 }
 0x472   : > { %v4054_v49 = vadd.f32 %v4053_v17, %v9557_v44  ;;  %v4055_v37 = vpop.f32.mrb[65].mxu1  ;;  %v7674_v44 = vld [vmem:[%s10720_s6 + $0x20] sm:$0xff]  }
 0x473   : > { %v4056_v13 = vpop.f32.mrb[66].mxu1  ;;  %6044 = vmatpush1.bf16.msra.mxu0 %v7674_v44 }
 0x474   : > { %v4441_v27 = vadd.f32 %v9550_v3, %v4054_v49  ;;  %v4057_v56 = vadd.f32 %v4056_v13, %v9559_v25  ;;  %v4058_v42 = vpop.f32.mrb[67].mxu1  ;;  %v10763_v13 = vmov 0  }
 0x475   : > { %v9756_v50 = vpop.f32.mrb[92].mxu0  ;;  %6045 = vmatprep.subr.bf16.mxu0 %v10763_v13 }
 0x476   : > { %v4480_v23 = vadd.f32 %v9746_v20, %v4441_v27  ;;  %v4442_v31 = vadd.f32 %v9553_v30, %v4057_v56  ;;  %10762 = vst [vmem:[#allocation21_spill] sm:$0xff] %v9756_v50  ;;  %v4436_v59 = vpop.f32.mrb[93].mxu0 }
 0x477   : > { %v9760_v56 = vpop.f32.mrb[94].mxu0 }
 0x478   : > { %v4512_v17 = vmax.f32 %v4480_v23, 0.0  ;;  %v4481_v37 = vadd.f32 %v9746_v20, %v4442_v31  ;;  %10764 = vst [vmem:[#allocation22_spill] sm:$0xff] %v9760_v56  ;;  %v7677_v23 = vld [vmem:[%s10720_s6 + $0xa8] sm:$0xff]   ;;  %v4439_v59 = vpop.f32.mrb[95].mxu0 }
 0x479   : > { %v4061_v5 = vpop.f32.mrb[68].mxu1  ;;  %5818 = vmatpush1.bf16.msra.mxu1 %v7677_v23  ;;  %v7680_v56 = vld [vmem:[%s10720_s6 + $0x28] sm:$0xff]  }
 0x47a   : > { %v7191_v3 = vpack.c.bf16 %v4512_v17, %v4512_v17  ;;  %v4513_v49 = vmax.f32 %v4481_v37, 0.0  ;;  %v4062_v25 = vadd.f32 %v4061_v5, %v9564_v48  ;;  %v4063_v42 = vpop.f32.mrb[69].mxu1  ;;  %5819 = vmatprep.subr.bf16.mxu1 %v10763_v13  ;;  %6046 = vmatpush1.bf16.msra.mxu0 %v7680_v56 }
 0x47b   : > { %v4064_v30 = vpop.f32.mrb[70].mxu1  ;;  %6047 = vmatprep.subr.bf16.mxu0 %v10763_v13 }
 0x47c   : > { %v4641_v27 = vshrl.u32 %v7191_v3, 16  ;;  %v7192_v31 = vpack.c.bf16 %v4513_v49, %v4513_v49  ;;  %v4443_v50 = vadd.f32 %v9569_v14, %v4062_v25  ;;  %v4066_v44 = vpop.f32.mrb[71].mxu1  ;;  %v4065_v17 = vadd.f32 %v4064_v30, %v9566_v28  ;;  %v7681_v14 = vld [vmem:[%s10720_s6 + $0xb0] sm:$0xff]  }
 0x47d   : > { %v4644_v5 = vshll.u32 %v7191_v3, 16  ;;  %5820 = vmatpush1.bf16.msra.mxu1 %v7681_v14 }
 0x47e   : > { %v4643_v48 = vrot.slane %v4641_v27, 7  ;;  %v4649_v37 = vshrl.u32 %v7192_v31, 16  ;;  %v4482_v42 = vadd.f32 %v9746_v20, %v4443_v50  ;;  %v4444_v49 = vadd.f32 %v9573_v16, %v4065_v17  ;;  %v7684_v50 = vld [vmem:[%s10720_s6 + $0x30] sm:$0xff]   ;;  %v4960_v27 = vld [vmem:[#allocation3 + $0xc] sm:$0xf]  ;;  %v7687_v16 = vld [vmem:[%s10720_s6 + $0xb8] sm:$0xff]   ;;  %5821 = vmatprep.subr.bf16.mxu1 %v10763_v13 }
 0x47f   : > { %v4652_v30 = vshll.u32 %v7192_v31, 16  ;;  %6048 = vmatpush1.bf16.msra.mxu0 %v7684_v50 }
 0x480   : > { %v4646_v25 = vor.u32 %v4644_v5, %v4643_v48  ;;  %v4651_v28 = vrot.slane %v4649_v37, 7  ;;  %v4514_v23 = vmax.f32 %v4482_v42, 0.0  ;;  %v4647_v3 = vrot.slane %v4643_v48, 4  ;;  %v4964_v48 = vld [vmem:[#allocation3 + $0x14] sm:$0x1]  ;;  %6049 = vmatprep.subr.bf16.mxu0 %v10763_v13 }
 0x481   : > { %v4483_v44 = vadd.f32 %v9746_v20, %v4444_v49  ;;  %v4069_v59 = vpop.f32.mrb[72].mxu1  ;;  %5822 = vmatpush1.bf16.msra.mxu1 %v7687_v16 }
 0x482   : > { %v4961_v31 = vsel %vm8776_vm13, %v4646_v25, %v4960_v27  ;;  %v4654_v56 = vor.u32 %v4652_v30, %v4651_v28  ;;  %v4656_v17 = vrot.slane %v4651_v28, 4  ;;  %v7193_v5 = vpack.c.bf16 %v4514_v23, %v4514_v23  ;;  %v4071_v37 = vpop.f32.mrb[73].mxu1  ;;  %v7688_v28 = vld [vmem:[%s10720_s6 + $0x38] sm:$0xff]   ;;  %7412 = vmatprep.subr.bf16.mxu1 %v10763_v13 }
 0x483   : > { %4962 = vst [vmem:[#allocation3 + $0xc] sm:$0xf] %v4961_v31  ;;  %v4515_v42 = vmax.f32 %v4483_v44, 0.0  ;;  %v4070_v14 = vadd.f32 %v4069_v59, %v9575_v9  ;;  %v4072_v49 = vpop.f32.mrb[74].mxu1  ;;  %6050 = vmatpush1.bf16.msra.mxu0 %v7688_v28 }
 0x484   : > { %v4655_v10 = vsel %vm7831_vm8, %v4647_v3, %v4654_v56  ;;  %v4965_v54 = vsel %vm8566_vm12, %v4656_v17, %v4964_v48  ;;  %v4658_v39 = vshrl.u32 %v7193_v5, 16  ;;  %v4074_v25 = vpop.f32.mrb[75].mxu1  ;;  %v4073_v23 = vadd.f32 %v4072_v49, %v9577_v22  ;;  %6051 = vmatprep.subr.bf16.mxu0 %v10763_v13 }
 0x485   : > { %4963 = vst.msk [vmem:[#allocation3 + $0x10] sm:$0xf] %vm442_vm11, %v4655_v10  ;;  %4966 = vst [vmem:[#allocation3 + $0x14] sm:$0x1] %v4965_v54  ;;  %v7194_v30 = vpack.c.bf16 %v4515_v42, %v4515_v42  ;;  %v4445_v9 = vadd.f32 %v9580_v46, %v4070_v14  ;;  %v4661_v27 = vshll.u32 %v7193_v5, 16 }
 0x486   : > { %v4660_v3 = vrot.slane %v4658_v39, 7  ;;  %v4446_v59 = vadd.f32 %v9584_v34, %v4073_v23  ;;  %v4967_v54 = vld [vmem:[#allocation3 + $0x18] sm:$0xf]  ;;  %v4971_v42 = vld [vmem:[#allocation3 + $0x20] sm:$0x1] }
 0x487   : > { %v4666_v50 = vshrl.u32 %v7194_v30, 16  ;;  %v4484_v44 = vadd.f32 %v9746_v20, %v4445_v9  ;;  %v4669_v56 = vshll.u32 %v7194_v30, 16 }
 0x488   : > { %v4663_v31 = vor.u32 %v4661_v27, %v4660_v3  ;;  %v4485_v22 = vadd.f32 %v9746_v20, %v4446_v59  ;;  %v4664_v39 = vrot.slane %v4660_v3, 4 }
 0x489   : > { %v4668_v10 = vrot.slane %v4666_v50, 7  ;;  %v4516_v46 = vmax.f32 %v4484_v44, 0.0  ;;  %v4077_v16 = vpop.f32.mrb[76].mxu1 }
 0x48a   : > { %v4968_v17 = vsel %vm8776_vm13, %v4663_v31, %v4967_v54  ;;  %v4078_v5 = vadd.f32 %v4077_v16, %v9586_v4  ;;  %v4079_v37 = vpop.f32.mrb[77].mxu1  ;;  %v4517_v49 = vmax.f32 %v4485_v22, 0.0 }
 0x48b   : > { %4969 = vst [vmem:[#allocation3 + $0x18] sm:$0xf] %v4968_v17  ;;  %v4671_v34 = vor.u32 %v4669_v56, %v4668_v10  ;;  %v4673_v48 = vrot.slane %v4668_v10, 4  ;;  %v7195_v14 = vpack.c.bf16 %v4516_v46, %v4516_v46  ;;  %v4080_v25 = vpop.f32.mrb[78].mxu1  ;;  %v7694_v46 = vld [vmem:[%s10720_s6 + $0x40] sm:$0xff]  }
 0x48c   : > { %v4447_v28 = vadd.f32 %v9591_v6, %v4078_v5  ;;  %v4081_v30 = vadd.f32 %v4080_v25, %v9588_v15  ;;  %v4082_v9 = vpop.f32.mrb[79].mxu1  ;;  %v7640_v23 = vld [vmem:[#allocation3 + $0xc] sm:$0xff]   ;;  %v7641_v50 = vld [vmem:[#allocation3 + $0x14] ss:$0 sps:$4 sm:$0xff]   ;;  %v7196_v44 = vpack.c.bf16 %v4517_v49, %v4517_v49  ;;  %v4974_v37 = vld [vmem:[#allocation3 + $0x24] sm:$0xf]  ;;  %6052 = vmatpush1.bf16.msra.mxu0 %v7694_v46 }
 0x48d   : > { %v4672_v3 = vsel %vm7831_vm8, %v4664_v39, %v4671_v34  ;;  %v4972_v4 = vsel %vm8566_vm12, %v4673_v48, %v4971_v42  ;;  %v4675_v27 = vshrl.u32 %v7195_v14, 16  ;;  %v5525_v31 = vrot.slane %v7640_v23, 1  ;;  %6053 = vmatprep.subr.bf16.mxu0 %v10763_v13 }
 0x48e   : > { %4970 = vst.msk [vmem:[#allocation3 + $0x1c] sm:$0xf] %vm442_vm11, %v4672_v3  ;;  %4973 = vst [vmem:[#allocation3 + $0x20] sm:$0x1] %v4972_v4  ;;  %v4486_v59 = vadd.f32 %v9746_v20, %v4447_v28  ;;  %v4448_v6 = vadd.f32 %v9595_v62, %v4081_v30  ;;  %v4678_v54 = vshll.u32 %v7195_v14, 16  ;;  %v5526_v10 = vrot.slane %v7641_v50, 1 }
 0x48f   : > { %v4677_v15 = vrot.slane %v4675_v27, 7  ;;  %v5285_v56 = vshll.u32 %v7640_v23, 16  ;;  %v4683_v22 = vshrl.u32 %v7196_v44, 16  ;;  %v5283_v17 = vshrl.u32 %v7640_v23, 16  ;;  %v9823_v14 = vld [vmem:[#allocation3] sm:$0xff]  }
 0x490   : > { %v4518_v16 = vmax.f32 %v4486_v59, 0.0  ;;  %v4487_v39 = vadd.f32 %v9746_v20, %v4448_v6  ;;  %v4686_v34 = vshll.u32 %v7196_v44, 16  ;;  %v9821_v62 = vsel %vm1616_vm5, %v5525_v31, %v5526_v10  ;;  %v4978_v4 = vld [vmem:[#allocation3 + $0x2c] sm:$0x1] }
 0x491   : > { %v4680_v5 = vor.u32 %v4678_v54, %v4677_v15  ;;  %v4085_v48 = vpop.f32.mrb[80].mxu1  ;;  %v5287_v42 = vrot.slane %v5285_v56, 1  ;;  %v4685_v49 = vrot.slane %v4683_v22, 7  ;;  %7058 = vmatprep.mubr.msk.bf16.mxu1 %vm3559_vm3, %v9821_v62  ;;  %v4681_v23 = vrot.slane %v4677_v15, 4  ;;  %v9832_v56 = vld [vmem:[#allocation3 + $0x8] ss:$0 sps:$4 sm:$0xff]  }
 0x492   : > { %v7197_v25 = vpack.c.bf16 %v4518_v16, %v4518_v16  ;;  %v4519_v28 = vmax.f32 %v4487_v39, 0.0  ;;  %v4086_v30 = vadd.f32 %v4085_v48, %v9597_v24  ;;  %v4087_v9 = vpop.f32.mrb[81].mxu1  ;;  %v5290_v44 = vshll.u32 %v7641_v50, 16 }
 0x493   : > { %v4975_v3 = vsel %vm8776_vm13, %v4680_v5, %v4974_v37  ;;  %v4088_v27 = vpop.f32.mrb[82].mxu1  ;;  %v5271_v59 = vshrl.u32 %v9823_v14, 16  ;;  %v4688_v6 = vor.u32 %v4686_v34, %v4685_v49  ;;  %v4690_v31 = vrot.slane %v4685_v49, 4  ;;  %v4981_v9 = vld [vmem:[#allocation3 + $0x30] sm:$0xf] }
 0x494   : > { %4976 = vst [vmem:[#allocation3 + $0x24] sm:$0xf] %v4975_v3  ;;  %v4692_v54 = vshrl.u32 %v7197_v25, 16  ;;  %v4090_v24 = vpop.f32.mrb[83].mxu1  ;;  %v5288_v10 = vor.u32 %v5287_v42, %v5283_v17  ;;  %v4695_v46 = vshll.u32 %v7197_v25, 16  ;;  %v7198_v22 = vpack.c.bf16 %v4519_v28, %v4519_v28 }
 0x495   : > { %v4449_v15 = vadd.f32 %v9602_v0, %v4086_v30  ;;  %v4089_v16 = vadd.f32 %v4088_v27, %v9599_v35  ;;  %v7643_v39 = vld [vmem:[#allocation3 + $0x18] sm:$0xff]   ;;  %v4689_v50 = vsel %vm7831_vm8, %v4681_v23, %v4688_v6  ;;  %v4979_v5 = vsel %vm8566_vm12, %v4690_v31, %v4978_v4  ;;  %v7644_v48 = vld [vmem:[#allocation3 + $0x20] ss:$0 sps:$4 sm:$0xff]  }
 0x496   : > { %v4694_v37 = vrot.slane %v4692_v54, 7  ;;  %v5292_v34 = vrot.slane %v5290_v44, 1  ;;  %4977 = vst.msk [vmem:[#allocation3 + $0x28] sm:$0xf] %vm442_vm11, %v4689_v50  ;;  %4980 = vst [vmem:[#allocation3 + $0x2c] sm:$0x1] %v4979_v5 }
 0x497   : > { %v4700_v17 = vshrl.u32 %v7198_v22, 16  ;;  %v4488_v42 = vadd.f32 %v9746_v20, %v4449_v15  ;;  %v4450_v0 = vadd.f32 %v9604_v58, %v4089_v16  ;;  %v5273_v35 = vshll.u32 %v9823_v14, 16  ;;  %v4985_v50 = vld [vmem:[#allocation3 + $0x38] sm:$0x1] }
 0x498   : > { %v4697_v49 = vor.u32 %v4695_v46, %v4694_v37  ;;  %v4703_v25 = vshll.u32 %v7198_v22, 16  ;;  %v5293_v28 = vsel %vm1363_vm6, %v5288_v10, %v5292_v34  ;;  %v5278_v30 = vshll.u32 %v9832_v56, 16 }
 0x499   : > { %v4702_v23 = vrot.slane %v4700_v17, 7  ;;  %v4520_v3 = vmax.f32 %v4488_v42, 0.0  ;;  %v4489_v4 = vadd.f32 %v9746_v20, %v4450_v0  ;;  %5488 = vrot.lane.b32.xlu1 %v5293_v28, %s7735_s17  ;;  %v4093_v27 = vpop.f32.mrb[84].mxu1  ;;  %v5297_v44 = vshll.u32 %v7643_v39, 16 }
 0x49a   : > { %v4698_v6 = vrot.slane %v4694_v37, 4  ;;  %v4982_v58 = vsel %vm8776_vm13, %v4697_v49, %v4981_v9  ;;  %v4094_v31 = vadd.f32 %v4093_v27, %v9606_v47  ;;  %v4095_v54 = vpop.f32.mrb[85].mxu1  ;;  %v5302_v24 = vshll.u32 %v7644_v48, 16 }
 0x49b   : > { %4983 = vst [vmem:[#allocation3 + $0x30] sm:$0xf] %v4982_v58  ;;  %v4705_v10 = vor.u32 %v4703_v25, %v4702_v23  ;;  %v4707_v46 = vrot.slane %v4702_v23, 4  ;;  %v7199_v22 = vpack.c.bf16 %v4520_v3, %v4520_v3  ;;  %v4521_v15 = vmax.f32 %v4489_v4, 0.0  ;;  %v4096_v16 = vpop.f32.mrb[86].mxu1  ;;  %v7696_v4 = vld [vmem:[%s10720_s6 + $0x48] sm:$0xff]  }
 0x49c   : > { %v4451_v5 = vadd.f32 %v9614_v63, %v4094_v31  ;;  %v4097_v34 = vadd.f32 %v4096_v16, %v9608_v51  ;;  %v4098_v17 = vpop.f32.mrb[87].mxu1  ;;  %v5295_v37 = vshrl.u32 %v7643_v39, 16  ;;  %v5299_v42 = vrot.slane %v5297_v44, 1  ;;  %v4988_v54 = vld [vmem:[#allocation3 + $0x3c] sm:$0xf]  ;;  %6054 = vmatpush1.bf16.msra.mxu0 %v7696_v4 }
 0x49d   : > { %v4706_v0 = vsel %vm7831_vm8, %v4698_v6, %v4705_v10  ;;  %v4986_v47 = vsel %vm8566_vm12, %v4707_v46, %v4985_v50  ;;  %v4709_v48 = vshrl.u32 %v7199_v22, 16  ;;  %v5304_v49 = vrot.slane %v5302_v24, 1  ;;  %v7646_v23 = vld [vmem:[#allocation3 + $0x24] sm:$0xff]   ;;  %v7647_v3 = vld [vmem:[#allocation3 + $0x2c] ss:$0 sps:$4 sm:$0xff]   ;;  %6055 = vmatprep.subr.bf16.mxu0 %v10763_v13 }
 0x49e   : > { %4984 = vst.msk [vmem:[#allocation3 + $0x34] sm:$0xf] %vm442_vm11, %v4706_v0  ;;  %4987 = vst [vmem:[#allocation3 + $0x38] sm:$0x1] %v4986_v47  ;;  %v7200_v25 = vpack.c.bf16 %v4521_v15, %v4521_v15  ;;  %v4490_v28 = vadd.f32 %v9746_v20, %v4451_v5  ;;  %v4452_v63 = vadd.f32 %v9616_v52, %v4097_v34  ;;  %v4712_v39 = vshll.u32 %v7199_v22, 16 }
 0x49f   : > { %v5300_v51 = vor.u32 %v5299_v42, %v5295_v37  ;;  %v4711_v9 = vrot.slane %v4709_v48, 7  ;;  %v9864_v58 = vrot.slane %v5273_v35, 1  ;;  %v9867_v46 = vrot.slane %v5278_v30, 1  ;;  %v4992_v47 = vld [vmem:[#allocation3 + $0x44] sm:$0x1] }
 0x4a0   : > { %v4717_v27 = vshrl.u32 %v7200_v25, 16  ;;  %v4522_v44 = vmax.f32 %v4490_v28, 0.0  ;;  %v4491_v6 = vadd.f32 %v9746_v20, %v4452_v63  ;;  %v4720_v24 = vshll.u32 %v7200_v25, 16 }
 0x4a1   : > { %v4714_v31 = vor.u32 %v4712_v39, %v4711_v9  ;;  %v5305_v52 = vsel %vm1363_vm6, %v5300_v51, %v5304_v49  ;;  %v4101_v10 = vpop.f32.mrb[88].mxu1  ;;  %v4715_v35 = vrot.slane %v4711_v9, 4  ;;  %v5309_v37 = vshll.u32 %v7646_v23, 16 }
 0x4a2   : > { %v4719_v22 = vrot.slane %v4717_v27, 7  ;;  %v7201_v15 = vpack.c.bf16 %v4522_v44, %v4522_v44  ;;  %v4523_v16 = vmax.f32 %v4491_v6, 0.0  ;;  %5490 = vrot.lane.b32.xlu0 %v5305_v52, %s7735_s17  ;;  %v4102_v50 = vadd.f32 %v4101_v10, %v9618_v21  ;;  %v4103_v5 = vpop.f32.mrb[89].mxu1  ;;  %v7698_v10 = vld [vmem:[%s10720_s6 + $0x50] sm:$0xff]  }
 0x4a3   : > { %v4989_v34 = vsel %vm8776_vm13, %v4714_v31, %v4988_v54  ;;  %v4104_v17 = vpop.f32.mrb[90].mxu1  ;;  %v5314_v42 = vshll.u32 %v7647_v3, 16  ;;  %v5307_v25 = vshrl.u32 %v7646_v23, 16  ;;  %v5311_v51 = vrot.slane %v5309_v37, 1  ;;  %6056 = vmatpush1.bf16.msra.mxu0 %v7698_v10  ;;  %v5002_v10 = vld [vmem:[#allocation3 + $0x54] sm:$0xf] }
 0x4a4   : > { %4990 = vst [vmem:[#allocation3 + $0x3c] sm:$0xf] %v4989_v34  ;;  %v4722_v30 = vor.u32 %v4720_v24, %v4719_v22  ;;  %v4724_v0 = vrot.slane %v4719_v22, 4  ;;  %v4726_v48 = vshrl.u32 %v7201_v15, 16  ;;  %v4106_v49 = vpop.f32.mrb[91].mxu1  ;;  %v7202_v28 = vpack.c.bf16 %v4523_v16, %v4523_v16  ;;  %6057 = vmatprep.subr.bf16.mxu0 %v10763_v13 }
 0x4a5   : > { %v4453_v21 = vadd.f32 %v9622_v32, %v4102_v50  ;;  %v4105_v63 = vadd.f32 %v4104_v17, %v9620_v40  ;;  %v7649_v9 = vld [vmem:[#allocation3 + $0x30] sm:$0xff]   ;;  %v4729_v27 = vshll.u32 %v7201_v15, 16  ;;  %v7650_v44 = vld [vmem:[#allocation3 + $0x38] ss:$0 sps:$4 sm:$0xff]   ;;  %v5316_v40 = vrot.slane %v5314_v42, 1 }
 0x4a6   : > { %v4723_v39 = vsel %vm7831_vm8, %v4715_v35, %v4722_v30  ;;  %v4993_v3 = vsel %vm8566_vm12, %v4724_v0, %v4992_v47  ;;  %v4728_v4 = vrot.slane %v4726_v48, 7  ;;  %v4734_v23 = vshrl.u32 %v7202_v28, 16  ;;  %v4995_v22 = vld [vmem:[#allocation3 + $0x48] sm:$0xf] }
 0x4a7   : > { %4991 = vst.msk [vmem:[#allocation3 + $0x40] sm:$0xf] %vm442_vm11, %v4723_v39  ;;  %4994 = vst [vmem:[#allocation3 + $0x44] sm:$0x1] %v4993_v3  ;;  %v4492_v6 = vadd.f32 %v9746_v20, %v4453_v21  ;;  %v4454_v32 = vadd.f32 %v9627_v19, %v4105_v63  ;;  %v4737_v24 = vshll.u32 %v7202_v28, 16  ;;  %v5312_v52 = vor.u32 %v5311_v51, %v5307_v25 }
 0x4a8   : > { %v4731_v31 = vor.u32 %v4729_v27, %v4728_v4  ;;  %v4732_v54 = vrot.slane %v4728_v4, 4  ;;  %v4736_v15 = vrot.slane %v4734_v23, 7  ;;  %v5321_v35 = vshll.u32 %v7649_v9, 16  ;;  %v4999_v25 = vld [vmem:[#allocation3 + $0x50] sm:$0x1] }
 0x4a9   : > { %v4524_v16 = vmax.f32 %v4492_v6, 0.0  ;;  %v4493_v50 = vadd.f32 %v9746_v20, %v4454_v32  ;;  %v4109_v5 = vpop.f32.mrb[92].mxu1  ;;  %v5317_v19 = vsel %vm1363_vm6, %v5312_v52, %v5316_v40  ;;  %v5326_v42 = vshll.u32 %v7650_v44, 16 }
 0x4aa   : > { %v4996_v34 = vsel %vm8776_vm13, %v4731_v31, %v4995_v22  ;;  %v4110_v17 = vadd.f32 %v4109_v5, %v9629_v57  ;;  %v4111_v37 = vpop.f32.mrb[93].mxu1  ;;  %v4739_v30 = vor.u32 %v4737_v24, %v4736_v15  ;;  %v4741_v0 = vrot.slane %v4736_v15, 4  ;;  %5492 = vrot.lane.b32.xlu1 %v5317_v19, %s7735_s17 }
 0x4ab   : > { %4997 = vst [vmem:[#allocation3 + $0x48] sm:$0xf] %v4996_v34  ;;  %v7203_v47 = vpack.c.bf16 %v4524_v16, %v4524_v16  ;;  %v4525_v48 = vmax.f32 %v4493_v50, 0.0  ;;  %v4112_v49 = vpop.f32.mrb[94].mxu1  ;;  %v5319_v57 = vshrl.u32 %v7649_v9, 16  ;;  %v5323_v51 = vrot.slane %v5321_v35, 1 }
 0x4ac   : > { %v4455_v28 = vadd.f32 %v9637_v45, %v4110_v17  ;;  %v4113_v21 = vadd.f32 %v4112_v49, %v9632_v18  ;;  %v4114_v63 = vpop.f32.mrb[95].mxu1  ;;  %v4740_v39 = vsel %vm7831_vm8, %v4732_v54, %v4739_v30  ;;  %v5000_v3 = vsel %vm8566_vm12, %v4741_v0, %v4999_v25 }
 0x4ad   : > { %v4743_v4 = vshrl.u32 %v7203_v47, 16  ;;  %v5276_v27 = vor.u32 %v9864_v58, %v5271_v59  ;;  %4998 = vst.msk [vmem:[#allocation3 + $0x4c] sm:$0xf] %vm442_vm11, %v4740_v39  ;;  %5001 = vst [vmem:[#allocation3 + $0x50] sm:$0x1] %v5000_v3  ;;  %v7204_v45 = vpack.c.bf16 %v4525_v48, %v4525_v48  ;;  %v5324_v44 = vor.u32 %v5323_v51, %v5319_v57  ;;  %v7700_v58 = vld [vmem:[%s10720_s6 + $0x58] sm:$0xff]  }
 0x4ae   : > { %v4494_v18 = vadd.f32 %v9746_v20, %v4455_v28  ;;  %v4456_v9 = vadd.f32 %v9639_v36, %v4113_v21  ;;  %v4746_v6 = vshll.u32 %v7203_v47, 16  ;;  %v5328_v32 = vrot.slane %v5326_v42, 1  ;;  %v9905_v40 = vld [vmem:[#allocation3 + $0x3c] sm:$0xff]   ;;  %v9907_v31 = vld [vmem:[#allocation3 + $0x44] ss:$0 sps:$4 sm:$0xff]   ;;  %6058 = vmatpush1.bf16.msra.mxu0 %v7700_v58 }
 0x4af   : > { %v4745_v23 = vrot.slane %v4743_v4, 7  ;;  %v4751_v54 = vshrl.u32 %v7204_v45, 16  ;;  %v4754_v22 = vshll.u32 %v7204_v45, 16  ;;  %v9916_v16 = vsel %vm1363_vm6, %v5276_v27, %v9867_v46  ;;  %6296 = vmatprep.subr.bf16.mxu0 %v10763_v13  ;;  %v5006_v48 = vld [vmem:[#allocation3 + $0x5c] sm:$0x1] }
 0x4b0   : > { %v4526_v24 = vmax.f32 %v4494_v18, 0.0  ;;  %v4495_v59 = vadd.f32 %v9746_v20, %v4456_v9  ;;  %v5329_v36 = vsel %vm1363_vm6, %v5324_v44, %v5328_v32  ;;  %v5333_v30 = vshll.u32 %v9905_v40, 16 }
 0x4b1   : > { %v4748_v52 = vor.u32 %v4746_v6, %v4745_v23  ;;  %v4117_v15 = vpop.f32.mrb[96].mxu1  ;;  %v4753_v50 = vrot.slane %v4751_v54, 7  ;;  %5494 = vrot.lane.b32.xlu0 %v5329_v36, %s7735_s17  ;;  %v4749_v17 = vrot.slane %v4745_v23, 4  ;;  %v5338_v0 = vshll.u32 %v9907_v31, 16  ;;  %v5009_v54 = vld [vmem:[#allocation3 + $0x60] sm:$0xf] }
 0x4b2   : > { %v7205_v5 = vpack.c.bf16 %v4526_v24, %v4526_v24  ;;  %v4527_v35 = vmax.f32 %v4495_v59, 0.0  ;;  %v4118_v34 = vadd.f32 %v4117_v15, %v9641_v2  ;;  %v4119_v19 = vpop.f32.mrb[97].mxu1  ;;  %v5331_v2 = vshrl.u32 %v9905_v40, 16 }
 0x4b3   : > { %v5003_v37 = vsel %vm8776_vm13, %v4748_v52, %v5002_v10  ;;  %v4120_v42 = vpop.f32.mrb[98].mxu1  ;;  %v4756_v46 = vor.u32 %v4754_v22, %v4753_v50  ;;  %v4758_v47 = vrot.slane %v4753_v50, 4  ;;  %v5335_v57 = vrot.slane %v5333_v30, 1 }
 0x4b4   : > { %5004 = vst [vmem:[#allocation3 + $0x54] sm:$0xf] %v5003_v37  ;;  %v4760_v49 = vshrl.u32 %v7205_v5, 16  ;;  %v4122_v25 = vpop.f32.mrb[99].mxu1  ;;  %v7206_v28 = vpack.c.bf16 %v4527_v35, %v4527_v35  ;;  %v4457_v21 = vadd.f32 %v9646_v55, %v4118_v34  ;;  %v4121_v63 = vadd.f32 %v4120_v42, %v9644_v41  ;;  %v9928_v51 = vld [vmem:[#allocation3 + $0x48] sm:$0xff]  }
 0x4b5   : > { %v4757_v39 = vsel %vm7831_vm8, %v4749_v17, %v4756_v46  ;;  %v5007_v3 = vsel %vm8566_vm12, %v4758_v47, %v5006_v48  ;;  %v4763_v27 = vshll.u32 %v7205_v5, 16  ;;  %v9934_v45 = vld [vmem:[#allocation3 + $0x50] ss:$0 sps:$4 sm:$0xff]   ;;  %v5340_v9 = vrot.slane %v5338_v0, 1  ;;  %v5013_v37 = vld [vmem:[#allocation3 + $0x68] sm:$0x1] }
 0x4b6   : > { %v4762_v4 = vrot.slane %v4760_v49, 7  ;;  %5005 = vst.msk [vmem:[#allocation3 + $0x58] sm:$0xf] %vm442_vm11, %v4757_v39  ;;  %5008 = vst [vmem:[#allocation3 + $0x5c] sm:$0x1] %v5007_v3  ;;  %v4768_v18 = vshrl.u32 %v7206_v28, 16  ;;  %v4496_v55 = vadd.f32 %v9746_v20, %v4457_v21  ;;  %v4458_v41 = vadd.f32 %v9648_v12, %v4121_v63 }
 0x4b7   : > { %v4771_v6 = vshll.u32 %v7206_v28, 16  ;;  %v5336_v32 = vor.u32 %v5335_v57, %v5331_v2  ;;  %v5345_v10 = vshll.u32 %v9928_v51, 16  ;;  %v5350_v50 = vshll.u32 %v9934_v45, 16 }
 0x4b8   : > { %v4765_v44 = vor.u32 %v4763_v27, %v4762_v4  ;;  %v4766_v23 = vrot.slane %v4762_v4, 4  ;;  %v4770_v24 = vrot.slane %v4768_v18, 7  ;;  %v4528_v59 = vmax.f32 %v4496_v55, 0.0  ;;  %v5016_v55 = vld [vmem:[#allocation3 + $0x6c] sm:$0xf] }
 0x4b9   : > { %v4497_v58 = vadd.f32 %v9746_v20, %v4458_v41  ;;  %v4125_v52 = vpop.f32.mrb[100].mxu1  ;;  %v5341_v36 = vsel %vm1363_vm6, %v5336_v32, %v5340_v9  ;;  %v5343_v46 = vshrl.u32 %v9928_v51, 16  ;;  %v5352_v63 = vrot.slane %v5350_v50, 1 }
 0x4ba   : > { %v5010_v22 = vsel %vm8776_vm13, %v4765_v44, %v5009_v54  ;;  %v4126_v12 = vadd.f32 %v4125_v52, %v9650_v53  ;;  %v4127_v15 = vpop.f32.mrb[101].mxu1  ;;  %v4773_v5 = vor.u32 %v4771_v6, %v4770_v24  ;;  %v4775_v35 = vrot.slane %v4770_v24, 4  ;;  %5496 = vrot.lane.b32.xlu1 %v5341_v36, %s7735_s17  ;;  %v5020_v36 = vld [vmem:[#allocation3 + $0x74] sm:$0x1] }
 0x4bb   : > { %5011 = vst [vmem:[#allocation3 + $0x60] sm:$0xf] %v5010_v22  ;;  %v7207_v34 = vpack.c.bf16 %v4528_v59, %v4528_v59  ;;  %v4529_v19 = vmax.f32 %v4497_v58, 0.0  ;;  %v4128_v17 = vpop.f32.mrb[102].mxu1  ;;  %v5347_v53 = vrot.slane %v5345_v10, 1 }
 0x4bc   : > { %v4459_v42 = vadd.f32 %v9658_v43, %v4126_v12  ;;  %v4129_v30 = vadd.f32 %v4128_v17, %v9652_v7  ;;  %v4130_v0 = vpop.f32.mrb[103].mxu1  ;;  %v4774_v47 = vsel %vm7831_vm8, %v4766_v23, %v4773_v5  ;;  %v5014_v48 = vsel %vm8566_vm12, %v4775_v35, %v5013_v37 }
 0x4bd   : > { %v4777_v49 = vshrl.u32 %v7207_v34, 16  ;;  %5012 = vst.msk [vmem:[#allocation3 + $0x64] sm:$0xf] %vm442_vm11, %v4774_v47  ;;  %5015 = vst [vmem:[#allocation3 + $0x68] sm:$0x1] %v5014_v48  ;;  %v7208_v25 = vpack.c.bf16 %v4529_v19, %v4529_v19  ;;  %v5348_v7 = vor.u32 %v5347_v53, %v5343_v46  ;;  %v4780_v21 = vshll.u32 %v7207_v34, 16 }
 0x4be   : > { %v4498_v2 = vadd.f32 %v9746_v20, %v4459_v42  ;;  %v4460_v43 = vadd.f32 %v9660_v1, %v4129_v30  ;;  %5486 = vrot.lane.b32.xlu1 %v9916_v16, %s7735_s17  ;;  %v9959_v57 = vld [vmem:[#allocation3 + $0x54] sm:$0xff]   ;;  %v9961_v39 = vld [vmem:[#allocation3 + $0x5c] ss:$0 sps:$4 sm:$0xff]  }
 0x4bf   : > { %v4779_v28 = vrot.slane %v4777_v49, 7  ;;  %v4785_v3 = vshrl.u32 %v7208_v25, 16  ;;  %v4788_v41 = vshll.u32 %v7208_v25, 16  ;;  %v5353_v1 = vsel %vm1363_vm6, %v5348_v7, %v5352_v63 }
 0x4c0   : > { %v4530_v4 = vmax.f32 %v4498_v2, 0.0  ;;  %v4499_v27 = vadd.f32 %v9746_v20, %v4460_v43  ;;  %5498 = vrot.lane.b32.xlu0 %v5353_v1, %s7735_s17  ;;  %v5357_v58 = vshll.u32 %v9959_v57, 16  ;;  %v5362_v52 = vshll.u32 %v9961_v39, 16  ;;  %v5023_v2 = vld [vmem:[#allocation3 + $0x78] sm:$0xf] }
 0x4c1   : > { %v4782_v18 = vor.u32 %v4780_v21, %v4779_v28  ;;  %v4133_v9 = vpop.f32.mrb[104].mxu1  ;;  %v4787_v44 = vrot.slane %v4785_v3, 7  ;;  %v4783_v54 = vrot.slane %v4779_v28, 4  ;;  %v5355_v50 = vshrl.u32 %v9959_v57, 16 }
 0x4c2   : > { %v7209_v23 = vpack.c.bf16 %v4530_v4, %v4530_v4  ;;  %v4531_v6 = vmax.f32 %v4499_v27, 0.0  ;;  %v4134_v16 = vadd.f32 %v4133_v9, %v9662_v11  ;;  %v4135_v32 = vpop.f32.mrb[105].mxu1  ;;  %v5359_v34 = vrot.slane %v5357_v58, 1 }
 0x4c3   : > { %v5017_v24 = vsel %vm8776_vm13, %v4782_v18, %v5016_v55  ;;  %v4136_v59 = vpop.f32.mrb[106].mxu1  ;;  %v4790_v10 = vor.u32 %v4788_v41, %v4787_v44  ;;  %v4792_v22 = vrot.slane %v4787_v44, 4  ;;  %v5364_v53 = vrot.slane %v5362_v52, 1  ;;  %v10766_v32 = vld [vmem:[#allocation4_spill] sm:$0xff] }
 0x4c4   : > { %5018 = vst [vmem:[#allocation3 + $0x6c] sm:$0xf] %v5017_v24  ;;  %v4794_v12 = vshrl.u32 %v7209_v23, 16  ;;  %v4138_v15 = vpop.f32.mrb[107].mxu1  ;;  %v7210_v5 = vpack.c.bf16 %v4531_v6, %v4531_v6  ;;  %v4461_v11 = vadd.f32 %v9666_v38, %v4134_v16  ;;  %v4137_v35 = vadd.f32 %v4136_v59, %v9664_v60  ;;  %v9974_v19 = vld [vmem:[#allocation3 + $0x60] sm:$0xff]  }
 0x4c5   : > { %v4791_v17 = vsel %vm7831_vm8, %v4783_v54, %v4790_v10  ;;  %v5021_v37 = vsel %vm8566_vm12, %v4792_v22, %v5020_v36  ;;  %v4797_v30 = vshll.u32 %v7209_v23, 16  ;;  %v9980_v0 = vld [vmem:[#allocation3 + $0x68] ss:$0 sps:$4 sm:$0xff]   ;;  %v5360_v25 = vor.u32 %v5359_v34, %v5355_v50  ;;  %v5027_v23 = vld [vmem:[#allocation3 + $0x80] sm:$0x1] }
 0x4c6   : > { %v4796_v42 = vrot.slane %v4794_v12, 7  ;;  %5019 = vst.msk [vmem:[#allocation3 + $0x70] sm:$0xf] %vm442_vm11, %v4791_v17  ;;  %5022 = vst [vmem:[#allocation3 + $0x74] sm:$0x1] %v5021_v37  ;;  %v4802_v46 = vshrl.u32 %v7210_v5, 16  ;;  %v4500_v38 = vadd.f32 %v9746_v20, %v4461_v11  ;;  %v4462_v60 = vadd.f32 %v9671_v26, %v4137_v35 }
 0x4c7   : > { %v4805_v49 = vshll.u32 %v7210_v5, 16  ;;  %v5369_v63 = vshll.u32 %v9974_v19, 16  ;;  %v5365_v4 = vsel %vm1363_vm6, %v5360_v25, %v5364_v53  ;;  %v5374_v18 = vshll.u32 %v9980_v0, 16  ;;  %v10765_v6 = vld [vmem:[#allocation5_spill] sm:$0xff]  ;;  %v10767_v12 = vld [vmem:[#allocation6_spill] sm:$0xff] }
 0x4c8   : > { %v4799_v47 = vor.u32 %v4797_v30, %v4796_v42  ;;  %v4800_v48 = vrot.slane %v4796_v42, 4  ;;  %v4804_v43 = vrot.slane %v4802_v46, 7  ;;  %v4532_v7 = vmax.f32 %v4500_v38, 0.0  ;;  %5500 = vrot.lane.b32.xlu0 %v5365_v4, %s7735_s17 }
 0x4c9   : > { %v4501_v28 = vadd.f32 %v9746_v20, %v4462_v60  ;;  %v4141_v21 = vpop.f32.mrb[108].mxu1  ;;  %v5367_v59 = vshrl.u32 %v9974_v19, 16  ;;  %v5376_v35 = vrot.slane %v5374_v18, 1  ;;  %v5030_v60 = vld [vmem:[#allocation3 + $0x84] sm:$0xf] }
 0x4ca   : > { %v5024_v3 = vsel %vm8776_vm13, %v4799_v47, %v5023_v2  ;;  %v4142_v26 = vadd.f32 %v4141_v21, %v9673_v29  ;;  %v4143_v27 = vpop.f32.mrb[109].mxu1  ;;  %v4807_v55 = vor.u32 %v4805_v49, %v4804_v43  ;;  %v4809_v41 = vrot.slane %v4804_v43, 4  ;;  %v10768_v43 = vld [vmem:[#allocation7_spill] sm:$0xff]  ;;  %v5034_v18 = vld [vmem:[#allocation3 + $0x8c] sm:$0x1] }
 0x4cb   : > { %5025 = vst [vmem:[#allocation3 + $0x78] sm:$0xf] %v5024_v3  ;;  %v7211_v1 = vpack.c.bf16 %v4532_v7, %v4532_v7  ;;  %v4533_v9 = vmax.f32 %v4501_v28, 0.0  ;;  %v4144_v44 = vpop.f32.mrb[110].mxu1  ;;  %v5371_v29 = vrot.slane %v5369_v63, 1 }
 0x4cc   : > { %v4463_v16 = vadd.f32 %v10765_v6, %v4142_v26  ;;  %v4145_v54 = vadd.f32 %v4144_v44, %v10766_v32  ;;  %v4146_v24 = vpop.f32.mrb[111].mxu1  ;;  %v4808_v58 = vsel %vm7831_vm8, %v4800_v48, %v4807_v55  ;;  %v5028_v52 = vsel %vm8566_vm12, %v4809_v41, %v5027_v23  ;;  %v10769_v44 = vld [vmem:[#allocation9_spill] sm:$0xff]  ;;  %v10770_v6 = vld [vmem:[#allocation8_spill] sm:$0xff] }
 0x4cd   : > { %v4811_v10 = vshrl.u32 %v7211_v1, 16  ;;  %5026 = vst.msk [vmem:[#allocation3 + $0x7c] sm:$0xf] %vm442_vm11, %v4808_v58  ;;  %5029 = vst [vmem:[#allocation3 + $0x80] sm:$0x1] %v5028_v52  ;;  %v7212_v22 = vpack.c.bf16 %v4533_v9, %v4533_v9  ;;  %v5372_v50 = vor.u32 %v5371_v29, %v5367_v59  ;;  %v4814_v11 = vshll.u32 %v7211_v1, 16 }
 0x4ce   : > { %v4502_v36 = vadd.f32 %v9746_v20, %v4463_v16  ;;  %v4464_v15 = vadd.f32 %v10767_v12, %v4145_v54  ;;  %v10003_v34 = vld [vmem:[#allocation3 + $0x6c] sm:$0xff]   ;;  %v10005_v17 = vld [vmem:[#allocation3 + $0x74] ss:$0 sps:$4 sm:$0xff]  }
 0x4cf   : > { %v4813_v5 = vrot.slane %v4811_v10, 7  ;;  %v4819_v37 = vshrl.u32 %v7212_v22, 16  ;;  %v4822_v53 = vshll.u32 %v7212_v22, 16  ;;  %v5377_v47 = vsel %vm1363_vm6, %v5372_v50, %v5376_v35 }
 0x4d0   : > { %v4534_v42 = vmax.f32 %v4502_v36, 0.0  ;;  %v4503_v30 = vadd.f32 %v9746_v20, %v4464_v15  ;;  %5502 = vrot.lane.b32.xlu1 %v5377_v47, %s7735_s17  ;;  %v5379_v20 = vshrl.u32 %v10003_v34, 16  ;;  %v5381_v3 = vshll.u32 %v10003_v34, 16  ;;  %v10030_v36 = vld [vmem:[%s10719_s5] ss:$0 sm:$0xff] }
 0x4d1   : > { %v4816_v46 = vor.u32 %v4814_v11, %v4813_v5  ;;  %v4817_v38 = vrot.slane %v4813_v5, 4  ;;  %v4149_v48 = vpop.f32.mrb[112].mxu1  ;;  %v4821_v49 = vrot.slane %v4819_v37, 7  ;;  %v5386_v4 = vshll.u32 %v10005_v17, 16  ;;  %v10771_v15 = vld [vmem:[#allocation10_spill] sm:$0xff] }
 0x4d2   : > { %v7213_v25 = vpack.c.bf16 %v4534_v42, %v4534_v42  ;;  %v4535_v2 = vmax.f32 %v4503_v30, 0.0  ;;  %v4150_v7 = vadd.f32 %v4149_v48, %v10768_v43  ;;  %v4151_v28 = vpop.f32.mrb[113].mxu1  ;;  %v5383_v32 = vrot.slane %v5381_v3, 1  ;;  %v5037_v42 = vld [vmem:[#allocation3 + $0x90] sm:$0xf] }
 0x4d3   : > { %v5031_v21 = vsel %vm8776_vm13, %v4816_v46, %v5030_v60  ;;  %v4152_v63 = vpop.f32.mrb[114].mxu1  ;;  %v4824_v26 = vor.u32 %v4822_v53, %v4821_v49  ;;  %v4826_v27 = vrot.slane %v4821_v49, 4  ;;  %v5388_v58 = vrot.slane %v5386_v4, 1  ;;  %v10772_v49 = vld [vmem:[#allocation11_spill] sm:$0xff]  ;;  %v5041_v3 = vld [vmem:[#allocation3 + $0x98] sm:$0x1] }
 0x4d4   : > { %5032 = vst [vmem:[#allocation3 + $0x84] sm:$0xf] %v5031_v21  ;;  %v4828_v55 = vshrl.u32 %v7213_v25, 16  ;;  %v4831_v41 = vshll.u32 %v7213_v25, 16  ;;  %v4154_v1 = vpop.f32.mrb[115].mxu1  ;;  %v7214_v9 = vpack.c.bf16 %v4535_v2, %v4535_v2  ;;  %v4465_v23 = vadd.f32 %v10769_v44, %v4150_v7  ;;  %v10018_v54 = vld [vmem:[#allocation3 + $0x78] sm:$0xff]  }
 0x4d5   : > { %v4153_v16 = vadd.f32 %v4152_v63, %v10770_v6  ;;  %v4825_v24 = vsel %vm7831_vm8, %v4817_v38, %v4824_v26  ;;  %v5035_v59 = vsel %vm8566_vm12, %v4826_v27, %v5034_v18  ;;  %v10024_v52 = vld [vmem:[#allocation3 + $0x80] ss:$0 sps:$4 sm:$0xff]   ;;  %v5384_v35 = vor.u32 %v5383_v32, %v5379_v20  ;;  %v10774_v27 = vld [vmem:[#allocation12_spill] sm:$0xff] }
 0x4d6   : > { %v4830_v29 = vrot.slane %v4828_v55, 7  ;;  %5033 = vst.msk [vmem:[#allocation3 + $0x88] sm:$0xf] %vm442_vm11, %v4825_v24  ;;  %5036 = vst [vmem:[#allocation3 + $0x8c] sm:$0x1] %v5035_v59  ;;  %v4836_v10 = vshrl.u32 %v7214_v9, 16  ;;  %v4504_v12 = vadd.f32 %v10030_v36, %v4465_v23 }
 0x4d7   : > { %v4839_v22 = vshll.u32 %v7214_v9, 16  ;;  %v4466_v50 = vadd.f32 %v10771_v15, %v4153_v16  ;;  %v5391_v37 = vshrl.u32 %v10018_v54, 16  ;;  %v5393_v53 = vshll.u32 %v10018_v54, 16  ;;  %v10773_v4 = vld [vmem:[#allocation13_spill] sm:$0xff]  ;;  %v10775_v24 = vld [vmem:[#allocation14_spill] sm:$0xff] }
 0x4d8   : > { %v4833_v5 = vor.u32 %v4831_v41, %v4830_v29  ;;  %v4834_v11 = vrot.slane %v4830_v29, 4  ;;  %v4838_v30 = vrot.slane %v4836_v10, 7  ;;  %v4536_v46 = vmax.f32 %v4504_v12, 0.0 }
 0x4d9   : > { %v4505_v38 = vadd.f32 %v10030_v36, %v4466_v50  ;;  %v4157_v60 = vpop.f32.mrb[116].mxu1  ;;  %v5389_v48 = vsel %vm1363_vm6, %v5384_v35, %v5388_v58  ;;  %v5398_v43 = vshll.u32 %v10024_v52, 16  ;;  %v5395_v41 = vrot.slane %v5393_v53, 1 }
 0x4da   : > { %v5038_v47 = vsel %vm8776_vm13, %v4833_v5, %v5037_v42  ;;  %v4158_v25 = vadd.f32 %v4157_v60, %v10772_v49  ;;  %v4159_v2 = vpop.f32.mrb[117].mxu1  ;;  %v4841_v7 = vor.u32 %v4839_v22, %v4838_v30  ;;  %v4843_v28 = vrot.slane %v4838_v30, 4  ;;  %5504 = vrot.lane.b32.xlu0 %v5389_v48, %s7735_s17  ;;  %v5044_v30 = vld [vmem:[#allocation3 + $0x9c] sm:$0xf]  ;;  %v10776_v48 = vld [vmem:[#allocation15_spill] sm:$0xff] }
 0x4db   : > { %5039 = vst [vmem:[#allocation3 + $0x90] sm:$0xf] %v5038_v47  ;;  %v7215_v21 = vpack.c.bf16 %v4536_v46, %v4536_v46  ;;  %v4537_v63 = vmax.f32 %v4505_v38, 0.0  ;;  %v4160_v20 = vpop.f32.mrb[118].mxu1  ;;  %v5400_v1 = vrot.slane %v5398_v43, 1  ;;  %v5396_v29 = vor.u32 %v5395_v41, %v5391_v37 }
 0x4dc   : > { %v4467_v26 = vadd.f32 %v10773_v4, %v4158_v25  ;;  %v4161_v18 = vadd.f32 %v4160_v20, %v10774_v27  ;;  %v4162_v55 = vpop.f32.mrb[119].mxu1  ;;  %v4842_v9 = vsel %vm7831_vm8, %v4834_v11, %v4841_v7  ;;  %v5042_v44 = vsel %vm8566_vm12, %v4843_v28, %v5041_v3  ;;  %v10777_v27 = vld [vmem:[#allocation17_spill] sm:$0xff] }
 0x4dd   : > { %v4845_v23 = vshrl.u32 %v7215_v21, 16  ;;  %v4848_v6 = vshll.u32 %v7215_v21, 16  ;;  %5040 = vst.msk [vmem:[#allocation3 + $0x94] sm:$0xf] %vm442_vm11, %v4842_v9  ;;  %5043 = vst [vmem:[#allocation3 + $0x98] sm:$0x1] %v5042_v44  ;;  %v7216_v16 = vpack.c.bf16 %v4537_v63, %v4537_v63  ;;  %v5401_v38 = vsel %vm1363_vm6, %v5396_v29, %v5400_v1 }
 0x4de   : > { %v4506_v32 = vadd.f32 %v10030_v36, %v4467_v26  ;;  %v4468_v59 = vadd.f32 %v10775_v24, %v4161_v18  ;;  %v10052_v10 = vld [vmem:[#allocation3 + $0x84] sm:$0xff]   ;;  %v10054_v22 = vld [vmem:[#allocation3 + $0x8c] ss:$0 sps:$4 sm:$0xff]   ;;  %v5522_v12 = vrot.slane %v9823_v14, 1  ;;  %v5523_v15 = vrot.slane %v9832_v56, 1  ;;  %5506 = vrot.lane.b32.xlu1 %v5401_v38, %s7735_s17  ;;  %v10778_v55 = vld [vmem:[#allocation16_spill] sm:$0xff] }
 0x4df   : > { %v4847_v58 = vrot.slane %v4845_v23, 7  ;;  %v4853_v50 = vshrl.u32 %v7216_v16, 16  ;;  %v4856_v46 = vshll.u32 %v7216_v16, 16  ;;  %v5405_v2 = vshll.u32 %v10052_v10, 16  ;;  %v5048_v63 = vld [vmem:[#allocation3 + $0xa4] sm:$0x1] }
 0x4e0   : > { %v4538_v5 = vmax.f32 %v4506_v32, 0.0  ;;  %v4507_v11 = vadd.f32 %v10030_v36, %v4468_v59  ;;  %v5410_v43 = vshll.u32 %v10054_v22, 16  ;;  %v5524_v7 = vsel %vm1616_vm5, %v5522_v12, %v5523_v15  ;;  %v10779_v29 = vld [vmem:[#allocation18_spill] sm:$0xff] }
 0x4e1   : > { %v4850_v35 = vor.u32 %v4848_v6, %v4847_v58  ;;  %v4851_v42 = vrot.slane %v4847_v58, 4  ;;  %v4165_v37 = vpop.f32.mrb[120].mxu1  ;;  %v4855_v60 = vrot.slane %v4853_v50, 7  ;;  %v5403_v4 = vshrl.u32 %v10052_v10, 16  ;;  %7086 = vmatprep.mubr.msk.bf16.mxu0 %vm3559_vm3, %v5524_v7 }
 0x4e2   : > { %v7217_v53 = vpack.c.bf16 %v4538_v5, %v4538_v5  ;;  %v4539_v47 = vmax.f32 %v4507_v11, 0.0  ;;  %v4166_v14 = vadd.f32 %v4165_v37, %v10776_v48  ;;  %v4167_v49 = vpop.f32.mrb[121].mxu1  ;;  %v5407_v1 = vrot.slane %v5405_v2, 1 }
 0x4e3   : > { %v5045_v56 = vsel %vm8776_vm13, %v4850_v35, %v5044_v30  ;;  %v4168_v25 = vpop.f32.mrb[122].mxu1  ;;  %v4858_v28 = vor.u32 %v4856_v46, %v4855_v60  ;;  %v4860_v21 = vrot.slane %v4855_v60, 4  ;;  %v5412_v12 = vrot.slane %v5410_v43, 1  ;;  %v5051_v35 = vld [vmem:[#allocation3 + $0xa8] sm:$0xf] }
 0x4e4   : > { %5046 = vst [vmem:[#allocation3 + $0x9c] sm:$0xf] %v5045_v56  ;;  %v4862_v20 = vshrl.u32 %v7217_v53, 16  ;;  %v4170_v3 = vpop.f32.mrb[123].mxu1  ;;  %v7218_v26 = vpack.c.bf16 %v4539_v47, %v4539_v47  ;;  %v4469_v18 = vadd.f32 %v10777_v27, %v4166_v14  ;;  %v4169_v41 = vadd.f32 %v4168_v25, %v10778_v55  ;;  %v10071_v9 = vld [vmem:[#allocation3 + $0x90] sm:$0xff]  }
 0x4e5   : > { %v4859_v44 = vsel %vm7831_vm8, %v4851_v42, %v4858_v28  ;;  %v5049_v23 = vsel %vm8566_vm12, %v4860_v21, %v5048_v63  ;;  %v4865_v16 = vshll.u32 %v7217_v53, 16  ;;  %v10077_v32 = vld [vmem:[#allocation3 + $0x98] ss:$0 sps:$4 sm:$0xff]   ;;  %v5408_v11 = vor.u32 %v5407_v1, %v5403_v4  ;;  %v10780_v47 = vld [vmem:[#allocation19_spill] sm:$0xff]  ;;  %v10781_v21 = vld [vmem:[#allocation21_spill] sm:$0xff] }
 0x4e6   : > { %v4864_v6 = vrot.slane %v4862_v20, 7  ;;  %5047 = vst.msk [vmem:[#allocation3 + $0xa0] sm:$0xf] %vm442_vm11, %v4859_v44  ;;  %5050 = vst [vmem:[#allocation3 + $0xa4] sm:$0x1] %v5049_v23  ;;  %v4870_v24 = vshrl.u32 %v7218_v26, 16  ;;  %v4508_v59 = vadd.f32 %v10030_v36, %v4469_v18  ;;  %v4470_v58 = vadd.f32 %v10779_v29, %v4169_v41 }
 0x4e7   : > { %v4873_v5 = vshll.u32 %v7218_v26, 16  ;;  %v5417_v37 = vshll.u32 %v10071_v9, 16  ;;  %v5413_v53 = vsel %vm1363_vm6, %v5408_v11, %v5412_v12  ;;  %v5422_v49 = vshll.u32 %v10077_v32, 16  ;;  %v5055_v28 = vld [vmem:[#allocation3 + $0xb0] sm:$0x1]  ;;  %v10782_v20 = vld [vmem:[#allocation20_spill] sm:$0xff] }
 0x4e8   : > { %v4867_v15 = vor.u32 %v4865_v16, %v4864_v6  ;;  %v4868_v50 = vrot.slane %v4864_v6, 4  ;;  %v4872_v42 = vrot.slane %v4870_v24, 7  ;;  %v4540_v30 = vmax.f32 %v4508_v59, 0.0  ;;  %5508 = vrot.lane.b32.xlu0 %v5413_v53, %s7735_s17  ;;  %v10783_v23 = vld [vmem:[#allocation22_spill] sm:$0xff] }
 0x4e9   : > { %v4509_v46 = vadd.f32 %v10030_v36, %v4470_v58  ;;  %v4173_v38 = vpop.f32.mrb[124].mxu1  ;;  %v5415_v26 = vshrl.u32 %v10071_v9, 16  ;;  %v5419_v27 = vrot.slane %v5417_v37, 1  ;;  %v5424_v58 = vrot.slane %v5422_v49, 1  ;;  %v5062_v49 = vld [vmem:[#allocation3 + $0xbc] sm:$0x1] }
 0x4ea   : > { %v5052_v60 = vsel %vm8776_vm13, %v4867_v15, %v5051_v35  ;;  %v4174_v48 = vadd.f32 %v4173_v38, %v10780_v47  ;;  %v4175_v14 = vpop.f32.mrb[125].mxu1  ;;  %v4875_v56 = vor.u32 %v4873_v5, %v4872_v42  ;;  %v4877_v25 = vrot.slane %v4872_v42, 4  ;;  %v5058_v35 = vld [vmem:[#allocation3 + $0xb4] sm:$0xf] }
 0x4eb   : > { %5053 = vst [vmem:[#allocation3 + $0xa8] sm:$0xf] %v5052_v60  ;;  %v7219_v2 = vpack.c.bf16 %v4540_v30, %v4540_v30  ;;  %v4541_v43 = vmax.f32 %v4509_v46, 0.0  ;;  %v4176_v7 = vpop.f32.mrb[126].mxu1  ;;  %v5420_v16 = vor.u32 %v5419_v27, %v5415_v26 }
 0x4ec   : > { %v4471_v63 = vadd.f32 %v10781_v21, %v4174_v48  ;;  %v4177_v3 = vadd.f32 %v4176_v7, %v10782_v20  ;;  %v4178_v4 = vpop.f32.mrb[127].mxu1  ;;  %v4876_v18 = vsel %vm7831_vm8, %v4868_v50, %v4875_v56  ;;  %v5056_v55 = vsel %vm8566_vm12, %v4877_v25, %v5055_v28 }
 0x4ed   : > { %v4879_v41 = vshrl.u32 %v7219_v2, 16  ;;  %5054 = vst.msk [vmem:[#allocation3 + $0xac] sm:$0xf] %vm442_vm11, %v4876_v18  ;;  %5057 = vst [vmem:[#allocation3 + $0xb0] sm:$0x1] %v5056_v55  ;;  %v7220_v1 = vpack.c.bf16 %v4541_v43, %v4541_v43  ;;  %v10100_v24 = vld [vmem:[#allocation3 + $0x9c] sm:$0xff]   ;;  %v5425_v30 = vsel %vm1363_vm6, %v5420_v16, %v5424_v58 }
 0x4ee   : > { %v4510_v44 = vadd.f32 %v10030_v36, %v4471_v63  ;;  %v4472_v6 = vadd.f32 %v10783_v23, %v4177_v3  ;;  %v4882_v29 = vshll.u32 %v7219_v2, 16  ;;  %v10102_v12 = vld [vmem:[#allocation3 + $0xa4] ss:$0 sps:$4 sm:$0xff]   ;;  %5510 = vrot.lane.b32.xlu1 %v5425_v30, %s7735_s17  ;;  %v5429_v60 = vshll.u32 %v10100_v24, 16  ;;  %v10130_v30 = vld [vmem:[#allocation3 + $0xd4] ss:$0 sps:$4 sm:$0xff]  }
 0x4ef   : > { %v4881_v59 = vrot.slane %v4879_v41, 7  ;;  %v4887_v15 = vshrl.u32 %v7220_v1, 16  ;;  %v4890_v42 = vshll.u32 %v7220_v1, 16  ;;  %v5434_v47 = vshll.u32 %v10102_v12, 16  ;;  %v5065_v41 = vld [vmem:[#allocation3 + $0xc0] sm:$0xf] }
 0x4f0   : > { %v4542_v50 = vmax.f32 %v4510_v44, 0.0  ;;  %v4511_v5 = vadd.f32 %v10030_v36, %v4472_v6  ;;  %v5427_v2 = vshrl.u32 %v10100_v24, 16  ;;  %v5431_v43 = vrot.slane %v5429_v60, 1 }
 0x4f1   : > { %v4884_v11 = vor.u32 %v4882_v29, %v4881_v59  ;;  %v4889_v46 = vrot.slane %v4887_v15, 7  ;;  %v4885_v48 = vrot.slane %v4881_v59, 4  ;;  %v5436_v27 = vrot.slane %v5434_v47, 1 }
 0x4f2   : > { %v7221_v38 = vpack.c.bf16 %v4542_v50, %v4542_v50  ;;  %v4543_v37 = vmax.f32 %v4511_v5, 0.0  ;;  %v5432_v26 = vor.u32 %v5431_v43, %v5427_v2  ;;  %v10128_v5 = vld [vmem:[#allocation3 + $0xcc] sm:$0xff]   ;;  %v5482_v61 = vshll.u32 %v10130_v30, 16 }
 0x4f3   : > { %v5059_v53 = vsel %vm8776_vm13, %v4884_v11, %v5058_v35  ;;  %v4892_v36 = vor.u32 %v4890_v42, %v4889_v46  ;;  %v4894_v14 = vrot.slane %v4889_v46, 4  ;;  %v5069_v11 = vld [vmem:[#allocation3 + $0xc8] sm:$0x1]  ;;  %v5475_v33 = vshrl.u32 %v10128_v5, 16 }
 0x4f4   : > { %5060 = vst [vmem:[#allocation3 + $0xb4] sm:$0xf] %v5059_v53  ;;  %v4896_v56 = vshrl.u32 %v7221_v38, 16  ;;  %v7222_v25 = vpack.c.bf16 %v4543_v37, %v4543_v37  ;;  %v4899_v63 = vshll.u32 %v7221_v38, 16  ;;  %v10116_v20 = vld [vmem:[#allocation3 + $0xa8] sm:$0xff]   ;;  %v5437_v23 = vsel %vm1363_vm6, %v5432_v26, %v5436_v27  ;;  %v7714_v27 = vld [vmem:[#allocation3 + $0x18] sm:$0xff]  }
 0x4f5   : > { %v4893_v7 = vsel %vm7831_vm8, %v4885_v48, %v4892_v36  ;;  %v5063_v28 = vsel %vm8566_vm12, %v4894_v14, %v5062_v49  ;;  %v10118_v3 = vld [vmem:[#allocation3 + $0xb0] ss:$0 sps:$4 sm:$0xff]   ;;  %v5441_v55 = vshll.u32 %v10116_v20, 16  ;;  %5512 = vrot.lane.b32.xlu0 %v5437_v23, %s7735_s17  ;;  %v5439_v59 = vshrl.u32 %v10116_v20, 16  ;;  %v10162_v23 = vld [vmem:[%s10720_s6 + $0xc0] sm:$0xff]  }
 0x4f6   : > { %v4898_v21 = vrot.slane %v4896_v56, 7  ;;  %5061 = vst.msk [vmem:[#allocation3 + $0xb8] sm:$0xf] %vm442_vm11, %v4893_v7  ;;  %5064 = vst [vmem:[#allocation3 + $0xbc] sm:$0x1] %v5063_v28  ;;  %v4904_v4 = vshrl.u32 %v7222_v25, 16 }
 0x4f7   : > { %v4907_v44 = vshll.u32 %v7222_v25, 16  ;;  %v5446_v6 = vshll.u32 %v10118_v3, 16  ;;  %v5443_v29 = vrot.slane %v5441_v55, 1  ;;  %v5477_v53 = vshll.u32 %v10128_v5, 16  ;;  %v7715_v55 = vld [vmem:[#allocation3 + $0x20] ss:$0 sps:$4 sm:$0xff]  }
 0x4f8   : > { %v4901_v18 = vor.u32 %v4899_v63, %v4898_v21  ;;  %v4906_v1 = vrot.slane %v4904_v4, 7  ;;  %v4902_v58 = vrot.slane %v4898_v21, 4  ;;  %v5484_v43 = vrot.slane %v5482_v61, 1  ;;  %v10203_v61 = vld [vmem:[%s10720_s6 + $0xd8] sm:$0xff]  }
 0x4f9   : > { %v5444_v35 = vor.u32 %v5443_v29, %v5439_v59  ;;  %v5448_v42 = vrot.slane %v5446_v6, 1  ;;  %v5479_v36 = vrot.slane %v5477_v53, 1  ;;  %v7716_v29 = vld [vmem:[#allocation3 + $0xc] sm:$0xff]  }
 0x4fa   : > { %v5066_v16 = vsel %vm8776_vm13, %v4901_v18, %v5065_v41  ;;  %v4909_v15 = vor.u32 %v4907_v44, %v4906_v1  ;;  %v4911_v50 = vrot.slane %v4906_v1, 4  ;;  %v5528_v18 = vrot.slane %v7714_v27, 1 }
 0x4fb   : > { %5067 = vst [vmem:[#allocation3 + $0xc0] sm:$0xf] %v5066_v16  ;;  %v5449_v38 = vsel %vm1363_vm6, %v5444_v35, %v5448_v42  ;;  %v5480_v2 = vor.u32 %v5479_v36, %v5475_v33  ;;  %v5529_v41 = vrot.slane %v7715_v55, 1  ;;  %v7717_v35 = vld [vmem:[#allocation3 + $0x24] sm:$0xff]  }
 0x4fc   : > { %v4910_v8 = vsel %vm7831_vm8, %v4902_v58, %v4909_v15  ;;  %v5070_v46 = vsel %vm8566_vm12, %v4911_v50, %v5069_v11  ;;  %5514 = vrot.lane.b32.xlu1 %v5449_v38, %s7735_s17  ;;  %v10179_v11 = vld [vmem:[%s10720_s6 + $0xc8] sm:$0xff]   ;;  %v5531_v42 = vrot.slane %v7717_v35, 1  ;;  %v10188_v38 = vld [vmem:[%s10720_s6 + $0xd0] sm:$0xff]   ;;  %vm6528_vm8 = vcmask 64512  }
 0x4fd   : > { %5068 = vst.msk [vmem:[#allocation3 + $0xc4] sm:$0xf] %vm442_vm11, %v4910_v8  ;;  %5071 = vst [vmem:[#allocation3 + $0xc8] sm:$0x1] %v5070_v46  ;;  %v10138_v37 = vld [vmem:[#allocation3 + $0xb4] sm:$0xff]   ;;  %v5485_v26 = vsel %vm1363_vm6, %v5480_v2, %v5484_v43  ;;  %v10170_v15 = vsel %vm1616_vm5, %v5528_v18, %v5529_v41  ;;  %v5541_v41 = vrot.slane %v9934_v45, 1 }
 0x4fe   : > { %v10141_v60 = vld [vmem:[#allocation3 + $0xbc] ss:$0 sps:$4 sm:$0xff]   ;;  %v5453_v47 = vshll.u32 %v10138_v37, 16  ;;  %v5451_v14 = vshrl.u32 %v10138_v37, 16  ;;  %v7718_v8 = vld [vmem:[#allocation3 + $0x2c] ss:$0 sps:$4 sm:$0xff]  }
 0x4ff   : > { %v5458_v48 = vshll.u32 %v10141_v60, 16  ;;  %v5532_v46 = vrot.slane %v7718_v8, 1  ;;  %v5544_v8 = vrot.slane %v9961_v39, 1  ;;  %v5546_v39 = vrot.slane %v9974_v19, 1 }
 0x500   : > { %v5455_v49 = vrot.slane %v5453_v47, 1 }
 0x501   : > { %v5460_v25 = vrot.slane %v5458_v48, 1  ;;  %v10195_v33 = vsel %vm1616_vm5, %v5531_v42, %v5532_v46  ;;  %v7719_v48 = vld [vmem:[#allocation3 + $0x30] sm:$0xff]   ;;  %v5543_v42 = vrot.slane %v9959_v57, 1 }
 0x502   : > { %v5456_v56 = vor.u32 %v5455_v49, %v5451_v14  ;;  %v5534_v36 = vrot.slane %v7719_v48, 1  ;;  %v7720_v14 = vld [vmem:[#allocation3 + $0x38] ss:$0 sps:$4 sm:$0xff]  }
 0x503   : > { %v5535_v49 = vrot.slane %v7720_v14, 1 }
 0x504   : > { %v10149_v7 = vld [vmem:[#allocation3 + $0xc0] sm:$0xff]   ;;  %v5461_v28 = vsel %vm1363_vm6, %v5456_v56, %v5460_v25  ;;  %v10152_v21 = vld [vmem:[#allocation3 + $0xc8] ss:$0 sps:$4 sm:$0xff]  }
 0x505   : > { %5516 = vrot.lane.b32.xlu0 %v5461_v28, %s7735_s17  ;;  %v5465_v63 = vshll.u32 %v10149_v7, 16  ;;  %v5470_v4 = vshll.u32 %v10152_v21, 16  ;;  %v5463_v1 = vshrl.u32 %v10149_v7, 16  ;;  %v10211_v56 = vld [vmem:[%s10720_s6 + $0xe0] sm:$0xff]   ;;  %v10218_v43 = vsel %vm1616_vm5, %v5534_v36, %v5535_v49  ;;  %v10226_v28 = vld [vmem:[%s10720_s6 + $0xe8] sm:$0xff]  }
 0x507   : > { %v5467_v44 = vrot.slane %v5465_v63, 1  ;;  %v5472_v59 = vrot.slane %v5470_v4, 1  ;;  %v5537_v63 = vrot.slane %v9905_v40, 1  ;;  %v5538_v4 = vrot.slane %v9907_v31, 1  ;;  %v10251_v40 = vld [vmem:[%s10720_s6 + $0xf8] sm:$0xff]  }
 0x508   : > { %v5540_v31 = vrot.slane %v9928_v51, 1 }
 0x509   : > { %v5468_v16 = vor.u32 %v5467_v44, %v5463_v1  ;;  %5520 = vrot.lane.b32.xlu0 %v5485_v26, %s7735_s17  ;;  %v10243_v55 = vsel %vm1616_vm5, %v5537_v63, %v5538_v4  ;;  %v10260_v1 = vld [vmem:[%s10720_s6 + $0x100] sm:$0xff]  }
 0x50b   : > { %v5489_v6 = vpop.permute.xlu1 %5488  ;;  %v5473_v50 = vsel %vm1363_vm6, %v5468_v16, %v5472_v59  ;;  %v10268_v59 = vsel %vm1616_vm5, %v5540_v31, %v5541_v41 }
 0x50c   : > { %v10166_v58 = vsel %vm3559_vm3, %v7716_v29, %v5489_v6  ;;  %5518 = vrot.lane.b32.xlu1 %v5473_v50, %s7735_s17  ;;  %v7721_v6 = vld [vmem:[#allocation3 + $0x3c] sm:$0xff]   ;;  %v10277_v29 = vld [vmem:[%s10720_s6 + $0x108] sm:$0xff]  }
 0x50d   : > { %5832 = vmatmul.mubr.bf16.vlgmr.msra.gmra.mrb[128].mxu1 %v10166_v58  ;;  %v7722_v50 = vld [vmem:[#allocation3] sm:$0xff]  }
 0x50e   : > { %7424 = vmatpush1.bf16.msra.mxu1 %v10162_v23  ;;  %7059 = vmatprep.mubr.msk.bf16.mxu1 %vm3559_vm3, %v10170_v15 }
 0x50f   : > { %7413 = vmatprep.subr.bf16.mxu1 %v10763_v13 }
 0x512   : > { %7425 = vmatpush1.bf16.msra.mxu1 %v10179_v11 }
 0x513   : > { %7414 = vmatprep.subr.bf16.mxu1 %v10763_v13 }
 0x514   : > { %v5491_v53 = vpop.permute.xlu0 %5490 }
 0x515   : > { %v10191_v47 = vsel %vm3559_vm3, %v7714_v27, %v5491_v53  ;;  %v10235_v27 = vld [vmem:[%s10720_s6 + $0xf0] sm:$0xff]  }
 0x516   : > { %5840 = vmatmul.mubr.bf16.gmra.mrb[132].mxu1 %v10191_v47 }
 0x517   : > { %7060 = vmatprep.mubr.msk.bf16.mxu1 %vm3559_vm3, %v10195_v33  ;;  %7426 = vmatpush1.bf16.msra.mxu1 %v10188_v38 }
 0x518   : > { %7415 = vmatprep.subr.bf16.mxu1 %v10763_v13 }
 0x51b   : > { %7427 = vmatpush1.bf16.msra.mxu1 %v10203_v61 }
 0x51c   : > { %7416 = vmatprep.subr.bf16.mxu1 %v10763_v13  ;;  %v5493_v25 = vpop.permute.xlu1 %5492 }
 0x51d   : > { %v10214_v2 = vsel %vm3559_vm3, %v7717_v35, %v5493_v25 }
 0x51e   : > { %5848 = vmatmul.mubr.bf16.gmra.mrb[136].mxu1 %v10214_v2 }
 0x51f   : > { %7061 = vmatprep.mubr.msk.bf16.mxu1 %vm3559_vm3, %v10218_v43  ;;  %7428 = vmatpush1.bf16.msra.mxu1 %v10211_v56 }
 0x520   : > { %7417 = vmatprep.subr.bf16.mxu1 %v10763_v13 }
 0x523   : > { %v5495_v26 = vpop.permute.xlu0 %5494  ;;  %7429 = vmatpush1.bf16.msra.mxu1 %v10226_v28 }
 0x524   : > { %v10238_v18 = vsel %vm3559_vm3, %v7719_v48, %v5495_v26  ;;  %7418 = vmatprep.subr.bf16.mxu1 %v10763_v13  ;;  %v10294_v48 = vld [vmem:[%s10720_s6 + $0x110] sm:$0xff]  }
 0x526   : > { %5856 = vmatmul.mubr.bf16.gmra.mrb[140].mxu1 %v10238_v18 }
 0x527   : > { %7062 = vmatprep.mubr.msk.bf16.mxu1 %vm3559_vm3, %v10243_v55  ;;  %7430 = vmatpush1.bf16.msra.mxu1 %v10235_v27 }
 0x528   : > { %7419 = vmatprep.subr.bf16.mxu1 %v10763_v13 }
 0x52b   : > { %7431 = vmatpush1.bf16.msra.mxu1 %v10251_v40 }
 0x52c   : > { %v5497_v44 = vpop.permute.xlu1 %5496  ;;  %7420 = vmatprep.subr.bf16.mxu1 %v10763_v13 }
 0x52d   : > { %v10264_v16 = vsel %vm3559_vm3, %v7721_v6, %v5497_v44  ;;  %v5565_v44 = vrot.slane %v10118_v3, 1 }
 0x52e   : > { %5864 = vmatmul.mubr.bf16.gmra.mrb[144].mxu1 %v10264_v16 }
 0x52f   : > { %7063 = vmatprep.mubr.msk.bf16.mxu1 %vm3559_vm3, %v10268_v59  ;;  %7432 = vmatpush1.bf16.msra.mxu1 %v10260_v1 }
 0x530   : > { %v5487_v45 = vpop.permute.xlu1 %5486  ;;  %7421 = vmatprep.subr.bf16.mxu1 %v10763_v13 }
 0x531   : > { %v5577_v35 = vsel %vm3559_vm3, %v7722_v50, %v5487_v45  ;;  %v5568_v50 = vrot.slane %v10141_v60, 1 }
 0x532   : > { %6068 = vmatmul.mubr.bf16.vlgmr.msra.gmra.mrb[96].mxu0 %v5577_v35  ;;  %v5499_v46 = vpop.permute.xlu0 %5498 }
 0x533   : > { %7087 = vmatprep.mubr.msk.bf16.mxu0 %vm3559_vm3, %v9821_v62  ;;  %6297 = vmatpush1.bf16.msra.mxu0 %v10162_v23  ;;  %v10287_v53 = vsel %vm3559_vm3, %v9928_v51, %v5499_v46  ;;  %v10299_v62 = vsel %vm1616_vm5, %v5543_v42, %v5544_v8  ;;  %v10309_v51 = vld [vmem:[%s10720_s6 + $0x118] sm:$0xff]   ;;  %v5547_v23 = vrot.slane %v9980_v0, 1  ;;  %v5549_v0 = vrot.slane %v10003_v34, 1 }
 0x534   : > { %6298 = vmatprep.subr.bf16.mxu0 %v10763_v13  ;;  %7433 = vmatpush1.bf16.msra.mxu1 %v10277_v29  ;;  %v5570_v42 = vrot.slane %v10149_v7, 1  ;;  %v5571_v8 = vrot.slane %v10152_v21, 1 }
 0x535   : > { %7422 = vmatprep.subr.bf16.mxu1 %v10763_v13 }
 0x536   : > { %5872 = vmatmul.mubr.bf16.gmra.mrb[148].mxu1 %v10287_v53 }
 0x537   : > { %7064 = vmatprep.mubr.msk.bf16.mxu1 %vm3559_vm3, %v10299_v62  ;;  %6299 = vmatpush1.bf16.msra.mxu0 %v10179_v11 }
 0x538   : > { %6300 = vmatprep.subr.bf16.mxu0 %v10763_v13  ;;  %7434 = vmatpush1.bf16.msra.mxu1 %v10294_v48 }
 0x539   : > { %7423 = vmatprep.subr.bf16.mxu1 %v10763_v13 }
 0x53a   : > { %6076 = vmatmul.mubr.bf16.gmra.mrb[100].mxu0 %v10166_v58  ;;  %v5501_v11 = vpop.permute.xlu0 %5500  ;;  %v10326_v58 = vsel %vm1616_vm5, %v5546_v39, %v5547_v23 }
 0x53b   : > { %7088 = vmatprep.mubr.msk.bf16.mxu0 %vm3559_vm3, %v10170_v15  ;;  %6301 = vmatpush1.bf16.msra.mxu0 %v10188_v38  ;;  %v10322_v36 = vsel %vm3559_vm3, %v9959_v57, %v5501_v11  ;;  %v5550_v38 = vrot.slane %v10005_v17, 1  ;;  %v5552_v17 = vrot.slane %v10018_v54, 1 }
 0x53c   : > { %6302 = vmatprep.subr.bf16.mxu0 %v10763_v13  ;;  %7435 = vmatpush1.bf16.msra.mxu1 %v10309_v51 }
 0x53e   : > { %5880 = vmatmul.mubr.bf16.gmra.mrb[152].mxu1 %v10322_v36 }
 0x53f   : > { %7065 = vmatprep.mubr.msk.bf16.mxu1 %vm3559_vm3, %v10326_v58  ;;  %6303 = vmatpush1.bf16.msra.mxu0 %v10203_v61  ;;  %v10345_v61 = vsel %vm1616_vm5, %v5549_v0, %v5550_v38 }
 0x540   : > { %6304 = vmatprep.subr.bf16.mxu0 %v10763_v13 }
 0x542   : > { %6084 = vmatmul.mubr.bf16.gmra.mrb[104].mxu0 %v10191_v47  ;;  %v5503_v57 = vpop.permute.xlu1 %5502 }
 0x543   : > { %7089 = vmatprep.mubr.msk.bf16.mxu0 %vm3559_vm3, %v10195_v33  ;;  %6305 = vmatpush1.bf16.msra.mxu0 %v10211_v56  ;;  %v10340_v14 = vsel %vm3559_vm3, %v9974_v19, %v5503_v57  ;;  %v5553_v19 = vrot.slane %v10024_v52, 1  ;;  %v5555_v52 = vrot.slane %v10052_v10, 1 }
 0x544   : > { %6306 = vmatprep.subr.bf16.mxu0 %v10763_v13 }
 0x545   : > { %v10364_v25 = vsel %vm1616_vm5, %v5552_v17, %v5553_v19 }
 0x546   : > { %5888 = vmatmul.mubr.bf16.gmra.mrb[156].mxu1 %v10340_v14 }
 0x547   : > { %7066 = vmatprep.mubr.msk.bf16.mxu1 %vm3559_vm3, %v10345_v61  ;;  %6307 = vmatpush1.bf16.msra.mxu0 %v10226_v28  ;;  %v5556_v28 = vrot.slane %v10054_v22, 1  ;;  %v5558_v22 = vrot.slane %v10071_v9, 1 }
 0x548   : > { %6308 = vmatprep.subr.bf16.mxu0 %v10763_v13 }
 0x549   : > { %v10383_v4 = vsel %vm1616_vm5, %v5555_v52, %v5556_v28 }
 0x54a   : > { %6092 = vmatmul.mubr.bf16.gmra.mrb[108].mxu0 %v10214_v2 }
 0x54b   : > { %7090 = vmatprep.mubr.msk.bf16.mxu0 %vm3559_vm3, %v10218_v43  ;;  %6309 = vmatpush1.bf16.msra.mxu0 %v10235_v27 }
 0x54c   : > { %v5505_v49 = vpop.permute.xlu0 %5504  ;;  %6310 = vmatprep.subr.bf16.mxu0 %v10763_v13 }
 0x54d   : > { %v10360_v56 = vsel %vm3559_vm3, %v10003_v34, %v5505_v49 }
 0x54e   : > { %5896 = vmatmul.mubr.bf16.gmra.mrb[160].mxu1 %v10360_v56 }
 0x54f   : > { %7067 = vmatprep.mubr.msk.bf16.mxu1 %vm3559_vm3, %v10364_v25  ;;  %6311 = vmatpush1.bf16.msra.mxu0 %v10251_v40 }
 0x550   : > { %6312 = vmatprep.subr.bf16.mxu0 %v10763_v13  ;;  %v5507_v34 = vpop.permute.xlu1 %5506 }
 0x551   : > { %v10378_v63 = vsel %vm3559_vm3, %v10018_v54, %v5507_v34  ;;  %v5559_v54 = vrot.slane %v10077_v32, 1  ;;  %v5561_v32 = vrot.slane %v10100_v24, 1 }
 0x552   : > { %6100 = vmatmul.mubr.bf16.gmra.mrb[112].mxu0 %v10238_v18 }
 0x553   : > { %7091 = vmatprep.mubr.msk.bf16.mxu0 %vm3559_vm3, %v10243_v55  ;;  %6313 = vmatpush1.bf16.msra.mxu0 %v10260_v1  ;;  %v10402_v40 = vsel %vm1616_vm5, %v5558_v22, %v5559_v54  ;;  %v5564_v1 = vrot.slane %v10116_v20, 1 }
 0x554   : > { %6314 = vmatprep.subr.bf16.mxu0 %v10763_v13 }
 0x556   : > { %5904 = vmatmul.mubr.bf16.gmra.mrb[164].mxu1 %v10378_v63 }
 0x557   : > { %7068 = vmatprep.mubr.msk.bf16.mxu1 %vm3559_vm3, %v10383_v4  ;;  %6315 = vmatpush1.bf16.msra.mxu0 %v10277_v29  ;;  %v5567_v29 = vrot.slane %v10138_v37, 1 }
 0x558   : > { %6316 = vmatprep.subr.bf16.mxu0 %v10763_v13 }
 0x55a   : > { %6108 = vmatmul.mubr.bf16.gmra.mrb[116].mxu0 %v10264_v16  ;;  %v5509_v26 = vpop.permute.xlu0 %5508 }
 0x55b   : > { %7092 = vmatprep.mubr.msk.bf16.mxu0 %vm3559_vm3, %v10268_v59  ;;  %6317 = vmatpush1.bf16.msra.mxu0 %v10294_v48  ;;  %v10398_v27 = vsel %vm3559_vm3, %v10052_v10, %v5509_v26 }
 0x55c   : > { %6318 = vmatprep.subr.bf16.mxu0 %v10763_v13  ;;  %v5562_v13 = vrot.slane %v10102_v12, 1 }
 0x55e   : > { %5912 = vmatmul.mubr.bf16.gmra.mrb[168].mxu1 %v10398_v27  ;;  %v5563_v41 = vsel %vm1616_vm5, %v5561_v32, %v5562_v13 }
 0x55f   : > { %7069 = vmatprep.mubr.msk.bf16.mxu1 %vm3559_vm3, %v10402_v40  ;;  %6319 = vmatpush1.bf16.msra.mxu0 %v10309_v51 }
 0x560   : > { %v5511_v10 = vpop.permute.xlu1 %5510 }
 0x561   : > { %v5613_v31 = vsel %vm3559_vm3, %v10071_v9, %v5511_v10  ;;  %v5566_v9 = vsel %vm1616_vm5, %v5564_v1, %v5565_v44 }
 0x562   : > { %6116 = vmatmul.mubr.bf16.gmra.mrb[120].mxu0 %v10287_v53 }
 0x563   : > { %7093 = vmatprep.mubr.msk.bf16.mxu0 %vm3559_vm3, %v10299_v62 }
 0x566   : > { %5920 = vmatmul.mubr.bf16.gmra.mrb[172].mxu1 %v5613_v31 }
 0x567   : > { %7070 = vmatprep.mubr.msk.bf16.mxu1 %vm3559_vm3, %v5563_v41  ;;  %v5513_v12 = vpop.permute.xlu0 %5512 }
 0x568   : > { %v5616_v6 = vsel %vm3559_vm3, %v10100_v24, %v5513_v12  ;;  %v5569_v24 = vsel %vm1616_vm5, %v5567_v29, %v5568_v50 }
 0x56a   : > { %6124 = vmatmul.mubr.bf16.gmra.mrb[124].mxu0 %v10322_v36 }
 0x56b   : > { %7094 = vmatprep.mubr.msk.bf16.mxu0 %vm3559_vm3, %v10326_v58 }
 0x56e   : > { %5928 = vmatmul.mubr.bf16.gmra.mrb[176].mxu1 %v5616_v6  ;;  %v5515_v45 = vpop.permute.xlu1 %5514 }
 0x56f   : > { %7071 = vmatprep.mubr.msk.bf16.mxu1 %vm3559_vm3, %v5566_v9  ;;  %v5619_v3 = vsel %vm3559_vm3, %v10116_v20, %v5515_v45  ;;  %v5572_v20 = vsel %vm1616_vm5, %v5570_v42, %v5571_v8 }
 0x572   : > { %6132 = vmatmul.mubr.bf16.gmra.mrb[128].mxu0 %v10340_v14 }
 0x573   : > { %7095 = vmatprep.mubr.msk.bf16.mxu0 %vm3559_vm3, %v10345_v61 }
 0x576   : > { %5936 = vmatmul.mubr.bf16.gmra.mrb[180].mxu1 %v5619_v3 }
 0x577   : > { %7072 = vmatprep.mubr.msk.bf16.mxu1 %vm3559_vm3, %v5569_v24  ;;  %v5517_v35 = vpop.permute.xlu0 %5516 }
 0x578   : > { %v5622_v60 = vsel %vm3559_vm3, %v10138_v37, %v5517_v35  ;;  %v5573_v37 = vrot.slane %v10128_v5, 1 }
 0x57a   : > { %6140 = vmatmul.mubr.bf16.gmra.mrb[132].mxu0 %v10360_v56 }
 0x57b   : > { %7096 = vmatprep.mubr.msk.bf16.mxu0 %vm3559_vm3, %v10364_v25 }
 0x57e   : > { %5944 = vmatmul.mubr.bf16.gmra.mrb[184].mxu1 %v5622_v60  ;;  %v5519_v46 = vpop.permute.xlu1 %5518 }
 0x57f   : > { %7073 = vmatprep.mubr.msk.bf16.mxu1 %vm3559_vm3, %v5572_v20  ;;  %v5625_v21 = vsel %vm3559_vm3, %v10149_v7, %v5519_v46  ;;  %v5574_v7 = vrot.slane %v10130_v30, 1 }
 0x582   : > { %6148 = vmatmul.mubr.bf16.gmra.mrb[136].mxu0 %v10378_v63 }
 0x583   : > { %7097 = vmatprep.mubr.msk.bf16.mxu0 %vm3559_vm3, %v10383_v4 }
 0x586   : > { %5952 = vmatmul.mubr.bf16.gmra.mrb[188].mxu1 %v5625_v21 }
 0x587   : > { %7143 = vmatprep.mubr.msk.bf16.mxu1 %vm3559_vm3, %v10299_v62 }
 0x58a   : > { %6156 = vmatmul.mubr.bf16.gmra.mrb[140].mxu0 %v10398_v27 }
 0x58b   : > { %7098 = vmatprep.mubr.msk.bf16.mxu0 %vm3559_vm3, %v10402_v40 }
 0x58e   : > { %6369 = vmatmul.mubr.bf16.vlgmr.msra.gmra.mrb[192].mxu1 %v10322_v36 }
 0x58f   : > { %7144 = vmatprep.mubr.msk.bf16.mxu1 %vm3559_vm3, %v10326_v58 }
 0x592   : > { %6164 = vmatmul.mubr.bf16.gmra.mrb[144].mxu0 %v5613_v31 }
 0x593   : > { %7099 = vmatprep.mubr.msk.bf16.mxu0 %vm3559_vm3, %v5563_v41 }
 0x596   : > { %6377 = vmatmul.mubr.bf16.gmra.mrb[196].mxu1 %v10340_v14 }
 0x597   : > { %7145 = vmatprep.mubr.msk.bf16.mxu1 %vm3559_vm3, %v10345_v61 }
 0x59a   : > { %6172 = vmatmul.mubr.bf16.gmra.mrb[148].mxu0 %v5616_v6 }
 0x59b   : > { %7100 = vmatprep.mubr.msk.bf16.mxu0 %vm3559_vm3, %v5566_v9 }
 0x59e   : > { %6385 = vmatmul.mubr.bf16.gmra.mrb[200].mxu1 %v10360_v56 }
 0x59f   : > { %7146 = vmatprep.mubr.msk.bf16.mxu1 %vm3559_vm3, %v10364_v25 }
 0x5a2   : > { %6180 = vmatmul.mubr.bf16.gmra.mrb[152].mxu0 %v5619_v3 }
 0x5a3   : > { %7101 = vmatprep.mubr.msk.bf16.mxu0 %vm3559_vm3, %v5569_v24 }
 0x5a6   : > { %6393 = vmatmul.mubr.bf16.gmra.mrb[204].mxu1 %v10378_v63 }
 0x5a7   : > { %7147 = vmatprep.mubr.msk.bf16.mxu1 %vm3559_vm3, %v10383_v4 }
 0x5aa   : > { %6188 = vmatmul.mubr.bf16.gmra.mrb[156].mxu0 %v5622_v60 }
 0x5ab   : > { %7138 = vmatprep.mubr.msk.bf16.mxu0 %vm3559_vm3, %v10170_v15  ;;  %v5575_v15 = vsel %vm1616_vm5, %v5573_v37, %v5574_v7 }
 0x5ae   : > { %6401 = vmatmul.mubr.bf16.gmra.mrb[208].mxu1 %v10398_v27 }
 0x5af   : > { %7148 = vmatprep.mubr.msk.bf16.mxu1 %vm3559_vm3, %v10402_v40 }
 0x5b2   : > { %6329 = vmatmul.mubr.bf16.vlgmr.msra.gmra.mrb[160].mxu0 %v10191_v47  ;;  %v5521_v47 = vpop.permute.xlu0 %5520 }
 0x5b3   : > { %7139 = vmatprep.mubr.msk.bf16.mxu0 %vm3559_vm3, %v10195_v33  ;;  %v5628_v33 = vsel %vm3559_vm3, %v10128_v5, %v5521_v47 }
 0x5b6   : > { %6409 = vmatmul.mubr.bf16.gmra.mrb[212].mxu1 %v5613_v31 }
 0x5b7   : > { %7149 = vmatprep.mubr.msk.bf16.mxu1 %vm3559_vm3, %v5563_v41 }
 0x5ba   : > { %6337 = vmatmul.mubr.bf16.gmra.mrb[164].mxu0 %v10214_v2 }
 0x5bb   : > { %7140 = vmatprep.mubr.msk.bf16.mxu0 %vm3559_vm3, %v10218_v43 }
 0x5be   : > { %6417 = vmatmul.mubr.bf16.gmra.mrb[216].mxu1 %v5616_v6 }
 0x5bf   : > { %7150 = vmatprep.mubr.msk.bf16.mxu1 %vm3559_vm3, %v5566_v9 }
 0x5c2   : > { %6345 = vmatmul.mubr.bf16.gmra.mrb[168].mxu0 %v10238_v18 }
 0x5c3   : > { %7141 = vmatprep.mubr.msk.bf16.mxu0 %vm3559_vm3, %v10243_v55 }
 0x5c6   : > { %6425 = vmatmul.mubr.bf16.gmra.mrb[220].mxu1 %v5619_v3 }
 0x5c7   : > { %7151 = vmatprep.mubr.msk.bf16.mxu1 %vm3559_vm3, %v5569_v24 }
 0x5ca   : > { %6353 = vmatmul.mubr.bf16.gmra.mrb[172].mxu0 %v10264_v16 }
 0x5cb   : > { %7142 = vmatprep.mubr.msk.bf16.mxu0 %vm3559_vm3, %v10268_v59 }
 0x5ce   : > { %6433 = vmatmul.mubr.bf16.gmra.mrb[224].mxu1 %v5622_v60 }
 0x5cf   : > { %7152 = vmatprep.mubr.msk.bf16.mxu1 %vm3559_vm3, %v5572_v20 }
 0x5d2   : > { %6361 = vmatmul.mubr.bf16.gmra.mrb[176].mxu0 %v10287_v53 }
 0x5d6   : > { %6441 = vmatmul.mubr.bf16.gmra.mrb[228].mxu1 %v5625_v21 }
 0x5d7   : > { %7153 = vmatprep.mubr.msk.bf16.mxu1 %vm3559_vm3, %v5575_v15 }
 0x5de   : > { %6449 = vmatmul.mubr.bf16.gmra.mrb[232].mxu1 %v5628_v33 }
 0x5e0   : > { %v5833_v2 = vpop.f32.mrb[128].mxu1 }
 0x5e1   : > { %v5835_v43 = vpop.f32.mrb[129].mxu1 }
 0x5e2   : > { %v5836_v18 = vpop.f32.mrb[130].mxu1 }
 0x5e3   : > { %v5838_v55 = vpop.f32.mrb[131].mxu1 }
 0x5e9   : > { %v5841_v16 = vpop.f32.mrb[132].mxu1 }
 0x5ea   : > { %v5843_v59 = vpop.f32.mrb[133].mxu1 }
 0x5eb   : > { %v5844_v48 = vpop.f32.mrb[134].mxu1 }
 0x5ec   : > { %v5846_v30 = vpop.f32.mrb[135].mxu1 }
 0x5f1   : > { %v5849_v62 = vpop.f32.mrb[136].mxu1 }
 0x5f2   : > { %v5851_v53 = vpop.f32.mrb[137].mxu1 }
 0x5f3   : > { %v5852_v51 = vpop.f32.mrb[138].mxu1 }
 0x5f4   : > { %v5854_v39 = vpop.f32.mrb[139].mxu1 }
 0x5f9   : > { %v5857_v23 = vpop.f32.mrb[140].mxu1 }
 0x5fa   : > { %v5859_v11 = vpop.f32.mrb[141].mxu1 }
 0x5fb   : > { %v5860_v36 = vpop.f32.mrb[142].mxu1 }
 0x5fc   : > { %v5862_v58 = vpop.f32.mrb[143].mxu1 }
 0x601   : > { %v5865_v0 = vpop.f32.mrb[144].mxu1 }
 0x602   : > { %v5867_v38 = vpop.f32.mrb[145].mxu1 }
 0x603   : > { %v5868_v5 = vpop.f32.mrb[146].mxu1 }
 0x604   : > { %v5870_v57 = vpop.f32.mrb[147].mxu1 }
 0x605   : > { %v6069_v14 = vpop.f32.mrb[96].mxu0 }
 0x606   : > { %v10496_v61 = vadd.f32 %v6069_v14, %v5833_v2  ;;  %v6071_v17 = vpop.f32.mrb[97].mxu0 }
 0x607   : > { %v6072_v19 = vpop.f32.mrb[98].mxu0 }
 0x608   : > { %v10498_v49 = vadd.f32 %v6072_v19, %v5836_v18  ;;  %v6074_v56 = vpop.f32.mrb[99].mxu0 }
 0x609   : > { %v5873_v25 = vpop.f32.mrb[148].mxu1 }
 0x60a   : > { %v5875_v52 = vpop.f32.mrb[149].mxu1 }
 0x60b   : > { %v5876_v28 = vpop.f32.mrb[150].mxu1 }
 0x60c   : > { %v5878_v34 = vpop.f32.mrb[151].mxu1 }
 0x60d   : > { %v6077_v63 = vpop.f32.mrb[100].mxu0 }
 0x60e   : > { %v10500_v4 = vadd.f32 %v6077_v63, %v5841_v16  ;;  %v6079_v22 = vpop.f32.mrb[101].mxu0 }
 0x60f   : > { %v6080_v54 = vpop.f32.mrb[102].mxu0 }
 0x610   : > { %v10502_v26 = vadd.f32 %v6080_v54, %v5844_v48  ;;  %v6082_v27 = vpop.f32.mrb[103].mxu0 }
 0x611   : > { %v5881_v40 = vpop.f32.mrb[152].mxu1 }
 0x612   : > { %v5883_v32 = vpop.f32.mrb[153].mxu1 }
 0x613   : > { %v5884_v13 = vpop.f32.mrb[154].mxu1 }
 0x614   : > { %v5886_v10 = vpop.f32.mrb[155].mxu1 }
 0x615   : > { %v6085_v31 = vpop.f32.mrb[104].mxu0 }
 0x616   : > { %v10504_v41 = vadd.f32 %v6085_v31, %v5849_v62  ;;  %v6087_v1 = vpop.f32.mrb[105].mxu0 }
 0x617   : > { %v6088_v44 = vpop.f32.mrb[106].mxu0 }
 0x618   : > { %v10506_v12 = vadd.f32 %v6088_v44, %v5852_v51  ;;  %v6090_v6 = vpop.f32.mrb[107].mxu0 }
 0x619   : > { %v5889_v9 = vpop.f32.mrb[156].mxu1 }
 0x61a   : > { %v5891_v45 = vpop.f32.mrb[157].mxu1 }
 0x61b   : > { %v5892_v29 = vpop.f32.mrb[158].mxu1 }
 0x61c   : > { %v5894_v50 = vpop.f32.mrb[159].mxu1 }
 0x61d   : > { %v6093_v3 = vpop.f32.mrb[108].mxu0 }
 0x61e   : > { %v10508_v24 = vadd.f32 %v6093_v3, %v5857_v23  ;;  %v6095_v35 = vpop.f32.mrb[109].mxu0 }
 0x61f   : > { %v6096_v42 = vpop.f32.mrb[110].mxu0 }
 0x620   : > { %v10510_v8 = vadd.f32 %v6096_v42, %v5860_v36  ;;  %v6098_v60 = vpop.f32.mrb[111].mxu0 }
 0x621   : > { %v5897_v20 = vpop.f32.mrb[160].mxu1 }
 0x622   : > { %v5899_v46 = vpop.f32.mrb[161].mxu1 }
 0x623   : > { %v5900_v21 = vpop.f32.mrb[162].mxu1 }
 0x624   : > { %v5902_v37 = vpop.f32.mrb[163].mxu1 }
 0x625   : > { %v6101_v7 = vpop.f32.mrb[112].mxu0 }
 0x626   : > { %v10512_v15 = vadd.f32 %v6101_v7, %v5865_v0  ;;  %v6103_v47 = vpop.f32.mrb[113].mxu0 }
 0x627   : > { %v6104_v33 = vpop.f32.mrb[114].mxu0 }
 0x628   : > { %v10514_v2 = vadd.f32 %v6104_v33, %v5868_v5  ;;  %v6106_v43 = vpop.f32.mrb[115].mxu0 }
 0x629   : > { %v5905_v18 = vpop.f32.mrb[164].mxu1 }
 0x62a   : > { %v5907_v55 = vpop.f32.mrb[165].mxu1 }
 0x62b   : > { %v5908_v16 = vpop.f32.mrb[166].mxu1 }
 0x62c   : > { %v5910_v59 = vpop.f32.mrb[167].mxu1 }
 0x62d   : > { %v6109_v48 = vpop.f32.mrb[116].mxu0 }
 0x62e   : > { %v10516_v30 = vadd.f32 %v6109_v48, %v5873_v25  ;;  %v6111_v62 = vpop.f32.mrb[117].mxu0 }
 0x62f   : > { %v6112_v53 = vpop.f32.mrb[118].mxu0 }
 0x630   : > { %v10518_v51 = vadd.f32 %v6112_v53, %v5876_v28  ;;  %v6114_v39 = vpop.f32.mrb[119].mxu0 }
 0x631   : > { %v5913_v23 = vpop.f32.mrb[168].mxu1 }
 0x632   : > { %v5915_v11 = vpop.f32.mrb[169].mxu1 }
 0x633   : > { %v5916_v36 = vpop.f32.mrb[170].mxu1 }
 0x634   : > { %v5918_v58 = vpop.f32.mrb[171].mxu1 }
 0x635   : > { %v6117_v0 = vpop.f32.mrb[120].mxu0 }
 0x636   : > { %v10520_v38 = vadd.f32 %v6117_v0, %v5881_v40  ;;  %v6119_v5 = vpop.f32.mrb[121].mxu0 }
 0x637   : > { %v6120_v57 = vpop.f32.mrb[122].mxu0 }
 0x638   : > { %v10522_v14 = vadd.f32 %v6120_v57, %v5884_v13  ;;  %v6122_v17 = vpop.f32.mrb[123].mxu0 }
 0x639   : > { %v5921_v19 = vpop.f32.mrb[172].mxu1 }
 0x63a   : > { %v5923_v56 = vpop.f32.mrb[173].mxu1 }
 0x63b   : > { %v5924_v25 = vpop.f32.mrb[174].mxu1 }
 0x63c   : > { %v5926_v52 = vpop.f32.mrb[175].mxu1 }
 0x63d   : > { %v6125_v34 = vpop.f32.mrb[124].mxu0 }
 0x63e   : > { %v10524_v28 = vadd.f32 %v6125_v34, %v5889_v9  ;;  %v6127_v63 = vpop.f32.mrb[125].mxu0 }
 0x63f   : > { %v6128_v22 = vpop.f32.mrb[126].mxu0 }
 0x640   : > { %v10526_v54 = vadd.f32 %v6128_v22, %v5892_v29  ;;  %v6130_v27 = vpop.f32.mrb[127].mxu0 }
 0x641   : > { %v5929_v32 = vpop.f32.mrb[176].mxu1 }
 0x642   : > { %v5931_v40 = vpop.f32.mrb[177].mxu1 }
 0x643   : > { %v5932_v10 = vpop.f32.mrb[178].mxu1 }
 0x644   : > { %v5934_v31 = vpop.f32.mrb[179].mxu1 }
 0x645   : > { %v6133_v1 = vpop.f32.mrb[128].mxu0 }
 0x646   : > { %v10528_v13 = vadd.f32 %v6133_v1, %v5897_v20  ;;  %v6135_v44 = vpop.f32.mrb[129].mxu0 }
 0x647   : > { %v6136_v6 = vpop.f32.mrb[130].mxu0 }
 0x648   : > { %v10530_v45 = vadd.f32 %v6136_v6, %v5900_v21  ;;  %v6138_v50 = vpop.f32.mrb[131].mxu0 }
 0x649   : > { %v5937_v3 = vpop.f32.mrb[180].mxu1 }
 0x64a   : > { %v5939_v9 = vpop.f32.mrb[181].mxu1 }
 0x64b   : > { %v5940_v35 = vpop.f32.mrb[182].mxu1 }
 0x64c   : > { %v5942_v42 = vpop.f32.mrb[183].mxu1 }
 0x64d   : > { %v6141_v60 = vpop.f32.mrb[132].mxu0 }
 0x64e   : > { %v10532_v29 = vadd.f32 %v6141_v60, %v5905_v18  ;;  %v6143_v46 = vpop.f32.mrb[133].mxu0 }
 0x64f   : > { %v6144_v37 = vpop.f32.mrb[134].mxu0 }
 0x650   : > { %v10534_v7 = vadd.f32 %v6144_v37, %v5908_v16  ;;  %v6146_v47 = vpop.f32.mrb[135].mxu0 }
 0x651   : > { %v10536_v33 = vpop.f32.mrb[184].mxu1 }
 0x652   : > { %v5947_v20 = vpop.f32.mrb[185].mxu1 }
 0x653   : > { %v10538_v43 = vpop.f32.mrb[186].mxu1 }
 0x654   : > { %v5950_v21 = vpop.f32.mrb[187].mxu1 }
 0x655   : > { %v6149_v55 = vpop.f32.mrb[136].mxu0 }
 0x656   : > { %v10540_v59 = vadd.f32 %v6149_v55, %v5913_v23  ;;  %v6151_v48 = vpop.f32.mrb[137].mxu0 }
 0x657   : > { %v6152_v62 = vpop.f32.mrb[138].mxu0 }
 0x658   : > { %v10542_v53 = vadd.f32 %v6152_v62, %v5916_v36  ;;  %v6154_v18 = vpop.f32.mrb[139].mxu0  ;;  %v10556_v36 = vld [vmem:[%s10721_s7] ss:$0 sm:$0xff] }
 0x659   : > { %v10544_v39 = vpop.f32.mrb[188].mxu1 }
 0x65a   : > { %v5955_v16 = vpop.f32.mrb[189].mxu1 }
 0x65b   : > { %v10546_v11 = vpop.f32.mrb[190].mxu1 }
 0x65c   : > { %v5958_v58 = vpop.f32.mrb[191].mxu1 }
 0x65d   : > { %v6157_v0 = vpop.f32.mrb[140].mxu0 }
 0x65e   : > { %v10548_v5 = vadd.f32 %v6157_v0, %v5921_v19  ;;  %v6159_v57 = vpop.f32.mrb[141].mxu0 }
 0x65f   : > { %v6160_v17 = vpop.f32.mrb[142].mxu0 }
 0x660   : > { %v10551_v56 = vadd.f32 %v6160_v17, %v5924_v25  ;;  %v6162_v23 = vpop.f32.mrb[143].mxu0 }
 0x661   : > { %v6370_v52 = vpop.f32.mrb[192].mxu1 }
 0x662   : > { %v6467_v34 = vadd.f32 %v6370_v52, %v10516_v30  ;;  %v6372_v63 = vpop.f32.mrb[193].mxu1 }
 0x663   : > { %v6373_v19 = vpop.f32.mrb[194].mxu1 }
 0x664   : > { %v6506_v25 = vadd.f32 %v10556_v36, %v6467_v34  ;;  %v6468_v22 = vadd.f32 %v6373_v19, %v10518_v51  ;;  %v6375_v27 = vpop.f32.mrb[195].mxu1 }
 0x665   : > { %v6165_v40 = vpop.f32.mrb[144].mxu0 }
 0x666   : > { %6539 = vst.msk [vmem:[%s10562_s30 + $0x50] sm:$0xff] %vm6528_vm8, %v6506_v25  ;;  %v6507_v30 = vadd.f32 %v10556_v36, %v6468_v22  ;;  %v10569_v31 = vadd.f32 %v6165_v40, %v5929_v32  ;;  %v6167_v1 = vpop.f32.mrb[145].mxu0 }
 0x667   : > { %v6168_v44 = vpop.f32.mrb[146].mxu0 }
 0x668   : > { %6540 = vst.msk [vmem:[%s10562_s30 + $0x58] sm:$0xff] %vm6528_vm8, %v6507_v30  ;;  %v10573_v6 = vadd.f32 %v6168_v44, %v5932_v10  ;;  %v6170_v50 = vpop.f32.mrb[147].mxu0 }
 0x669   : > { %v6378_v9 = vpop.f32.mrb[196].mxu1 }
 0x66a   : > { %v6469_v51 = vadd.f32 %v6378_v9, %v10520_v38  ;;  %v6380_v42 = vpop.f32.mrb[197].mxu1 }
 0x66b   : > { %v6381_v60 = vpop.f32.mrb[198].mxu1 }
 0x66c   : > { %v6508_v46 = vadd.f32 %v10556_v36, %v6469_v51  ;;  %v6470_v37 = vadd.f32 %v6381_v60, %v10522_v14  ;;  %v6383_v47 = vpop.f32.mrb[199].mxu1 }
 0x66d   : > { %v6173_v32 = vpop.f32.mrb[148].mxu0 }
 0x66e   : > { %6541 = vst.msk [vmem:[%s10562_s30 + $0x60] sm:$0xff] %vm6528_vm8, %v6508_v46  ;;  %v6509_v20 = vadd.f32 %v10556_v36, %v6470_v37  ;;  %v10581_v21 = vadd.f32 %v6173_v32, %v5937_v3  ;;  %v6175_v10 = vpop.f32.mrb[149].mxu0 }
 0x66f   : > { %v6176_v55 = vpop.f32.mrb[150].mxu0 }
 0x670   : > { %6542 = vst.msk [vmem:[%s10562_s30 + $0x68] sm:$0xff] %vm6528_vm8, %v6509_v20  ;;  %v10585_v38 = vadd.f32 %v6176_v55, %v5940_v35  ;;  %v6178_v48 = vpop.f32.mrb[151].mxu0 }
 0x671   : > { %v6386_v62 = vpop.f32.mrb[200].mxu1 }
 0x672   : > { %v6471_v14 = vadd.f32 %v6386_v62, %v10524_v28  ;;  %v6388_v18 = vpop.f32.mrb[201].mxu1 }
 0x673   : > { %v6389_v16 = vpop.f32.mrb[202].mxu1 }
 0x674   : > { %v6510_v58 = vadd.f32 %v10556_v36, %v6471_v14  ;;  %v6472_v0 = vadd.f32 %v6389_v16, %v10526_v54  ;;  %v6391_v57 = vpop.f32.mrb[203].mxu1 }
 0x675   : > { %v6181_v3 = vpop.f32.mrb[152].mxu0 }
 0x676   : > { %6543 = vst.msk [vmem:[%s10562_s30 + $0x70] sm:$0xff] %vm6528_vm8, %v6510_v58  ;;  %v6511_v17 = vadd.f32 %v10556_v36, %v6472_v0  ;;  %v10594_v35 = vadd.f32 %v6181_v3, %v10536_v33  ;;  %v6183_v23 = vpop.f32.mrb[153].mxu0 }
 0x677   : > { %v6184_v52 = vpop.f32.mrb[154].mxu0 }
 0x678   : > { %6544 = vst.msk [vmem:[%s10562_s30 + $0x78] sm:$0xff] %vm6528_vm8, %v6511_v17  ;;  %v10599_v28 = vadd.f32 %v6184_v52, %v10538_v43  ;;  %v6186_v34 = vpop.f32.mrb[155].mxu0 }
 0x679   : > { %v6394_v54 = vpop.f32.mrb[204].mxu1 }
 0x67a   : > { %v6473_v63 = vadd.f32 %v6394_v54, %v10528_v13  ;;  %v6396_v19 = vpop.f32.mrb[205].mxu1 }
 0x67b   : > { %v6397_v25 = vpop.f32.mrb[206].mxu1 }
 0x67c   : > { %v6512_v22 = vadd.f32 %v10556_v36, %v6473_v63  ;;  %v6474_v27 = vadd.f32 %v6397_v25, %v10530_v45  ;;  %v6399_v33 = vpop.f32.mrb[207].mxu1 }
 0x67d   : > { %v6189_v40 = vpop.f32.mrb[156].mxu0 }
 0x67e   : > { %6545 = vst.msk [vmem:[%s10562_s30 + $0x80] sm:$0xff] %vm6528_vm8, %v6512_v22  ;;  %v6513_v30 = vadd.f32 %v10556_v36, %v6474_v27  ;;  %v10608_v43 = vadd.f32 %v6189_v40, %v10544_v39  ;;  %v6191_v1 = vpop.f32.mrb[157].mxu0 }
 0x67f   : > { %v6192_v44 = vpop.f32.mrb[158].mxu0 }
 0x680   : > { %6546 = vst.msk [vmem:[%s10562_s30 + $0x88] sm:$0xff] %vm6528_vm8, %v6513_v30  ;;  %v10613_v13 = vadd.f32 %v6192_v44, %v10546_v11  ;;  %v6194_v50 = vpop.f32.mrb[159].mxu0 }
 0x681   : > { %v6402_v45 = vpop.f32.mrb[208].mxu1 }
 0x682   : > { %v6475_v9 = vadd.f32 %v6402_v45, %v10532_v29  ;;  %v6404_v51 = vpop.f32.mrb[209].mxu1 }
 0x683   : > { %v6405_v42 = vpop.f32.mrb[210].mxu1 }
 0x684   : > { %v6514_v60 = vadd.f32 %v10556_v36, %v6475_v9  ;;  %v6476_v39 = vadd.f32 %v6405_v42, %v10534_v7  ;;  %v6407_v46 = vpop.f32.mrb[211].mxu1 }
 0x685   : > { %v6330_v37 = vpop.f32.mrb[160].mxu0 }
 0x686   : > { %6547 = vst.msk [vmem:[%s10562_s30 + $0x90] sm:$0xff] %vm6528_vm8, %v6514_v60  ;;  %v6515_v47 = vadd.f32 %v10556_v36, %v6476_v39  ;;  %v6457_v11 = vadd.f32 %v6330_v37, %v10496_v61  ;;  %v6332_v32 = vpop.f32.mrb[161].mxu0 }
 0x687   : > { %v6333_v20 = vpop.f32.mrb[162].mxu0 }
 0x688   : > { %6548 = vst.msk [vmem:[%s10562_s30 + $0x98] sm:$0xff] %vm6528_vm8, %v6515_v47  ;;  %v6496_v29 = vadd.f32 %v10556_v36, %v6457_v11  ;;  %v6458_v10 = vadd.f32 %v6333_v20, %v10498_v49  ;;  %v6335_v55 = vpop.f32.mrb[163].mxu0 }
 0x689   : > { %v6410_v7 = vpop.f32.mrb[212].mxu1 }
 0x68a   : > { %6529 = vst.msk [vmem:[%s10562_s30] sm:$0xff] %vm6528_vm8, %v6496_v29  ;;  %v6497_v48 = vadd.f32 %v10556_v36, %v6458_v10  ;;  %v6477_v62 = vadd.f32 %v6410_v7, %v10540_v59  ;;  %v6412_v14 = vpop.f32.mrb[213].mxu1 }
 0x68b   : > { %v6413_v61 = vpop.f32.mrb[214].mxu1 }
 0x68c   : > { %6530 = vst.msk [vmem:[%s10562_s30 + $0x8] sm:$0xff] %vm6528_vm8, %v6497_v48  ;;  %v6516_v18 = vadd.f32 %v10556_v36, %v6477_v62  ;;  %v6478_v16 = vadd.f32 %v6413_v61, %v10542_v53  ;;  %v6415_v58 = vpop.f32.mrb[215].mxu1 }
 0x68d   : > { %v6338_v49 = vpop.f32.mrb[164].mxu0 }
 0x68e   : > { %6549 = vst.msk [vmem:[%s10562_s30 + $0xa0] sm:$0xff] %vm6528_vm8, %v6516_v18  ;;  %v6517_v0 = vadd.f32 %v10556_v36, %v6478_v16  ;;  %v6459_v57 = vadd.f32 %v6338_v49, %v10500_v4  ;;  %v6340_v3 = vpop.f32.mrb[165].mxu0 }
 0x68f   : > { %v6341_v59 = vpop.f32.mrb[166].mxu0 }
 0x690   : > { %6550 = vst.msk [vmem:[%s10562_s30 + $0xa8] sm:$0xff] %vm6528_vm8, %v6517_v0  ;;  %v6498_v17 = vadd.f32 %v10556_v36, %v6459_v57  ;;  %v6460_v23 = vadd.f32 %v6341_v59, %v10502_v26  ;;  %v6343_v52 = vpop.f32.mrb[167].mxu0 }
 0x691   : > { %v6418_v53 = vpop.f32.mrb[216].mxu1 }
 0x692   : > { %6531 = vst.msk [vmem:[%s10562_s30 + $0x10] sm:$0xff] %vm6528_vm8, %v6498_v17  ;;  %v6499_v34 = vadd.f32 %v10556_v36, %v6460_v23  ;;  %v6479_v54 = vadd.f32 %v6418_v53, %v10548_v5  ;;  %v6420_v63 = vpop.f32.mrb[217].mxu1 }
 0x693   : > { %v6421_v4 = vpop.f32.mrb[218].mxu1 }
 0x694   : > { %6532 = vst.msk [vmem:[%s10562_s30 + $0x18] sm:$0xff] %vm6528_vm8, %v6499_v34  ;;  %v6518_v19 = vadd.f32 %v10556_v36, %v6479_v54  ;;  %v6480_v25 = vadd.f32 %v6421_v4, %v10551_v56  ;;  %v6423_v22 = vpop.f32.mrb[219].mxu1 }
 0x695   : > { %v6346_v26 = vpop.f32.mrb[168].mxu0 }
 0x696   : > { %6551 = vst.msk [vmem:[%s10562_s30 + $0xb0] sm:$0xff] %vm6528_vm8, %v6518_v19  ;;  %v6519_v27 = vadd.f32 %v10556_v36, %v6480_v25  ;;  %v6461_v33 = vadd.f32 %v6346_v26, %v10504_v41  ;;  %v6348_v40 = vpop.f32.mrb[169].mxu0 }
 0x697   : > { %v6349_v5 = vpop.f32.mrb[170].mxu0 }
 0x698   : > { %6552 = vst.msk [vmem:[%s10562_s30 + $0xb8] sm:$0xff] %vm6528_vm8, %v6519_v27  ;;  %v6500_v30 = vadd.f32 %v10556_v36, %v6461_v33  ;;  %v6462_v1 = vadd.f32 %v6349_v5, %v10506_v12  ;;  %v6351_v44 = vpop.f32.mrb[171].mxu0 }
 0x699   : > { %v6426_v56 = vpop.f32.mrb[220].mxu1 }
 0x69a   : > { %6533 = vst.msk [vmem:[%s10562_s30 + $0x20] sm:$0xff] %vm6528_vm8, %v6500_v30  ;;  %v6501_v50 = vadd.f32 %v10556_v36, %v6462_v1  ;;  %v6481_v45 = vadd.f32 %v6426_v56, %v10569_v31  ;;  %v6428_v9 = vpop.f32.mrb[221].mxu1 }
 0x69b   : > { %v6429_v41 = vpop.f32.mrb[222].mxu1 }
 0x69c   : > { %6534 = vst.msk [vmem:[%s10562_s30 + $0x28] sm:$0xff] %vm6528_vm8, %v6501_v50  ;;  %v6520_v51 = vadd.f32 %v10556_v36, %v6481_v45  ;;  %v6482_v42 = vadd.f32 %v6429_v41, %v10573_v6  ;;  %v6431_v60 = vpop.f32.mrb[223].mxu1 }
 0x69d   : > { %v6354_v12 = vpop.f32.mrb[172].mxu0 }
 0x69e   : > { %6553 = vst.msk [vmem:[%s10562_s30 + $0xc0] sm:$0xff] %vm6528_vm8, %v6520_v51  ;;  %v6521_v39 = vadd.f32 %v10556_v36, %v6482_v42  ;;  %v6463_v46 = vadd.f32 %v6354_v12, %v10508_v24  ;;  %v6356_v37 = vpop.f32.mrb[173].mxu0 }
 0x69f   : > { %v6357_v31 = vpop.f32.mrb[174].mxu0 }
 0x6a0   : > { %6554 = vst.msk [vmem:[%s10562_s30 + $0xc8] sm:$0xff] %vm6528_vm8, %v6521_v39  ;;  %v6502_v47 = vadd.f32 %v10556_v36, %v6463_v46  ;;  %v6464_v11 = vadd.f32 %v6357_v31, %v10510_v8  ;;  %v6359_v32 = vpop.f32.mrb[175].mxu0 }
 0x6a1   : > { %v6434_v6 = vpop.f32.mrb[224].mxu1 }
 0x6a2   : > { %6535 = vst.msk [vmem:[%s10562_s30 + $0x30] sm:$0xff] %vm6528_vm8, %v6502_v47  ;;  %v6503_v20 = vadd.f32 %v10556_v36, %v6464_v11  ;;  %v6483_v29 = vadd.f32 %v6434_v6, %v10581_v21  ;;  %v6436_v10 = vpop.f32.mrb[225].mxu1 }
 0x6a3   : > { %v6437_v24 = vpop.f32.mrb[226].mxu1 }
 0x6a4   : > { %6536 = vst.msk [vmem:[%s10562_s30 + $0x38] sm:$0xff] %vm6528_vm8, %v6503_v20  ;;  %v6522_v55 = vadd.f32 %v10556_v36, %v6483_v29  ;;  %v6484_v7 = vadd.f32 %v6437_v24, %v10585_v38  ;;  %v6439_v48 = vpop.f32.mrb[227].mxu1 }
 0x6a5   : > { %v6362_v8 = vpop.f32.mrb[176].mxu0 }
 0x6a6   : > { %6555 = vst.msk [vmem:[%s10562_s30 + $0xd0] sm:$0xff] %vm6528_vm8, %v6522_v55  ;;  %v6523_v62 = vadd.f32 %v10556_v36, %v6484_v7  ;;  %v6465_v14 = vadd.f32 %v6362_v8, %v10512_v15  ;;  %v6364_v61 = vpop.f32.mrb[177].mxu0 }
 0x6a7   : > { %v6365_v21 = vpop.f32.mrb[178].mxu0 }
 0x6a8   : > { %6556 = vst.msk [vmem:[%s10562_s30 + $0xd8] sm:$0xff] %vm6528_vm8, %v6523_v62  ;;  %v6504_v18 = vadd.f32 %v10556_v36, %v6465_v14  ;;  %v6466_v16 = vadd.f32 %v6365_v21, %v10514_v2  ;;  %v6367_v38 = vpop.f32.mrb[179].mxu0 }
 0x6a9   : > { %v6442_v58 = vpop.f32.mrb[228].mxu1 }
 0x6aa   : > { %6537 = vst.msk [vmem:[%s10562_s30 + $0x40] sm:$0xff] %vm6528_vm8, %v6504_v18  ;;  %v6505_v49 = vadd.f32 %v10556_v36, %v6466_v16  ;;  %v6485_v0 = vadd.f32 %v6442_v58, %v10594_v35  ;;  %v6444_v57 = vpop.f32.mrb[229].mxu1 }
 0x6ab   : > { %v6445_v15 = vpop.f32.mrb[230].mxu1 }
 0x6ac   : > { %6538 = vst.msk [vmem:[%s10562_s30 + $0x48] sm:$0xff] %vm6528_vm8, %v6505_v49  ;;  %v6524_v3 = vadd.f32 %v10556_v36, %v6485_v0  ;;  %v6486_v59 = vadd.f32 %v6445_v15, %v10599_v28  ;;  %v6447_v17 = vpop.f32.mrb[231].mxu1 }
 0x6ae   : > { %6557 = vst.msk [vmem:[%s10562_s30 + $0xe0] sm:$0xff] %vm6528_vm8, %v6524_v3  ;;  %v6525_v2 = vadd.f32 %v10556_v36, %v6486_v59 }
 0x6b0   : > { %6558 = vst.msk [vmem:[%s10562_s30 + $0xe8] sm:$0xff] %vm6528_vm8, %v6525_v2 }
 0x6b1   : > { %v6450_v23 = vpop.f32.mrb[232].mxu1 }
 0x6b2   : > { %v6487_v35 = vadd.f32 %v6450_v23, %v10608_v43  ;;  %v6452_v52 = vpop.f32.mrb[233].mxu1 }
 0x6b3   : > { %v6453_v53 = vpop.f32.mrb[234].mxu1 }
 0x6b4   : > { %v6526_v34 = vadd.f32 %v10556_v36, %v6487_v35  ;;  %v6488_v54 = vadd.f32 %v6453_v53, %v10613_v13  ;;  %v6455_v63 = vpop.f32.mrb[235].mxu1 }
 0x6b6   : > { %6559 = vst.msk [vmem:[%s10562_s30 + $0xf0] sm:$0xff] %vm6528_vm8, %v6526_v34  ;;  %v6527_v28 = vadd.f32 %v10556_v36, %v6488_v54 }
 0x6b8   : > { %6560 = vst.msk [vmem:[%s10562_s30 + $0xf8] sm:$0xff] %vm6528_vm8, %v6527_v28 }
 0x6b9 PF: > { %s18_s27 = sadd.s32 1, %s7729_s27  }
 0x6ba   : > { %p15_p4 = scmp.ge.s32.totalorder %s18_s27, 4  }
 0x6bc   :  { %17 = sbr.rel (!%p15_p4) target bundleno = 1 (0x1), region = 95 }

</bundles_post_ra>
